<compile_context>
chip_gen: v5e
topology: v5e:2x2
jax: 0.10.0
libtpu: 0.0.40
codegen_flags: <defaults>
</compile_context>

<pallas_src>
import math

import jax
import jax.numpy as jnp
from jax.experimental import pallas as pl
from jax.experimental.pallas import tpu as pltpu


DFEAT = 512   # backbone feature width (convNet.quality: Linear(512 + 512, 128))
DMID = 128    # quality-regression hidden width

VMEM_BUDGET = 40 * 1024 * 1024   # tile-planning budget (stays under the limit below)
VMEM_LIMIT = 48 * 1024 * 1024    # safe on v5e/v6e/v7x; raise to ~96 MiB on 128 MiB parts


# ---------------------------------------------------------------------------
# Fused forward kernel: backbones + gated fusion + attention + head.
# ---------------------------------------------------------------------------
def fused_convnet_kernel(scal_ref,
                         x_ref, v1_ref, v2_ref, v3_ref, v4_ref, x3d_ref,
                         wswin_ref, wres_ref, bias_ref,
                         wks_ref, wv_ref, w1a_ref, w1b_ref, b1_ref, w2r_ref,
                         o_ref,
                         acc_ref):
    k_step = pl.program_id(1)
    nk = pl.num_programs(1)

    g = scal_ref[0]      # sigmoid(alpha) fusion gate
    gk1 = scal_ref[1]    # (1 - g) * k1  (gate folded into the mix weights)
    gk2 = scal_ref[2]
    gk3 = scal_ref[3]
    gk4 = scal_ref[4]
    b2 = scal_ref[5]

    @pl.when(k_step == 0)
    def _init():
        acc_ref[...] = jnp.zeros_like(acc_ref)

    # Activations arrive f32 from HBM; the bf16 cast happens HERE (no separate
    # wrapper convert pass).  All 4 resnet streams share one (linear) backbone,
    # so the k-weighted fusion commutes with the matmul -> mix in input space
    # on the VPU and run ONE matmul instead of 4.  The fusion gate is folded in
    # too, so a single f32 accumulator carries g*swin + (1-g)*resnet directly.
    # TODO(synk): exact only because the synthetic backbones are linear; a real
    # nonlinear resnet needs 4 separate backbone passes (stack to (4*BT, CHW)).
    x_g = (g * x_ref[...]).astype(jnp.bfloat16)
    bv_mix = (gk1 * v1_ref[...] + gk2 * v2_ref[...]
              + gk3 * v3_ref[...] + gk4 * v4_ref[...]).astype(jnp.bfloat16)
    acc_ref[...] += (
        jnp.dot(x_g, wswin_ref[...], preferred_element_type=jnp.float32)
        + jnp.dot(bv_mix, wres_ref[...], preferred_element_type=jnp.float32))

    @pl.when(k_step == nk - 1)
    def _finalize():
        fused = acc_ref[...] + bias_ref[...]            # (tm, 512) gated fusion
        fused_bf = fused.astype(jnp.bfloat16)
        x3d = x3d_ref[...].astype(jnp.bfloat16)

        # cross_attention_layer (synthetic single-token cross attention).
        # score = (fused Wq) . (x3d Wk) == fused . (x3d @ (Wk Wq^T)), so the
        # (512,512) Wq matmul is folded into wks = Wk @ Wq^T in the wrapper.
        kscore = jnp.dot(x3d, wks_ref[...], preferred_element_type=jnp.float32)
        vv = jnp.dot(x3d, wv_ref[...], preferred_element_type=jnp.float32)
        score = jnp.sum(fused * kscore, axis=-1, keepdims=True) * (float(DFEAT) ** -0.5)
        attended = jax.nn.sigmoid(score) * vv            # (tm, 512)

        # quality regression: Linear(512+512, 128) as split matmul (no concat).
        h = (jnp.dot(fused_bf, w1a_ref[...], preferred_element_type=jnp.float32)
             + jnp.dot(attended.astype(jnp.bfloat16), w1b_ref[...],
                       preferred_element_type=jnp.float32)
             + b1_ref[...])                              # (tm, 128)

        # Linear(128, 1): N=1 would waste the MXU -> VPU multiply + lane reduce.
        out = jnp.sum(h * w2r_ref[...], axis=-1, keepdims=True) + b2   # (tm, 1)
        o_ref[...] = out.astype(o_ref.dtype)


# ---------------------------------------------------------------------------
# Parameter init (deterministic; shapes implied by convNet.__init__ / forward)
# ---------------------------------------------------------------------------
def init_params(key, chw, d3, dfeat=DFEAT, dmid=DMID):
    ks = jax.random.split(key, 12)

    def w(k, shape, scale=0.02):
        return jax.random.normal(k, shape, jnp.float32) * scale

    return dict(
        # TODO(synk): swin_transformer / resnet are external backbones in the
        # original code; replaced by deterministic linear projections to 512-d.
        w_swin=w(ks[0], (chw, dfeat)), b_swin=w(ks[1], (1, dfeat)),
        w_res=w(ks[2], (chw, dfeat)), b_res=w(ks[3], (1, dfeat)),
        # synthetic cross-attention projections
        wq=w(ks[4], (dfeat, dfeat)),
        wk=w(ks[5], (d3, dfeat)),
        wv=w(ks[6], (d3, dfeat)),
        # quality regression: Linear(1024, 128) split into two (512, 128) halves
        w1a=w(ks[7], (dfeat, dmid)),
        w1b=w(ks[8], (dfeat, dmid)),
        b1=w(ks[9], (1, dmid)),
        w2=w(ks[10], (dmid, 1)),
        b2=w(ks[11], (1, 1)),
        # convNet's own parameters
        k1=jnp.float32(0.5), k2=jnp.float32(0.5),
        k3=jnp.float32(0.5), k4=jnp.float32(0.5),
        alpha=jnp.float32(0.0),   # Adaptive_WeightFusion gate (synthetic)
    )


def prepare_kernel_weights(params):
    """One-time weight prep (re-run after each optimizer update).

    Keeps the per-call forward path free of the big f32->bf16 weight converts,
    folds Wq into the bilinear score matrix, and zero-pads CHW to a multiple of
    128 so the K axis can always be tiled safely (zero weight rows are exact).
    """
    chw = params["w_swin"].shape[0]
    pad = (-chw) % 128
    w_swin, w_res = params["w_swin"], params["w_res"]
    if pad:
        w_swin = jnp.pad(w_swin, ((0, pad), (0, 0)))
        w_res = jnp.pad(w_res, ((0, pad), (0, 0)))
    return dict(
        w_swin=w_swin.astype(jnp.bfloat16),
        w_res=w_res.astype(jnp.bfloat16),
        wk_score=(params["wk"] @ params["wq"].T).astype(jnp.bfloat16),  # (d3, 512)
        wv=params["wv"].astype(jnp.bfloat16),
        w1a=params["w1a"].astype(jnp.bfloat16),
        w1b=params["w1b"].astype(jnp.bfloat16),
        b_swin=params["b_swin"], b_res=params["b_res"], b1=params["b1"],
        w2_row=params["w2"].reshape(1, DMID),          # (128,1) -> (1,128) row
        b2=params["b2"].reshape(()),
    )
    # TODO(synk): int8 (v5e/v6e) or fp8 (v7x) quantization of the backbone
    # weights + activation streams would nearly halve HBM bytes again, but
    # needs an accuracy check against the f32 reference.


# ---------------------------------------------------------------------------
# Tiling heuristics
# ---------------------------------------------------------------------------
def _vmem_footprint(tm, tk, d3):
    """Rough double-buffered VMEM footprint estimate in bytes."""
    act = 5 * tm * tk * 4 * 2                      # x + bv1..bv4, f32, 2 buffers
    x3d = tm * d3 * 4 * 2
    wts = 2 * tk * DFEAT * 2 * 2                   # w_swin + w_res, bf16, 2 buffers
    head = 2 * (2 * d3 * DFEAT * 2 + 2 * DFEAT * DMID * 2
                + DFEAT * 4 + 2 * DMID * 4)        # wks, wv, w1a, w1b, biases
    acc = tm * DFEAT * 4
    out = tm * 4 * 2
    return act + x3d + wts + head + acc + out


def _choose_tiles(bt, chw, d3):
    """Pick (tm, tk).

    Preference order: (a) a fully VMEM-resident weight tile (tk == chw -> the
    weight block index is constant so the (chw,512) weights are DMA'd once for
    the whole call), (b) the biggest row tile that fits, (c) >=2 row grid steps
    so both v7x TensorCores get work under dimension_semantics='parallel'.
    Guarded fallback never emits a tile that overflows the VMEM budget.
    """
    tm_cands = [c for c in (1024, 512, 256, 128, 64, 32, 16, 8) if bt % c == 0]
    if not tm_cands:
        tm_cands = [bt]                     # full dim satisfies the (8,128) rule
    multi = [c for c in tm_cands if bt // c >= 2]
    tm_cands = multi + [c for c in tm_cands if bt // c < 2]

    tk_cands = [chw] + [c for c in (4096, 2048, 1024, 512, 256, 128)
                        if c < chw and chw % c == 0]

    for tm in tm_cands:
        for tk in tk_cands:
            if _vmem_footprint(tm, tk, d3) <= VMEM_BUDGET:
                return tm, tk
    return tm_cands[-1], tk_cands[-1]


# ---------------------------------------------------------------------------
# Forward pass (mirrors convNet.forward)
# ---------------------------------------------------------------------------
def convnet_forward(params, kw, x_img, x_3d, bv1, bv2, bv3, bv4):
    B, T = x_img.shape[0], x_img.shape[1]
    bt = B * T
    chw = int(math.prod(x_img.shape[2:]))
    chw_p = kw["w_swin"].shape[0]          # padded CHW (multiple of 128)
    d3 = x_3d.shape[2]

    # Activations stay f32 in HBM; reshape is a free view and the bf16 cast
    # happens inside the kernel (no extra convert pass over the big streams).
    def flat(a):
        a2 = a.reshape(bt, chw)
        if chw_p != chw:
            # TODO(synk): padding adds one HBM copy; prefer 128-multiple CHW.
            a2 = jnp.pad(a2, ((0, 0), (0, chw_p - chw)))
        return a2

    xf = flat(x_img)
    v1, v2, v3, v4 = flat(bv1), flat(bv2), flat(bv3), flat(bv4)
    x3d = x_3d.reshape(bt, d3)                       # view(-1, D3)

    # Scalar prep (cheap): fold the Adaptive_WeightFusion gate into the mix
    # weights and pre-fuse the backbone biases -> single in-kernel accumulator.
    g = jax.nn.sigmoid(params["alpha"])
    k1, k2, k3, k4 = params["k1"], params["k2"], params["k3"], params["k4"]
    scal = jnp.stack([g, (1.0 - g) * k1, (1.0 - g) * k2, (1.0 - g) * k3,
                      (1.0 - g) * k4, kw["b2"]]).astype(jnp.float32)
    bias_fused = (g * kw["b_swin"]
                  + (1.0 - g) * (k1 + k2 + k3 + k4) * kw["b_res"])   # (1, 512)

    tm, tk = _choose_tiles(bt, chw_p, d3)
    grid = (bt // tm, chw_p // tk)

    row_chw = lambda i, k: (i, k)
    row_only = lambda i, k: (i, 0)
    k_only = lambda i, k: (k, 0)
    resident = lambda i, k: (0, 0)
    # TODO(synk): pipeline_mode=pl.Buffered(1) on the constant-index head-weight
    # specs would halve their VMEM on v7x; left at defaults for portability.

    out = pl.pallas_call(
        fused_convnet_kernel,
        out_shape=jax.ShapeDtypeStruct((bt, 1), jnp.float32),
        grid_spec=pltpu.PrefetchScalarGridSpec(
            num_scalar_prefetch=0,
            grid=grid,
            in_specs=[
                pl.BlockSpec(memory_space=pltpu.MemorySpace.SMEM),   # scalars
                pl.BlockSpec((tm, tk), row_chw),                     # x_img (f32)
                pl.BlockSpec((tm, tk), row_chw),                     # bv1   (f32)
                pl.BlockSpec((tm, tk), row_chw),                     # bv2
                pl.BlockSpec((tm, tk), row_chw),                     # bv3
                pl.BlockSpec((tm, tk), row_chw),                     # bv4
                pl.BlockSpec((tm, d3), row_only),                    # x3d   (f32)
                pl.BlockSpec((tk, DFEAT), k_only),                   # w_swin
                pl.BlockSpec((tk, DFEAT), k_only),                   # w_res
                pl.BlockSpec((1, DFEAT), resident),                  # fused bias
                pl.BlockSpec((d3, DFEAT), resident),                 # Wk @ Wq^T
                pl.BlockSpec((d3, DFEAT), resident),                 # wv
                pl.BlockSpec((DFEAT, DMID), resident),               # w1a
                pl.BlockSpec((DFEAT, DMID), resident),               # w1b
                pl.BlockSpec((1, DMID), resident),                   # b1
                pl.BlockSpec((1, DMID), resident),                   # w2 row
            ],
            out_specs=pl.BlockSpec((tm, 1), row_only),
            scratch_shapes=[pltpu.VMEM((tm, DFEAT), jnp.float32)],   # gated acc
        ),
        compiler_params=pltpu.CompilerParams(
            dimension_semantics=("parallel", "arbitrary"),
            vmem_limit_bytes=VMEM_LIMIT,
        ),
    )(scal, xf, v1, v2, v3, v4, x3d,
      kw["w_swin"], kw["w_res"], bias_fused, kw["wk_score"], kw["wv"],
      kw["w1a"], kw["w1b"], kw["b1"], kw["w2_row"])

    # x.view(x_size[0], x_size[1]); torch.mean(x, dim=1)  (trivial glue reduction)
    return jnp.mean(out.reshape(B, T), axis=1)


if __name__ == "__main__":
    B, T, C, H, W = 2, 4, 3, 16, 16
    D3 = 256

    key = jax.random.PRNGKey(0)
    kx, k3d, kb1, kb2, kb3, kb4, kp = jax.random.split(key, 7)
    x_img = jax.random.normal(kx, (B, T, C, H, W), jnp.float32)
    x_3d = jax.random.normal(k3d, (B, T, D3), jnp.float32)
    bv1 = jax.random.normal(kb1, (B, T, C, H, W), jnp.float32)
    bv2 = jax.random.normal(kb2, (B, T, C, H, W), jnp.float32)
    bv3 = jax.random.normal(kb3, (B, T, C, H, W), jnp.float32)
    bv4 = jax.random.normal(kb4, (B, T, C, H, W), jnp.float32)

    params = init_params(kp, chw=C * H * W, d3=D3)
    kernel_weights = prepare_kernel_weights(params)   # one-time weight prep

    out = convnet_forward(params, kernel_weights, x_img, x_3d, bv1, bv2, bv3, bv4)
    out = jax.block_until_ready(out)
    assert out.shape == (B,), out.shape
    assert bool(jnp.all(jnp.isfinite(out)))
    print("KERNEL_OK")
</pallas_src>

<mosaic_0001>
module attributes {stable_mosaic.version = 11 : i64} {
  func.func @fused_convnet_kernel(%arg0: i32, %arg1: i32, %arg2: memref<6xf32, #tpu.memory_space<smem>>, %arg3: memref<8x768xf32, #tpu.memory_space<vmem>>, %arg4: memref<8x768xf32, #tpu.memory_space<vmem>>, %arg5: memref<8x768xf32, #tpu.memory_space<vmem>>, %arg6: memref<8x768xf32, #tpu.memory_space<vmem>>, %arg7: memref<8x768xf32, #tpu.memory_space<vmem>>, %arg8: memref<8x256xf32, #tpu.memory_space<vmem>>, %arg9: memref<768x512xbf16, #tpu.memory_space<vmem>>, %arg10: memref<768x512xbf16, #tpu.memory_space<vmem>>, %arg11: memref<1x512xf32, #tpu.memory_space<vmem>>, %arg12: memref<256x512xbf16, #tpu.memory_space<vmem>>, %arg13: memref<256x512xbf16, #tpu.memory_space<vmem>>, %arg14: memref<512x128xbf16, #tpu.memory_space<vmem>>, %arg15: memref<512x128xbf16, #tpu.memory_space<vmem>>, %arg16: memref<1x128xf32, #tpu.memory_space<vmem>>, %arg17: memref<1x128xf32, #tpu.memory_space<vmem>>, %arg18: memref<8x1xf32, #tpu.memory_space<vmem>>, %arg19: memref<8x512xf32, #tpu.memory_space<vmem>>) attributes {dimension_semantics = [#tpu.dimension_semantics<parallel>, #tpu.dimension_semantics<arbitrary>], iteration_bounds = array<i64: 1, 1>, scalar_prefetch = 0 : i64, scratch_operands = 1 : i64, tpu.core_type = #tpu.core_type<tc>, window_params = [{transform_indices = @transform_0, window_bounds = array<i64: 6>}, {transform_indices = @transform_1, window_bounds = array<i64: 8, 768>}, {transform_indices = @transform_2, window_bounds = array<i64: 8, 768>}, {transform_indices = @transform_3, window_bounds = array<i64: 8, 768>}, {transform_indices = @transform_4, window_bounds = array<i64: 8, 768>}, {transform_indices = @transform_5, window_bounds = array<i64: 8, 768>}, {transform_indices = @transform_6, window_bounds = array<i64: 8, 256>}, {transform_indices = @transform_7, window_bounds = array<i64: 768, 512>}, {transform_indices = @transform_8, window_bounds = array<i64: 768, 512>}, {pipeline_mode = #tpu.pipeline_mode<synchronous>, transform_indices = @transform_9, window_bounds = array<i64: 1, 512>}, {pipeline_mode = #tpu.pipeline_mode<synchronous>, transform_indices = @transform_10, window_bounds = array<i64: 256, 512>}, {pipeline_mode = #tpu.pipeline_mode<synchronous>, transform_indices = @transform_11, window_bounds = array<i64: 256, 512>}, {pipeline_mode = #tpu.pipeline_mode<synchronous>, transform_indices = @transform_12, window_bounds = array<i64: 512, 128>}, {pipeline_mode = #tpu.pipeline_mode<synchronous>, transform_indices = @transform_13, window_bounds = array<i64: 512, 128>}, {pipeline_mode = #tpu.pipeline_mode<synchronous>, transform_indices = @transform_14, window_bounds = array<i64: 1, 128>}, {pipeline_mode = #tpu.pipeline_mode<synchronous>, transform_indices = @transform_15, window_bounds = array<i64: 1, 128>}, {transform_indices = @transform_16, window_bounds = array<i64: 8, 1>}]} {
    %c0 = arith.constant 0 : index
    %0 = memref.load %arg2[%c0] : memref<6xf32, #tpu.memory_space<smem>>
    %c1 = arith.constant 1 : index
    %1 = memref.load %arg2[%c1] : memref<6xf32, #tpu.memory_space<smem>>
    %c2 = arith.constant 2 : index
    %2 = memref.load %arg2[%c2] : memref<6xf32, #tpu.memory_space<smem>>
    %c3 = arith.constant 3 : index
    %3 = memref.load %arg2[%c3] : memref<6xf32, #tpu.memory_space<smem>>
    %c4 = arith.constant 4 : index
    %4 = memref.load %arg2[%c4] : memref<6xf32, #tpu.memory_space<smem>>
    %c5 = arith.constant 5 : index
    %5 = memref.load %arg2[%c5] : memref<6xf32, #tpu.memory_space<smem>>
    %c0_i32 = arith.constant 0 : i32
    %6 = arith.cmpi eq, %arg1, %c0_i32 : i32
    %7 = arith.extui %6 : i1 to i32
    %c0_i32_0 = arith.constant 0 : i32
    %8 = arith.cmpi ne, %7, %c0_i32_0 : i32
    scf.if %8 {
      %cst_22 = arith.constant 0.000000e+00 : f32
      %40 = vector.broadcast %cst_22 : f32 to vector<8x512xf32>
      %c0_23 = arith.constant 0 : index
      %c0_24 = arith.constant 0 : index
      %41 = vector.load %arg19[%c0_23, %c0_24] : memref<8x512xf32, #tpu.memory_space<vmem>>, vector<8x512xf32>
      tpu.vector_store %arg19[%c0_23, %c0_24], %40 {strides = array<i32>} : memref<8x512xf32, #tpu.memory_space<vmem>>, vector<8x512xf32>,
    } else {
    }
    %c0_1 = arith.constant 0 : index
    %c0_2 = arith.constant 0 : index
    %9 = vector.load %arg3[%c0_1, %c0_2] : memref<8x768xf32, #tpu.memory_space<vmem>>, vector<8x768xf32>
    %10 = vector.broadcast %0 : f32 to vector<8x768xf32>
    %11 = arith.mulf %10, %9 : vector<8x768xf32>
    %12 = arith.truncf %11 : vector<8x768xf32> to vector<8x768xbf16>
    %c0_3 = arith.constant 0 : index
    %c0_4 = arith.constant 0 : index
    %13 = vector.load %arg4[%c0_3, %c0_4] : memref<8x768xf32, #tpu.memory_space<vmem>>, vector<8x768xf32>
    %14 = vector.broadcast %1 : f32 to vector<8x768xf32>
    %15 = arith.mulf %14, %13 : vector<8x768xf32>
    %c0_5 = arith.constant 0 : index
    %c0_6 = arith.constant 0 : index
    %16 = vector.load %arg5[%c0_5, %c0_6] : memref<8x768xf32, #tpu.memory_space<vmem>>, vector<8x768xf32>
    %17 = vector.broadcast %2 : f32 to vector<8x768xf32>
    %18 = arith.mulf %17, %16 : vector<8x768xf32>
    %19 = arith.addf %15, %18 : vector<8x768xf32>
    %c0_7 = arith.constant 0 : index
    %c0_8 = arith.constant 0 : index
    %20 = vector.load %arg6[%c0_7, %c0_8] : memref<8x768xf32, #tpu.memory_space<vmem>>, vector<8x768xf32>
    %21 = vector.broadcast %3 : f32 to vector<8x768xf32>
    %22 = arith.mulf %21, %20 : vector<8x768xf32>
    %23 = arith.addf %19, %22 : vector<8x768xf32>
    %c0_9 = arith.constant 0 : index
    %c0_10 = arith.constant 0 : index
    %24 = vector.load %arg7[%c0_9, %c0_10] : memref<8x768xf32, #tpu.memory_space<vmem>>, vector<8x768xf32>
    %25 = vector.broadcast %4 : f32 to vector<8x768xf32>
    %26 = arith.mulf %25, %24 : vector<8x768xf32>
    %27 = arith.addf %23, %26 : vector<8x768xf32>
    %28 = arith.truncf %27 : vector<8x768xf32> to vector<8x768xbf16>
    %c0_11 = arith.constant 0 : index
    %c0_12 = arith.constant 0 : index
    %29 = vector.load %arg19[%c0_11, %c0_12] : memref<8x512xf32, #tpu.memory_space<vmem>>, vector<8x512xf32>
    %c0_13 = arith.constant 0 : index
    %c0_14 = arith.constant 0 : index
    %30 = vector.load %arg9[%c0_13, %c0_14] : memref<768x512xbf16, #tpu.memory_space<vmem>>, vector<768x512xbf16>
    %cst = arith.constant dense<0.000000e+00> : vector<8x512xf32>
    %31 = tpu.matmul %12, %30, %cst {dimension_numbers = #tpu.dot_dimension_numbers<[1], [0], [0], [1], [0, 0, 1, 1], [], []>} : vector<8x768xbf16>, vector<768x512xbf16>, vector<8x512xf32> -> vector<8x512xf32>
    %c0_15 = arith.constant 0 : index
    %c0_16 = arith.constant 0 : index
    %32 = vector.load %arg10[%c0_15, %c0_16] : memref<768x512xbf16, #tpu.memory_space<vmem>>, vector<768x512xbf16>
    %cst_17 = arith.constant dense<0.000000e+00> : vector<8x512xf32>
    %33 = tpu.matmul %28, %32, %cst_17 {dimension_numbers = #tpu.dot_dimension_numbers<[1], [0], [0], [1], [0, 0, 1, 1], [], []>} : vector<8x768xbf16>, vector<768x512xbf16>, vector<8x512xf32> -> vector<8x512xf32>
    %34 = arith.addf %31, %33 : vector<8x512xf32>
    %35 = arith.addf %29, %34 : vector<8x512xf32>
    %c0_18 = arith.constant 0 : index
    %c0_19 = arith.constant 0 : index
    %36 = vector.load %arg19[%c0_18, %c0_19] : memref<8x512xf32, #tpu.memory_space<vmem>>, vector<8x512xf32>
    tpu.vector_store %arg19[%c0_18, %c0_19], %35 {strides = array<i32>} : memref<8x512xf32, #tpu.memory_space<vmem>>, vector<8x512xf32>,
    %c0_i32_20 = arith.constant 0 : i32
    %37 = arith.cmpi eq, %arg1, %c0_i32_20 : i32
    %38 = arith.extui %37 : i1 to i32
    %c0_i32_21 = arith.constant 0 : i32
    %39 = arith.cmpi ne, %38, %c0_i32_21 : i32
    scf.if %39 {
      %c0_22 = arith.constant 0 : index
      %c0_23 = arith.constant 0 : index
      %40 = vector.load %arg19[%c0_22, %c0_23] : memref<8x512xf32, #tpu.memory_space<vmem>>, vector<8x512xf32>
      %c0_24 = arith.constant 0 : index
      %c0_25 = arith.constant 0 : index
      %41 = vector.load %arg11[%c0_24, %c0_25] : memref<1x512xf32, #tpu.memory_space<vmem>>, vector<1x512xf32>
      %42 = vector.broadcast %41 : vector<1x512xf32> to vector<8x512xf32>
      %43 = arith.addf %40, %42 : vector<8x512xf32>
      %44 = arith.truncf %43 : vector<8x512xf32> to vector<8x512xbf16>
      %c0_26 = arith.constant 0 : index
      %c0_27 = arith.constant 0 : index
      %45 = vector.load %arg8[%c0_26, %c0_27] : memref<8x256xf32, #tpu.memory_space<vmem>>, vector<8x256xf32>
      %46 = arith.truncf %45 : vector<8x256xf32> to vector<8x256xbf16>
      %c0_28 = arith.constant 0 : index
      %c0_29 = arith.constant 0 : index
      %47 = vector.load %arg12[%c0_28, %c0_29] : memref<256x512xbf16, #tpu.memory_space<vmem>>, vector<256x512xbf16>
      %cst_30 = arith.constant dense<0.000000e+00> : vector<8x512xf32>
      %48 = tpu.matmul %46, %47, %cst_30 {dimension_numbers = #tpu.dot_dimension_numbers<[1], [0], [0], [1], [0, 0, 1, 1], [], []>} : vector<8x256xbf16>, vector<256x512xbf16>, vector<8x512xf32> -> vector<8x512xf32>
      %c0_31 = arith.constant 0 : index
      %c0_32 = arith.constant 0 : index
      %49 = vector.load %arg13[%c0_31, %c0_32] : memref<256x512xbf16, #tpu.memory_space<vmem>>, vector<256x512xbf16>
      %cst_33 = arith.constant dense<0.000000e+00> : vector<8x512xf32>
      %50 = tpu.matmul %46, %49, %cst_33 {dimension_numbers = #tpu.dot_dimension_numbers<[1], [0], [0], [1], [0, 0, 1, 1], [], []>} : vector<8x256xbf16>, vector<256x512xbf16>, vector<8x512xf32> -> vector<8x512xf32>
      %51 = arith.mulf %43, %48 : vector<8x512xf32>
      %cst_34 = arith.constant dense<0.000000e+00> : vector<8xf32>
      %52 = vector.multi_reduction <add>, %51, %cst_34 [1] : vector<8x512xf32> to vector<8xf32>
      %53 = vector.shape_cast %52 : vector<8xf32> to vector<8x1xf32>
      %cst_35 = arith.constant 0.0441941731 : f32
      %54 = vector.broadcast %cst_35 : f32 to vector<8x1xf32>
      %55 = arith.mulf %53, %54 : vector<8x1xf32>
      %56 = arith.negf %55 : vector<8x1xf32>
      %57 = math.exp %56 : vector<8x1xf32>
      %cst_36 = arith.constant 1.000000e+00 : f32
      %58 = vector.broadcast %cst_36 : f32 to vector<8x1xf32>
      %59 = arith.addf %58, %57 : vector<8x1xf32>
      %60 = arith.divf %58, %59 : vector<8x1xf32>
      %61 = vector.broadcast %60 : vector<8x1xf32> to vector<8x512xf32>
      %62 = arith.mulf %61, %50 : vector<8x512xf32>
      %c0_37 = arith.constant 0 : index
      %c0_38 = arith.constant 0 : index
      %63 = vector.load %arg14[%c0_37, %c0_38] : memref<512x128xbf16, #tpu.memory_space<vmem>>, vector<512x128xbf16>
      %cst_39 = arith.constant dense<0.000000e+00> : vector<8x128xf32>
      %64 = tpu.matmul %44, %63, %cst_39 {dimension_numbers = #tpu.dot_dimension_numbers<[1], [0], [0], [1], [0, 0, 1, 1], [], []>} : vector<8x512xbf16>, vector<512x128xbf16>, vector<8x128xf32> -> vector<8x128xf32>
      %65 = arith.truncf %62 : vector<8x512xf32> to vector<8x512xbf16>
      %c0_40 = arith.constant 0 : index
      %c0_41 = arith.constant 0 : index
      %66 = vector.load %arg15[%c0_40, %c0_41] : memref<512x128xbf16, #tpu.memory_space<vmem>>, vector<512x128xbf16>
      %cst_42 = arith.constant dense<0.000000e+00> : vector<8x128xf32>
      %67 = tpu.matmul %65, %66, %cst_42 {dimension_numbers = #tpu.dot_dimension_numbers<[1], [0], [0], [1], [0, 0, 1, 1], [], []>} : vector<8x512xbf16>, vector<512x128xbf16>, vector<8x128xf32> -> vector<8x128xf32>
      %68 = arith.addf %64, %67 : vector<8x128xf32>
      %c0_43 = arith.constant 0 : index
      %c0_44 = arith.constant 0 : index
      %69 = vector.load %arg16[%c0_43, %c0_44] : memref<1x128xf32, #tpu.memory_space<vmem>>, vector<1x128xf32>
      %70 = vector.broadcast %69 : vector<1x128xf32> to vector<8x128xf32>
      %71 = arith.addf %68, %70 : vector<8x128xf32>
      %c0_45 = arith.constant 0 : index
      %c0_46 = arith.constant 0 : index
      %72 = vector.load %arg17[%c0_45, %c0_46] : memref<1x128xf32, #tpu.memory_space<vmem>>, vector<1x128xf32>
      %73 = vector.broadcast %72 : vector<1x128xf32> to vector<8x128xf32>
      %74 = arith.mulf %71, %73 : vector<8x128xf32>
      %cst_47 = arith.constant dense<0.000000e+00> : vector<8xf32>
      %75 = vector.multi_reduction <add>, %74, %cst_47 [1] : vector<8x128xf32> to vector<8xf32>
      %76 = vector.shape_cast %75 : vector<8xf32> to vector<8x1xf32>
      %77 = vector.broadcast %5 : f32 to vector<8x1xf32>
      %78 = arith.addf %76, %77 : vector<8x1xf32>
      %c0_48 = arith.constant 0 : index
      %c0_49 = arith.constant 0 : index
      %79 = vector.load %arg18[%c0_48, %c0_49] : memref<8x1xf32, #tpu.memory_space<vmem>>, vector<8x1xf32>
      tpu.vector_store %arg18[%c0_48, %c0_49], %78 {strides = array<i32>} : memref<8x1xf32, #tpu.memory_space<vmem>>, vector<8x1xf32>,
    } else {
    }
    return
  }
  func.func @transform_0(%arg0: i32, %arg1: i32) -> i32 {
    %c0_i32 = arith.constant 0 : i32
    %c0_i32_0 = arith.constant 0 : i32
    return %c0_i32 : i32
  }
  func.func @transform_1(%arg0: i32, %arg1: i32) -> (i32, i32) {
    %c0_i32 = arith.constant 0 : i32
    return %arg0, %arg1 : i32, i32
  }
  func.func @transform_2(%arg0: i32, %arg1: i32) -> (i32, i32) {
    %c0_i32 = arith.constant 0 : i32
    return %arg0, %arg1 : i32, i32
  }
  func.func @transform_3(%arg0: i32, %arg1: i32) -> (i32, i32) {
    %c0_i32 = arith.constant 0 : i32
    return %arg0, %arg1 : i32, i32
  }
  func.func @transform_4(%arg0: i32, %arg1: i32) -> (i32, i32) {
    %c0_i32 = arith.constant 0 : i32
    return %arg0, %arg1 : i32, i32
  }
  func.func @transform_5(%arg0: i32, %arg1: i32) -> (i32, i32) {
    %c0_i32 = arith.constant 0 : i32
    return %arg0, %arg1 : i32, i32
  }
  func.func @transform_6(%arg0: i32, %arg1: i32) -> (i32, i32) {
    %c0_i32 = arith.constant 0 : i32
    %c0_i32_0 = arith.constant 0 : i32
    return %arg0, %c0_i32 : i32, i32
  }
  func.func @transform_7(%arg0: i32, %arg1: i32) -> (i32, i32) {
    %c0_i32 = arith.constant 0 : i32
    %c0_i32_0 = arith.constant 0 : i32
    return %arg1, %c0_i32 : i32, i32
  }
  func.func @transform_8(%arg0: i32, %arg1: i32) -> (i32, i32) {
    %c0_i32 = arith.constant 0 : i32
    %c0_i32_0 = arith.constant 0 : i32
    return %arg1, %c0_i32 : i32, i32
  }
  func.func @transform_9(%arg0: i32, %arg1: i32) -> (i32, i32) {
    %c0_i32 = arith.constant 0 : i32
    %c0_i32_0 = arith.constant 0 : i32
    %c0_i32_1 = arith.constant 0 : i32
    return %c0_i32, %c0_i32_0 : i32, i32
  }
  func.func @transform_10(%arg0: i32, %arg1: i32) -> (i32, i32) {
    %c0_i32 = arith.constant 0 : i32
    %c0_i32_0 = arith.constant 0 : i32
    %c0_i32_1 = arith.constant 0 : i32
    return %c0_i32, %c0_i32_0 : i32, i32
  }
  func.func @transform_11(%arg0: i32, %arg1: i32) -> (i32, i32) {
    %c0_i32 = arith.constant 0 : i32
    %c0_i32_0 = arith.constant 0 : i32
    %c0_i32_1 = arith.constant 0 : i32
    return %c0_i32, %c0_i32_0 : i32, i32
  }
  func.func @transform_12(%arg0: i32, %arg1: i32) -> (i32, i32) {
    %c0_i32 = arith.constant 0 : i32
    %c0_i32_0 = arith.constant 0 : i32
    %c0_i32_1 = arith.constant 0 : i32
    return %c0_i32, %c0_i32_0 : i32, i32
  }
  func.func @transform_13(%arg0: i32, %arg1: i32) -> (i32, i32) {
    %c0_i32 = arith.constant 0 : i32
    %c0_i32_0 = arith.constant 0 : i32
    %c0_i32_1 = arith.constant 0 : i32
    return %c0_i32, %c0_i32_0 : i32, i32
  }
  func.func @transform_14(%arg0: i32, %arg1: i32) -> (i32, i32) {
    %c0_i32 = arith.constant 0 : i32
    %c0_i32_0 = arith.constant 0 : i32
    %c0_i32_1 = arith.constant 0 : i32
    return %c0_i32, %c0_i32_0 : i32, i32
  }
  func.func @transform_15(%arg0: i32, %arg1: i32) -> (i32, i32) {
    %c0_i32 = arith.constant 0 : i32
    %c0_i32_0 = arith.constant 0 : i32
    %c0_i32_1 = arith.constant 0 : i32
    return %c0_i32, %c0_i32_0 : i32, i32
  }
  func.func @transform_16(%arg0: i32, %arg1: i32) -> (i32, i32) {
    %c0_i32 = arith.constant 0 : i32
    %c0_i32_0 = arith.constant 0 : i32
    return %arg0, %c0_i32 : i32, i32
  }
}

</mosaic_0001>

<bundles_post_ra>
// kernel: tpu_custom_call.1
= control target key start
LH: loop header
LB: loop body
LE: loop exit
PB: predicated region body
PF: predicated region fallthrough
CT: control target
= control target key end

     0   :  { %s8695_s0 = inlined_call_operand.hbm [shape: f32[6], index: 0, kind: input, shape index: {}]   ;;  %s8696_s1 = inlined_call_operand.hbm [shape: f32[8,768], index: 1, kind: input, shape index: {}]   ;;  %s8697_s2 = inlined_call_operand.hbm [shape: f32[8,768], index: 2, kind: input, shape index: {}]   ;;  %s8698_s3 = inlined_call_operand.hbm [shape: f32[8,768], index: 3, kind: input, shape index: {}]   ;;  %s8699_s4 = inlined_call_operand.hbm [shape: f32[8,768], index: 4, kind: input, shape index: {}]   ;;  %s8700_s5 = inlined_call_operand.hbm [shape: f32[8,768], index: 5, kind: input, shape index: {}]   ;;  %s8701_s6 = inlined_call_operand.hbm [shape: f32[8,256], index: 6, kind: input, shape index: {}]   ;;  %s8702_s7 = inlined_call_operand.hbm [shape: bf16[768,512], index: 7, kind: input, shape index: {}]   ;;  %s8703_s8 = inlined_call_operand.hbm [shape: bf16[768,512], index: 8, kind: input, shape index: {}]   ;;  %s8704_s9 = inlined_call_operand.vmem [shape: f32[1,512], index: 9, kind: input, shape index: {}]   ;;  %s8705_s10 = inlined_call_operand.hbm [shape: bf16[256,512], index: 10, kind: input, shape index: {}]   ;;  %s8706_s11 = inlined_call_operand.hbm [shape: bf16[256,512], index: 11, kind: input, shape index: {}]   ;;  %s8707_s12 = inlined_call_operand.hbm [shape: bf16[512,128], index: 12, kind: input, shape index: {}]   ;;  %s8708_s13 = inlined_call_operand.hbm [shape: bf16[512,128], index: 13, kind: input, shape index: {}]   ;;  %s8709_s14 = inlined_call_operand.vmem [shape: f32[1,128], index: 14, kind: input, shape index: {}]   ;;  %s8710_s15 = inlined_call_operand.vmem [shape: f32[1,128], index: 15, kind: input, shape index: {}]   ;;  %s8711_s16 = inlined_call_operand.vmem [shape: f32[8,1], index: 16, kind: output, shape index: {}]  }
   0x1   :  { %8712 = sst [smem:[#allocation32_spill]] %s8695_s0 }
   0x2   :  { %21 = vsyncpa [#allocation5], 0 }
   0x3   :  { %22 = vsyncpa [#allocation4], 0 }
   0x4   :  { %23 = vsyncpa [#allocation8], 0 }
   0x5   :  { %24 = vsyncpa [#allocation11], 0 }
   0x6   :  { %25 = vsyncpa [#allocation14], 0 }
   0x7   :  { %26 = vsyncpa [#allocation17], 0 }
   0x8   :  { %27 = vsyncpa [#allocation20], 0  ;;  %s54_s23 = sshll.u32 %s8697_s2, 4  ;;  %s55_s23 = int_to_ptr.hbm [resolvable:$true] %s54_s23 }
   0x9   :  { %28 = vsyncpa [#allocation23], 0  ;;  %s8201_s24 = smov [#allocation7]   ;;  %s76_s28 = sshll.u32 %s8699_s4, 4  ;;  %s77_s28 = int_to_ptr.hbm [resolvable:$true] %s76_s28 }
   0xa   :  { %s56_s25 = sshll.u32 %s8201_s24, 4  ;;  %s8202_s29 = smov [#allocation10]   ;;  %s57_s25 = int_to_ptr.vmem [resolvable:$true] %s56_s25 }
   0xb   :  { %59 = dma.hbm_to_vmem [thread:$0]  %s55_s23, 768, %s57_s25, [#allocation8]  }
   0xc   :  { %s78_s30 = sshll.u32 %s8202_s29, 4  ;;  %s98_s18 = sshll.u32 %s8701_s6, 4  ;;  %s79_s30 = int_to_ptr.vmem [resolvable:$true] %s78_s30  ;;  %s99_s18 = int_to_ptr.hbm [resolvable:$true] %s98_s18 }
   0xd   :  { %81 = dma.hbm_to_vmem [thread:$0]  %s77_s28, 768, %s79_s30, [#allocation11]  }
   0xe   :  { %s8203_s2 = smov [#allocation13]   ;;  %s121_s22 = sshll.u32 %s8703_s8, 4  ;;  %s122_s22 = int_to_ptr.hbm [resolvable:$true] %s121_s22 }
   0xf   :  { %s100_s19 = sshll.u32 %s8203_s2, 4  ;;  %s8204_s4 = smov [#allocation16]   ;;  %s101_s19 = int_to_ptr.vmem [resolvable:$true] %s100_s19 }
  0x10   :  { %103 = dma.hbm_to_vmem [thread:$0]  %s99_s18, 256, %s101_s19, [#allocation14]  }
  0x11   :  { %s123_s23 = sshll.u32 %s8204_s4, 4  ;;  %s149_s26 = sshll.u32 %s8706_s11, 4  ;;  %s124_s23 = int_to_ptr.vmem [resolvable:$true] %s123_s23  ;;  %s150_s26 = int_to_ptr.hbm [resolvable:$true] %s149_s26 }
  0x12   :  { %s8205_s6 = smov 256   ;;  %s8206_s27 = smov 16  }
  0x13   :  { %129 = dma.hbm_to_vmem [thread:$0]  %s122_s22, 24576, %s124_s23, [#allocation17], %s8205_s6, %s8205_s6, %s8206_s27  }
  0x14   :  { %s8713_s30 = sld [smem:[#allocation32_spill]]  ;;  %s8207_s0 = smov [#allocation19]  }
  0x15   :  { %s151_s17 = sshll.u32 %s8207_s0, 4  ;;  %s8208_s11 = smov [#allocation3]   ;;  %s152_s17 = int_to_ptr.vmem [resolvable:$true] %s151_s17 }
  0x16   :  { %157 = dma.hbm_to_vmem [thread:$0]  %s150_s26, 8192, %s152_s17, [#allocation20], %s8205_s6, %s8205_s6, %s8206_s27  }
  0x17   :  { %s43_s19 = sshll.u32 %s8696_s1, 4  ;;  %s8209_s20 = smov [#allocation6]   ;;  %s44_s19 = int_to_ptr.hbm [resolvable:$true] %s43_s19 }
  0x18   :  { %s45_s21 = sshll.u32 %s8209_s20, 4  ;;  %s65_s23 = sshll.u32 %s8698_s3, 4  ;;  %s46_s21 = int_to_ptr.vmem [resolvable:$true] %s45_s21  ;;  %s66_s23 = int_to_ptr.hbm [resolvable:$true] %s65_s23 }
  0x19   :  { %48 = dma.hbm_to_vmem [thread:$0]  %s44_s19, 768, %s46_s21, [#allocation4]  }
  0x1a   :  { %s34_s8 = sshll.u32 %s8713_s30, 4  ;;  %s8210_s24 = smov [#allocation9]   ;;  %s35_s8 = int_to_ptr.hbm [resolvable:$true] %s34_s8 }
  0x1b   :  { %37 = dma.hbm_to_smem %s35_s8, 16, %s8208_s11, [#allocation5]  }
  0x1c   :  { %s67_s25 = sshll.u32 %s8210_s24, 4  ;;  %s87_s29 = sshll.u32 %s8700_s5, 4  ;;  %s68_s25 = int_to_ptr.vmem [resolvable:$true] %s67_s25  ;;  %s88_s29 = int_to_ptr.hbm [resolvable:$true] %s87_s29 }
  0x1d   :  { %70 = dma.hbm_to_vmem [thread:$0]  %s66_s23, 768, %s68_s25, [#allocation8]  }
  0x1e   :  { %s108_s8 = sshll.u32 %s8702_s7, 4  ;;  %s8211_s0 = smov [#allocation12]   ;;  %s109_s8 = int_to_ptr.hbm [resolvable:$true] %s108_s8 }
  0x1f   :  { %s89_s17 = sshll.u32 %s8211_s0, 4  ;;  %s8212_s3 = smov [#allocation15]   ;;  %s90_s17 = int_to_ptr.vmem [resolvable:$true] %s89_s17 }
  0x20   :  { %92 = dma.hbm_to_vmem [thread:$0]  %s88_s29, 768, %s90_s17, [#allocation11]  }
  0x21   :  { %s110_s11 = sshll.u32 %s8212_s3, 4  ;;  %s136_s19 = sshll.u32 %s8705_s10, 4  ;;  %s111_s11 = int_to_ptr.vmem [resolvable:$true] %s110_s11  ;;  %s137_s19 = int_to_ptr.hbm [resolvable:$true] %s136_s19 }
  0x22   :  { %116 = dma.hbm_to_vmem [thread:$0]  %s109_s8, 24576, %s111_s11, [#allocation14], %s8205_s6, %s8205_s6, %s8206_s27  }
  0x23   :  { %s162_s7 = sshll.u32 %s8707_s12, 4  ;;  %s8213_s21 = smov [#allocation18]   ;;  %s163_s7 = int_to_ptr.hbm [resolvable:$true] %s162_s7 }
  0x24   :  { %s138_s22 = sshll.u32 %s8213_s21, 4  ;;  %s8214_s4 = smov [#allocation21]   ;;  %s139_s22 = int_to_ptr.vmem [resolvable:$true] %s138_s22 }
  0x25   :  { %144 = dma.hbm_to_vmem [thread:$0]  %s137_s19, 8192, %s139_s22, [#allocation17], %s8205_s6, %s8205_s6, %s8206_s27  }
  0x26   :  { %s164_s10 = sshll.u32 %s8214_s4, 4  ;;  %s8215_s23 = smov 64   ;;  %s165_s10 = int_to_ptr.vmem [resolvable:$true] %s164_s10 }
  0x27   :  { %s8216_s24 = smov 4   ;;  %s175_s26 = sshll.u32 %s8708_s13, 4  ;;  %s176_s26 = int_to_ptr.hbm [resolvable:$true] %s175_s26 }
  0x28   :  { %170 = dma.hbm_to_vmem [thread:$0]  %s163_s7, 4096, %s165_s10, [#allocation20], %s8215_s23, %s8215_s23, %s8216_s24  }
  0x29   :  { %s8217_s12 = smov [#allocation22]  }
  0x2a   :  { %s177_s29 = sshll.u32 %s8217_s12, 4  ;;  %s178_s29 = int_to_ptr.vmem [resolvable:$true] %s177_s29 }
  0x2b   :  { %183 = dma.hbm_to_vmem [thread:$0]  %s176_s26, 4096, %s178_s29, [#allocation23], %s8215_s23, %s8215_s23, %s8216_s24  }
  0x2c   :  { %8185 = dma.done.wait [#allocation5], 16  }
  0x2d   :  { %8186 = vsyncadd [#allocation5], 4294967280 }
  0x2e   :  { %8187 = dma.done.wait [#allocation4], 768  }
  0x2f   :  { %8188 = vsyncadd [#allocation4], 4294966528 }
  0x30   :  { %8189 = dma.done.wait [#allocation8], 1536  }
  0x31   :  { %8190 = vsyncadd [#allocation8], 4294965760 }
  0x32   :  { %8191 = dma.done.wait [#allocation11], 1536  }
  0x33   :  { %8192 = vsyncadd [#allocation11], 4294965760 }
  0x34   :  { %8193 = dma.done.wait [#allocation14], 24832  }
  0x35   :  { %8194 = vsyncadd [#allocation14], 4294942464 }
  0x36   :  { %8195 = dma.done.wait [#allocation17], 32768  }
  0x37   :  { %8196 = vsyncadd [#allocation17], 4294934528 }
  0x38   :  { %8197 = dma.done.wait [#allocation20], 12288  }
  0x39   :  { %8198 = vsyncadd [#allocation20], 4294955008 }
  0x3a   :  { %8199 = dma.done.wait [#allocation23], 4096  }
  0x3b   :  { %8200 = vsyncadd [#allocation23], 4294963200 }
  0x3c   :  { %240 = sfence }
  0x3d   :  { %v5095_v0 = vld [vmem:[#allocation16 + $0xe0] sm:$0xf]  ;;  %v7508_v1 = vld [vmem:[#allocation16 + $0xec] sm:$0xf0]  ;;  %s8378_s13 = sld [smem:[#allocation3 + $0x1]]  ;;  %vm4962_vm4 = vcmask 7168  }
  0x3e   :  { %v5223_v2 = vld [vmem:[#allocation16 + $0x1e0] sm:$0xf]  ;;  %v5096_v3 = vor.u32 %v7508_v1, %v5095_v0  ;;  %v7540_v4 = vld [vmem:[#allocation16 + $0x1ec] sm:$0xf0]  ;;  %s8384_s6 = sld [smem:[#allocation3 + $0x2]] }
  0x3f   :  { %v5351_v5 = vld [vmem:[#allocation16 + $0x2e0] sm:$0xf]  ;;  %v7572_v6 = vld [vmem:[#allocation16 + $0x2ec] sm:$0xf0]  ;;  %v5224_v7 = vor.u32 %v7540_v4, %v5223_v2  ;;  %s8390_s27 = sld [smem:[#allocation3 + $0x3]] }
  0x40   :  { %v5352_v8 = vor.u32 %v7572_v6, %v5351_v5  ;;  %v5479_v9 = vld [vmem:[#allocation16 + $0x3e0] sm:$0xf]  ;;  %v7604_v10 = vld [vmem:[#allocation16 + $0x3ec] sm:$0xf0]  ;;  %1698 = vmatpush.bf16.msra.mxu0 %v5096_v3  ;;  %s8396_s1 = sld [smem:[#allocation3 + $0x4]] }
  0x41   :  { %v5079_v11 = vld [vmem:[#allocation16 + $0xc0] sm:$0xf]  ;;  %v5480_v12 = vor.u32 %v7604_v10, %v5479_v9  ;;  %v7504_v13 = vld [vmem:[#allocation16 + $0xcc] sm:$0xf0]  ;;  %1711 = vmatpush.bf16.msra.mxu1 %v5224_v7  ;;  %s8509_s30 = sld [smem:[#allocation3]] }
  0x42   :  { %v5207_v14 = vld [vmem:[#allocation16 + $0x1c0] sm:$0xf]  ;;  %v7536_v15 = vld [vmem:[#allocation16 + $0x1cc] sm:$0xf0]  ;;  %1724 = vmatpush.bf16.msra.mxu2 %v5352_v8  ;;  %v5080_v16 = vor.u32 %v7504_v13, %v5079_v11  ;;  %s4980_s18 = sld [smem:[#allocation3 + $0x5]] }
  0x43   :  { %v5208_v17 = vor.u32 %v7536_v15, %v5207_v14  ;;  %v5335_v18 = vld [vmem:[#allocation16 + $0x2c0] sm:$0xf]  ;;  %v7568_v19 = vld [vmem:[#allocation16 + $0x2cc] sm:$0xf0]  ;;  %1737 = vmatpush.bf16.msra.mxu3 %v5480_v12 }
  0x44   :  { %v5463_v20 = vld [vmem:[#allocation16 + $0x3c0] sm:$0xf]  ;;  %v5336_v21 = vor.u32 %v7568_v19, %v5335_v18  ;;  %v7600_v22 = vld [vmem:[#allocation16 + $0x3cc] sm:$0xf0]  ;;  %1699 = vmatpush.bf16.msra.mxu0 %v5080_v16 }
  0x45   :  { %v5063_v23 = vld [vmem:[#allocation16 + $0xa0] sm:$0xf]  ;;  %v7500_v24 = vld [vmem:[#allocation16 + $0xac] sm:$0xf0]  ;;  %v5464_v25 = vor.u32 %v7600_v22, %v5463_v20  ;;  %1712 = vmatpush.bf16.msra.mxu1 %v5208_v17 }
  0x46   :  { %v5191_v26 = vld [vmem:[#allocation16 + $0x1a0] sm:$0xf]  ;;  %v7532_v27 = vld [vmem:[#allocation16 + $0x1ac] sm:$0xf0]  ;;  %v5064_v29 = vor.u32 %v7500_v24, %v5063_v23  ;;  %1725 = vmatpush.bf16.msra.mxu2 %v5336_v21 }
  0x47   :  { %v5319_v28 = vld [vmem:[#allocation16 + $0x2a0] sm:$0xf]  ;;  %v7564_v30 = vld [vmem:[#allocation16 + $0x2ac] sm:$0xf0]  ;;  %v5192_v33 = vor.u32 %v7532_v27, %v5191_v26  ;;  %1738 = vmatpush.bf16.msra.mxu3 %v5464_v25 }
  0x48   :  { %v5447_v31 = vld [vmem:[#allocation16 + $0x3a0] sm:$0xf]  ;;  %v7596_v32 = vld [vmem:[#allocation16 + $0x3ac] sm:$0xf0]  ;;  %v5320_v34 = vor.u32 %v7564_v30, %v5319_v28  ;;  %1700 = vmatpush.bf16.msra.mxu0 %v5064_v29 }
  0x49   :  { %v5047_v35 = vld [vmem:[#allocation16 + $0x80] sm:$0xf]  ;;  %v7496_v36 = vld [vmem:[#allocation16 + $0x8c] sm:$0xf0]  ;;  %v5448_v38 = vor.u32 %v7596_v32, %v5447_v31  ;;  %1713 = vmatpush.bf16.msra.mxu1 %v5192_v33  ;;  %v7506_v33 = vld [vmem:[#allocation16 + $0xe4] sm:$0xf] }
  0x4a   :  { %v5175_v37 = vld [vmem:[#allocation16 + $0x180] sm:$0xf]  ;;  %v7528_v39 = vld [vmem:[#allocation16 + $0x18c] sm:$0xf0]  ;;  %v5048_v44 = vor.u32 %v7496_v36, %v5047_v35  ;;  %1726 = vmatpush.bf16.msra.mxu2 %v5320_v34  ;;  %v5097_v34 = vld [vmem:[#allocation16 + $0xf0] sm:$0xf0] }
  0x4b   :  { %v5303_v40 = vld [vmem:[#allocation16 + $0x280] sm:$0xf]  ;;  %v7560_v41 = vld [vmem:[#allocation16 + $0x28c] sm:$0xf0]  ;;  %v5176_v45 = vor.u32 %v7528_v39, %v5175_v37  ;;  %1739 = vmatpush.bf16.msra.mxu3 %v5448_v38  ;;  %v7538_v37 = vld [vmem:[#allocation16 + $0x1e4] sm:$0xf] }
  0x4c   :  { %v5431_v42 = vld [vmem:[#allocation16 + $0x380] sm:$0xf]  ;;  %v7592_v43 = vld [vmem:[#allocation16 + $0x38c] sm:$0xf0]  ;;  %v5304_v46 = vor.u32 %v7560_v41, %v5303_v40  ;;  %1701 = vmatpush.bf16.msra.mxu0 %v5048_v44  ;;  %v5225_v38 = vld [vmem:[#allocation16 + $0x1f0] sm:$0xf0] }
  0x4d   :  { %v5031_v47 = vld [vmem:[#allocation16 + $0x60] sm:$0xf]  ;;  %v7492_v48 = vld [vmem:[#allocation16 + $0x6c] sm:$0xf0]  ;;  %v5432_v50 = vor.u32 %v7592_v43, %v5431_v42  ;;  %1714 = vmatpush.bf16.msra.mxu1 %v5176_v45  ;;  %v5100_v42 = vor.u32 %v7506_v33, %v5097_v34 }
  0x4e   :  { %v5159_v49 = vld [vmem:[#allocation16 + $0x160] sm:$0xf]  ;;  %v7524_v51 = vld [vmem:[#allocation16 + $0x16c] sm:$0xf0]  ;;  %v5032_v56 = vor.u32 %v7492_v48, %v5031_v47  ;;  %1727 = vmatpush.bf16.msra.mxu2 %v5304_v46  ;;  %v5228_v46 = vor.u32 %v7538_v37, %v5225_v38  ;;  %v7502_v48 = vld [vmem:[#allocation16 + $0xc4] sm:$0xf] }
  0x4f   :  { %v5287_v52 = vld [vmem:[#allocation16 + $0x260] sm:$0xf]  ;;  %v7556_v53 = vld [vmem:[#allocation16 + $0x26c] sm:$0xf0]  ;;  %v5160_v57 = vor.u32 %v7524_v51, %v5159_v49  ;;  %1740 = vmatpush.bf16.msra.mxu3 %v5432_v50  ;;  %v5081_v49 = vld [vmem:[#allocation16 + $0xd0] sm:$0xf0] }
  0x50   :  { %v5415_v54 = vld [vmem:[#allocation16 + $0x360] sm:$0xf]  ;;  %v7588_v55 = vld [vmem:[#allocation16 + $0x36c] sm:$0xf0]  ;;  %v5288_v58 = vor.u32 %v7556_v53, %v5287_v52  ;;  %1702 = vmatpush.bf16.msra.mxu0 %v5032_v56  ;;  %v7534_v50 = vld [vmem:[#allocation16 + $0x1c4] sm:$0xf]  ;;  %v5084_v56 = vor.u32 %v7502_v48, %v5081_v49 }
  0x51   :  { %v5015_v59 = vld [vmem:[#allocation16 + $0x40] sm:$0xf]  ;;  %v7488_v60 = vld [vmem:[#allocation16 + $0x4c] sm:$0xf0]  ;;  %v5416_v62 = vor.u32 %v7588_v55, %v5415_v54  ;;  %1715 = vmatpush.bf16.msra.mxu1 %v5160_v57  ;;  %v5209_v51 = vld [vmem:[#allocation16 + $0x1d0] sm:$0xf0] }
  0x52   :  { %v5143_v61 = vld [vmem:[#allocation16 + $0x140] sm:$0xf]  ;;  %v7520_v63 = vld [vmem:[#allocation16 + $0x14c] sm:$0xf0]  ;;  %v5016_v4 = vor.u32 %v7488_v60, %v5015_v59  ;;  %1728 = vmatpush.bf16.msra.mxu2 %v5288_v58  ;;  %v7498_v59 = vld [vmem:[#allocation16 + $0xa4] sm:$0xf]  ;;  %v5212_v60 = vor.u32 %v7534_v50, %v5209_v51  ;;  %v8427_v51 = vstv %s8390_s27 }
  0x53   :  { %v5271_v0 = vld [vmem:[#allocation16 + $0x240] sm:$0xf]  ;;  %v7552_v1 = vld [vmem:[#allocation16 + $0x24c] sm:$0xf0]  ;;  %v5144_v5 = vor.u32 %v7520_v63, %v5143_v61  ;;  %1741 = vmatpush.bf16.msra.mxu3 %v5416_v62  ;;  %v5065_v61 = vld [vmem:[#allocation16 + $0xb0] sm:$0xf0] }
  0x54   :  { %v5399_v2 = vld [vmem:[#allocation16 + $0x340] sm:$0xf]  ;;  %v7584_v3 = vld [vmem:[#allocation16 + $0x34c] sm:$0xf0]  ;;  %v5272_v6 = vor.u32 %v7552_v1, %v5271_v0  ;;  %1703 = vmatpush.bf16.msra.mxu0 %v5016_v4  ;;  %v7530_v62 = vld [vmem:[#allocation16 + $0x1a4] sm:$0xf] }
  0x55   :  { %v4999_v7 = vld [vmem:[#allocation16 + $0x20] sm:$0xf]  ;;  %v7484_v8 = vld [vmem:[#allocation16 + $0x2c] sm:$0xf0]  ;;  %v5400_v10 = vor.u32 %v7584_v3, %v5399_v2  ;;  %1716 = vmatpush.bf16.msra.mxu1 %v5144_v5  ;;  %v5193_v63 = vld [vmem:[#allocation16 + $0x1b0] sm:$0xf0] }
  0x56   :  { %v5127_v9 = vld [vmem:[#allocation16 + $0x120] sm:$0xf]  ;;  %v7516_v11 = vld [vmem:[#allocation16 + $0x12c] sm:$0xf0]  ;;  %v5000_v16 = vor.u32 %v7484_v8, %v4999_v7  ;;  %1729 = vmatpush.bf16.msra.mxu2 %v5272_v6  ;;  %v8358_v4 = vld [vmem:[#allocation16 + $0x84] sm:$0xf] }
  0x57   :  { %v5255_v12 = vld [vmem:[#allocation16 + $0x220] sm:$0xf]  ;;  %v7548_v13 = vld [vmem:[#allocation16 + $0x22c] sm:$0xf0]  ;;  %v5128_v19 = vor.u32 %v7516_v11, %v5127_v9  ;;  %1742 = vmatpush.bf16.msra.mxu3 %v5400_v10  ;;  %v8360_v5 = vld [vmem:[#allocation16 + $0x90] sm:$0xf0] }
  0x58   :  { %v5383_v14 = vld [vmem:[#allocation16 + $0x320] sm:$0xf]  ;;  %v7580_v15 = vld [vmem:[#allocation16 + $0x32c] sm:$0xf0]  ;;  %v5256_v20 = vor.u32 %v7548_v13, %v5255_v12  ;;  %1704 = vmatpush.bf16.msra.mxu0 %v5000_v16  ;;  %v8362_v6 = vld [vmem:[#allocation16 + $0x184] sm:$0xf]  ;;  %v5068_v16 = vor.u32 %v7498_v59, %v5065_v61 }
  0x59   :  { %v4983_v17 = vld [vmem:[#allocation16] sm:$0xf]  ;;  %v7480_v18 = vld [vmem:[#allocation16 + $0xc] sm:$0xf0]  ;;  %v5384_v24 = vor.u32 %v7580_v15, %v5383_v14  ;;  %1717 = vmatpush.bf16.msra.mxu1 %v5128_v19  ;;  %v8364_v7 = vld [vmem:[#allocation16 + $0x190] sm:$0xf0]  ;;  %v5196_v19 = vor.u32 %v7530_v62, %v5193_v63 }
  0x5a   :  { %v5111_v21 = vld [vmem:[#allocation16 + $0x100] sm:$0xf]  ;;  %v7512_v22 = vld [vmem:[#allocation16 + $0x10c] sm:$0xf0]  ;;  %v4984_v31 = vor.u32 %v7480_v18, %v4983_v17  ;;  %1730 = vmatpush.bf16.msra.mxu2 %v5256_v20  ;;  %v8374_v13 = vld [vmem:[#allocation16 + $0x64] sm:$0xf] }
  0x5b   :  { %v5239_v23 = vld [vmem:[#allocation16 + $0x200] sm:$0xf]  ;;  %v7544_v25 = vld [vmem:[#allocation16 + $0x20c] sm:$0xf0]  ;;  %v5112_v35 = vor.u32 %v7512_v22, %v5111_v21  ;;  %1743 = vmatpush.bf16.msra.mxu3 %v5384_v24  ;;  %v8376_v14 = vld [vmem:[#allocation16 + $0x70] sm:$0xf0] }
  0x5c   :  { %v5367_v26 = vld [vmem:[#allocation16 + $0x300] sm:$0xf]  ;;  %v7576_v27 = vld [vmem:[#allocation16 + $0x30c] sm:$0xf0]  ;;  %v5240_v36 = vor.u32 %v7544_v25, %v5239_v23  ;;  %1705 = vmatpush.bf16.msra.mxu0 %v4984_v31  ;;  %v8380_v17 = vld [vmem:[#allocation16 + $0x164] sm:$0xf]  ;;  %v5036_v33 = vor.u32 %v8374_v13, %v8376_v14 }
  0x5d   :  { %v5607_v28 = vld [vmem:[#allocation16 + $0x4e0] sm:$0xf]  ;;  %v7636_v29 = vld [vmem:[#allocation16 + $0x4ec] sm:$0xf0]  ;;  %v5368_v39 = vor.u32 %v7576_v27, %v5367_v26  ;;  %1718 = vmatpush.bf16.msra.mxu1 %v5112_v35  ;;  %v8382_v18 = vld [vmem:[#allocation16 + $0x170] sm:$0xf0]  ;;  %v5052_v26 = vor.u32 %v8358_v4, %v8360_v5  ;;  %v5180_v27 = vor.u32 %v8362_v6, %v8364_v7 }
  0x5e   :  { %v5735_v30 = vld [vmem:[#allocation16 + $0x5e0] sm:$0xf]  ;;  %v7668_v32 = vld [vmem:[#allocation16 + $0x5ec] sm:$0xf0]  ;;  %v5608_v40 = vor.u32 %v7636_v29, %v5607_v28  ;;  %1731 = vmatpush.bf16.msra.mxu2 %v5240_v36  ;;  %v290_v36 = vld [vmem:[#allocation9 + $0x18] sm:$0xff]  ;;  %v5164_v37 = vor.u32 %v8380_v17, %v8382_v18 }
  0x5f   :  { %v5736_v41 = vor.u32 %v7668_v32, %v5735_v30  ;;  %v5591_v43 = vld [vmem:[#allocation16 + $0x4c0] sm:$0xf]  ;;  %v7632_v44 = vld [vmem:[#allocation16 + $0x4cc] sm:$0xf0]  ;;  %1744 = vmatpush.bf16.msra.mxu3 %v5368_v39  ;;  %v277_v30 = vld [vmem:[#allocation7 + $0x18] sm:$0xff] }
  0x60   :  { %v5719_v45 = vld [vmem:[#allocation16 + $0x5c0] sm:$0xf]  ;;  %v7664_v47 = vld [vmem:[#allocation16 + $0x5cc] sm:$0xf0]  ;;  %1750 = vmatpush.bf16.msrb.mxu0 %v5608_v40  ;;  %v5592_v52 = vor.u32 %v7632_v44, %v5591_v43  ;;  %v8417_v40 = vstv %s8378_s13  ;;  %v309_v43 = vld [vmem:[#allocation10 + $0x18] sm:$0xff] }
  0x61   :  { %v5575_v53 = vld [vmem:[#allocation16 + $0x4a0] sm:$0xf]  ;;  %v7628_v54 = vld [vmem:[#allocation16 + $0x4ac] sm:$0xf0]  ;;  %1763 = vmatpush.bf16.msrb.mxu1 %v5736_v41  ;;  %v5720_v55 = vor.u32 %v7664_v47, %v5719_v45  ;;  %v8421_v45 = vstv %s8384_s6  ;;  %v284_v49 = vmul.f32 %v8417_v40, %v277_v30  ;;  %v316_v62 = vmul.f32 %v8427_v51, %v309_v43  ;;  %v307_v63 = vld [vmem:[#allocation10 + $0x8] sm:$0xff] }
  0x62   :  { %1776 = vmatpush.bf16.msrb.mxu2 %v5100_v42  ;;  %v5703_v57 = vld [vmem:[#allocation16 + $0x5a0] sm:$0xf]  ;;  %v7660_v58 = vld [vmem:[#allocation16 + $0x5ac] sm:$0xf0]  ;;  %v5576_v8 = vor.u32 %v7628_v54, %v5575_v53  ;;  %v297_v53 = vmul.f32 %v8421_v45, %v290_v36  ;;  %v328_v54 = vld [vmem:[#allocation12 + $0x18] sm:$0xff]  ;;  %v314_v14 = vmul.f32 %v8427_v51, %v307_v63 }
  0x63   :  { %1789 = vmatpush.bf16.msrb.mxu3 %v5228_v46  ;;  %v5559_v0 = vld [vmem:[#allocation16 + $0x480] sm:$0xf]  ;;  %v7624_v1 = vld [vmem:[#allocation16 + $0x48c] sm:$0xf0]  ;;  %v5704_v15 = vor.u32 %v7660_v58, %v5703_v57  ;;  %v7486_v57 = vld [vmem:[#allocation16 + $0x44] sm:$0xf] }
  0x64   :  { %v8354_v2 = vld [vmem:[#allocation16 + $0x580] sm:$0xf]  ;;  %v8356_v3 = vld [vmem:[#allocation16 + $0x58c] sm:$0xf0]  ;;  %1751 = vmatpush.bf16.msrb.mxu0 %v5592_v52  ;;  %v5560_v24 = vor.u32 %v7624_v1, %v5559_v0  ;;  %v5017_v58 = vld [vmem:[#allocation16 + $0x50] sm:$0xf0]  ;;  %v303_v7 = vadd.f32 %v297_v53, %v284_v49 }
  0x65   :  { %v8366_v9 = vld [vmem:[#allocation16 + $0x460] sm:$0xf]  ;;  %v8368_v10 = vld [vmem:[#allocation16 + $0x46c] sm:$0xf0]  ;;  %1764 = vmatpush.bf16.msrb.mxu1 %v5720_v55  ;;  %v5688_v25 = vor.u32 %v8356_v3, %v8354_v2  ;;  %v275_v55 = vld [vmem:[#allocation7 + $0x8] sm:$0xff] }
  0x66   :  { %v8370_v11 = vld [vmem:[#allocation16 + $0x560] sm:$0xf]  ;;  %v8372_v12 = vld [vmem:[#allocation16 + $0x56c] sm:$0xf0]  ;;  %1777 = vmatpush.bf16.msrb.mxu2 %v5084_v56  ;;  %v5544_v31 = vor.u32 %v8368_v10, %v8366_v9  ;;  %v288_v56 = vld [vmem:[#allocation9 + $0x8] sm:$0xff]  ;;  %v282_v9 = vmul.f32 %v8417_v40, %v275_v55  ;;  %v322_v17 = vadd.f32 %v316_v62, %v303_v7 }
  0x67   :  { %1790 = vmatpush.bf16.msrb.mxu3 %v5212_v60  ;;  %v8386_v20 = vld [vmem:[#allocation16 + $0x440] sm:$0xf]  ;;  %v8388_v21 = vld [vmem:[#allocation16 + $0x44c] sm:$0xf0]  ;;  %v5672_v32 = vor.u32 %v8372_v12, %v8370_v11  ;;  %v8433_v60 = vstv %s8396_s1  ;;  %v326_v4 = vld [vmem:[#allocation12 + $0x8] sm:$0xff]  ;;  %v295_v10 = vmul.f32 %v8421_v45, %v288_v56  ;;  %v5020_v11 = vor.u32 %v7486_v57, %v5017_v58 }
  0x68   :  { %v8392_v22 = vld [vmem:[#allocation16 + $0x540] sm:$0xf]  ;;  %v8394_v23 = vld [vmem:[#allocation16 + $0x54c] sm:$0xf0]  ;;  %1752 = vmatpush.bf16.msrb.mxu0 %v5576_v8  ;;  %v5528_v38 = vor.u32 %v8388_v21, %v8386_v20  ;;  %v7518_v5 = vld [vmem:[#allocation16 + $0x144] sm:$0xf]  ;;  %v335_v8 = vmul.f32 %v8433_v60, %v328_v54 }
  0x69   :  { %v274_v28 = vld [vmem:[#allocation7] sm:$0xff]  ;;  %v276_v29 = vld [vmem:[#allocation7 + $0x10] sm:$0xff]  ;;  %1765 = vmatpush.bf16.msrb.mxu1 %v5704_v15  ;;  %v5656_v39 = vor.u32 %v8394_v23, %v8392_v22  ;;  %v301_v18 = vadd.f32 %v295_v10, %v282_v9 }
  0x6a   :  { %1778 = vmatpush.bf16.msrb.mxu2 %v5068_v16  ;;  %v287_v34 = vld [vmem:[#allocation9] sm:$0xff]  ;;  %v289_v35 = vld [vmem:[#allocation9 + $0x10] sm:$0xff]  ;;  %v281_v44 = vmul.f32 %v8417_v40, %v274_v28  ;;  %v283_v47 = vmul.f32 %v8417_v40, %v276_v29 }
  0x6b   :  { %1791 = vmatpush.bf16.msrb.mxu3 %v5196_v19  ;;  %v306_v41 = vld [vmem:[#allocation10] sm:$0xff]  ;;  %v308_v42 = vld [vmem:[#allocation10 + $0x10] sm:$0xff]  ;;  %v294_v50 = vmul.f32 %v8421_v45, %v287_v34  ;;  %v296_v52 = vmul.f32 %v8421_v45, %v289_v35  ;;  %v333_v19 = vmul.f32 %v8433_v60, %v326_v4  ;;  %v341_v35 = vadd.f32 %v335_v8, %v322_v17  ;;  %v279_v4 = vld [vmem:[#allocation7 + $0x28] sm:$0xff] }
  0x6c   :  { %v325_v46 = vld [vmem:[#allocation12] sm:$0xff]  ;;  %v327_v48 = vld [vmem:[#allocation12 + $0x10] sm:$0xff]  ;;  %1753 = vmatpush.bf16.msrb.mxu0 %v5560_v24  ;;  %v313_v59 = vmul.f32 %v8427_v51, %v306_v41  ;;  %v315_v61 = vmul.f32 %v8427_v51, %v308_v42  ;;  %v320_v36 = vadd.f32 %v314_v14, %v301_v18 }
  0x6d   :  { %1766 = vmatpush.bf16.msrb.mxu1 %v5688_v25  ;;  %v300_v0 = vadd.f32 %v294_v50, %v281_v44  ;;  %v332_v1 = vmul.f32 %v8433_v60, %v325_v46  ;;  %v302_v2 = vadd.f32 %v296_v52, %v283_v47  ;;  %v334_v3 = vmul.f32 %v8433_v60, %v327_v48  ;;  %v5145_v6 = vld [vmem:[#allocation16 + $0x150] sm:$0xf0]  ;;  %v5511_v15 = vld [vmem:[#allocation16 + $0x420] sm:$0xf]  ;;  %v7612_v16 = vld [vmem:[#allocation16 + $0x42c] sm:$0xf0] }
  0x6e   :  { %1779 = vmatpush.bf16.msrb.mxu2 %v5052_v26  ;;  %v8444_v24 = vld [vmem:[#allocation16 + $0x520] sm:$0xf]  ;;  %v7644_v25 = vld [vmem:[#allocation16 + $0x52c] sm:$0xf0]  ;;  %v7482_v26 = vld [vmem:[#allocation16 + $0x24] sm:$0xf]  ;;  %v5512_v46 = vor.u32 %v7612_v16, %v5511_v15  ;;  %v8464_v50 = vpack.c.bf16 %v341_v35, %v341_v35  ;;  %v339_v52 = vadd.f32 %v333_v19, %v320_v36 }
  0x6f   :  { %1792 = vmatpush.bf16.msrb.mxu3 %v5180_v27  ;;  %v319_v12 = vadd.f32 %v313_v59, %v300_v0  ;;  %v321_v13 = vadd.f32 %v315_v61, %v302_v2  ;;  %v5148_v27 = vor.u32 %v7518_v5, %v5145_v6  ;;  %v5001_v30 = vld [vmem:[#allocation16 + $0x30] sm:$0xf0]  ;;  %v8446_v41 = vld [vmem:[#allocation16 + $0x400] sm:$0xf]  ;;  %v8450_v42 = vld [vmem:[#allocation16 + $0x50c] sm:$0xf0]  ;;  %v5640_v56 = vor.u32 %v7644_v25, %v8444_v24 }
  0x70   :  { %1754 = vmatpush.bf16.msrb.mxu0 %v5544_v31  ;;  %v7514_v31 = vld [vmem:[#allocation16 + $0x124] sm:$0xf]  ;;  %v5129_v34 = vld [vmem:[#allocation16 + $0x130] sm:$0xf0]  ;;  %v5004_v53 = vor.u32 %v7482_v26, %v5001_v30  ;;  %1745 = vmatmul.bf16.vlgmr.msra.gmra.mxu3 %v8464_v50  ;;  %v8470_v23 = vpack.c.bf16 %v339_v52, %v339_v52  ;;  %v292_v5 = vld [vmem:[#allocation9 + $0x28] sm:$0xff]  ;;  %v286_v24 = vmul.f32 %v8417_v40, %v279_v4 }
  0x71   :  { %1767 = vmatpush.bf16.msrb.mxu1 %v5672_v32  ;;  %v338_v28 = vadd.f32 %v332_v1, %v319_v12  ;;  %v340_v29 = vadd.f32 %v334_v3, %v321_v13  ;;  %v7608_v32 = vld [vmem:[#allocation16 + $0x40c] sm:$0xf0]  ;;  %v8452_v43 = vld [vmem:[#allocation16 + $0x4] sm:$0xf]  ;;  %v4985_v47 = vld [vmem:[#allocation16 + $0x10] sm:$0xf0]  ;;  %v5132_v57 = vor.u32 %v7514_v31, %v5129_v34  ;;  %v299_v25 = vmul.f32 %v8421_v45, %v292_v5 }
  0x72   :  { %1780 = vmatpush.bf16.msrb.mxu2 %v5036_v33  ;;  %v8448_v33 = vld [vmem:[#allocation16 + $0x500] sm:$0xf]  ;;  %v7570_v48 = vld [vmem:[#allocation16 + $0x2e4] sm:$0xf]  ;;  %v5353_v49 = vld [vmem:[#allocation16 + $0x2f0] sm:$0xf0]  ;;  %v5496_v63 = vor.u32 %v7608_v32, %v8446_v41  ;;  %v4988_v1 = vor.u32 %v8452_v43, %v4985_v47  ;;  %1719 = vmatmul.bf16.vlgmr.msra.gmra.mxu1 %v8470_v23 }
  0x73   :  { %1793 = vmatpush.bf16.msrb.mxu3 %v5164_v37  ;;  %v8457_v37 = vpack.c.bf16 %v338_v28, %v338_v28  ;;  %v8459_v44 = vpack.c.bf16 %v340_v29, %v340_v29  ;;  %v7510_v54 = vld [vmem:[#allocation16 + $0x104] sm:$0xf]  ;;  %v5113_v20 = vld [vmem:[#allocation16 + $0x110] sm:$0xf0]  ;;  %v5624_v0 = vor.u32 %v8450_v42, %v8448_v33  ;;  %v5356_v6 = vor.u32 %v7570_v48, %v5353_v49  ;;  %v330_v15 = vld [vmem:[#allocation12 + $0x28] sm:$0xff] }
  0x74   :  { %1755 = vmatpush.bf16.msrb.mxu0 %v5528_v38  ;;  %v7602_v21 = vld [vmem:[#allocation16 + $0x3e4] sm:$0xf]  ;;  %v5481_v38 = vld [vmem:[#allocation16 + $0x3f0] sm:$0xf0]  ;;  %v5116_v12 = vor.u32 %v7510_v54, %v5113_v20  ;;  %v305_v36 = vadd.f32 %v299_v25, %v286_v24  ;;  %v337_v41 = vmul.f32 %v8433_v60, %v330_v15 }
  0x75   :  { %1768 = vmatpush.bf16.msrb.mxu1 %v5656_v39  ;;  %v278_v55 = vld [vmem:[#allocation7 + $0x20] sm:$0xff]  ;;  %1706 = vmatmul.bf16.vlgmr.msra.gmra.mxu0 %v8457_v37  ;;  %v7634_v58 = vld [vmem:[#allocation16 + $0x4e4] sm:$0xf]  ;;  %v5484_v13 = vor.u32 %v7602_v21, %v5481_v38 }
  0x76   :  { %1781 = vmatpush.bf16.msrb.mxu2 %v5020_v11  ;;  %v291_v59 = vld [vmem:[#allocation9 + $0x20] sm:$0xff]  ;;  %v310_v22 = vld [vmem:[#allocation10 + $0x20] sm:$0xff]  ;;  %v285_v2 = vmul.f32 %v8417_v40, %v278_v55  ;;  %v311_v11 = vld [vmem:[#allocation10 + $0x28] sm:$0xff] }
  0x77   :  { %1794 = vmatpush.bf16.msrb.mxu3 %v5148_v27  ;;  %1732 = vmatmul.bf16.vlgmr.msra.gmra.mxu2 %v8459_v44  ;;  %v5609_v39 = vld [vmem:[#allocation16 + $0x4f0] sm:$0xf0]  ;;  %v7666_v61 = vld [vmem:[#allocation16 + $0x5e4] sm:$0xf]  ;;  %v298_v9 = vmul.f32 %v8421_v45, %v291_v59  ;;  %v317_v10 = vmul.f32 %v8427_v51, %v310_v22  ;;  %v318_v30 = vmul.f32 %v8427_v51, %v311_v11 }
  0x78   :  { %v5737_v62 = vld [vmem:[#allocation16 + $0x5f0] sm:$0xf0]  ;;  %1756 = vmatpush.bf16.msrb.mxu0 %v5512_v46  ;;  %v329_v3 = vld [vmem:[#allocation12 + $0x20] sm:$0xff]  ;;  %v5612_v14 = vor.u32 %v7634_v58, %v5609_v39 }
  0x79   :  { %v7566_v7 = vld [vmem:[#allocation16 + $0x2c4] sm:$0xf]  ;;  %v5337_v8 = vld [vmem:[#allocation16 + $0x2d0] sm:$0xf0]  ;;  %1769 = vmatpush.bf16.msrb.mxu1 %v5640_v56  ;;  %v304_v18 = vadd.f32 %v298_v9, %v285_v2  ;;  %v336_v19 = vmul.f32 %v8433_v60, %v329_v3  ;;  %v5740_v26 = vor.u32 %v7666_v61, %v5737_v62  ;;  %v324_v46 = vadd.f32 %v318_v30, %v305_v36 }
  0x7a   :  { %1782 = vmatpush.bf16.msrb.mxu2 %v5004_v53  ;;  %v7598_v16 = vld [vmem:[#allocation16 + $0x3c4] sm:$0xf]  ;;  %v5465_v17 = vld [vmem:[#allocation16 + $0x3d0] sm:$0xf0]  ;;  %v5340_v27 = vor.u32 %v7566_v7, %v5337_v8 }
  0x7b   :  { %1795 = vmatpush.bf16.msrb.mxu3 %v5132_v57  ;;  %v7630_v28 = vld [vmem:[#allocation16 + $0x4c4] sm:$0xf]  ;;  %v5593_v29 = vld [vmem:[#allocation16 + $0x4d0] sm:$0xf0]  ;;  %v323_v35 = vadd.f32 %v317_v10, %v304_v18  ;;  %v5468_v40 = vor.u32 %v7598_v16, %v5465_v17  ;;  %v343_v54 = vadd.f32 %v337_v41, %v324_v46 }
  0x7c   :  { %1757 = vmatpush.bf16.msrb.mxu0 %v5496_v63  ;;  %v7662_v31 = vld [vmem:[#allocation16 + $0x5c4] sm:$0xf]  ;;  %v5721_v34 = vld [vmem:[#allocation16 + $0x5d0] sm:$0xf0]  ;;  %v5596_v33 = vor.u32 %v7630_v28, %v5593_v29 }
  0x7d   :  { %1770 = vmatpush.bf16.msrb.mxu1 %v5624_v0  ;;  %v7562_v32 = vld [vmem:[#allocation16 + $0x2a4] sm:$0xf]  ;;  %v5321_v45 = vld [vmem:[#allocation16 + $0x2b0] sm:$0xf0]  ;;  %v342_v42 = vadd.f32 %v336_v19, %v323_v35  ;;  %v5724_v51 = vor.u32 %v7662_v31, %v5721_v34  ;;  %v8487_v61 = vpack.c.bf16 %v343_v54, %v343_v54 }
  0x7e   :  { %1783 = vmatpush.bf16.msrb.mxu2 %v4988_v1  ;;  %v7594_v43 = vld [vmem:[#allocation16 + $0x3a4] sm:$0xf]  ;;  %v5449_v47 = vld [vmem:[#allocation16 + $0x3b0] sm:$0xf0]  ;;  %v5324_v52 = vor.u32 %v7562_v32, %v5321_v45 }
  0x7f   :  { %1796 = vmatpush.bf16.msrb.mxu3 %v5116_v12  ;;  %v7626_v48 = vld [vmem:[#allocation16 + $0x4a4] sm:$0xf]  ;;  %v5577_v49 = vld [vmem:[#allocation16 + $0x4b0] sm:$0xf0]  ;;  %v8485_v20 = vpack.c.bf16 %v342_v42, %v342_v42  ;;  %v5452_v55 = vor.u32 %v7594_v43, %v5449_v47 }
  0x80   :  { %1802 = vmatpush.bf16.msra.mxu0 %v5356_v6  ;;  %v7658_v53 = vld [vmem:[#allocation16 + $0x5a4] sm:$0xf]  ;;  %v5705_v60 = vld [vmem:[#allocation16 + $0x5b0] sm:$0xf0]  ;;  %v5580_v56 = vor.u32 %v7626_v48, %v5577_v49 }
  0x81   :  { %1815 = vmatpush.bf16.msra.mxu1 %v5484_v13  ;;  %v7558_v21 = vld [vmem:[#allocation16 + $0x284] sm:$0xf]  ;;  %v5305_v38 = vld [vmem:[#allocation16 + $0x290] sm:$0xf0]  ;;  %v5708_v58 = vor.u32 %v7658_v53, %v5705_v60  ;;  %v5103_v53 = vld [vmem:[#allocation16 + $0xe8] sm:$0xf] }
  0x82   :  { %1828 = vmatpush.bf16.msra.mxu2 %v5612_v14  ;;  %v7590_v57 = vld [vmem:[#allocation16 + $0x384] sm:$0xf]  ;;  %v5433_v59 = vld [vmem:[#allocation16 + $0x390] sm:$0xf0]  ;;  %v5308_v62 = vor.u32 %v7558_v21, %v5305_v38  ;;  %1771 = vmatmul.bf16.vlgmr.msrb.gmra.mxu1 %v8487_v61  ;;  %v7509_v60 = vld [vmem:[#allocation16 + $0xf4] sm:$0xf0] }
  0x83   :  { %1841 = vmatpush.bf16.msra.mxu3 %v5740_v26  ;;  %v7622_v22 = vld [vmem:[#allocation16 + $0x484] sm:$0xf]  ;;  %v5561_v39 = vld [vmem:[#allocation16 + $0x490] sm:$0xf0]  ;;  %v5436_v3 = vor.u32 %v7590_v57, %v5433_v59  ;;  %v5231_v57 = vld [vmem:[#allocation16 + $0x1e8] sm:$0xf] }
  0x84   :  { %1803 = vmatpush.bf16.msra.mxu0 %v5340_v27  ;;  %v7654_v63 = vld [vmem:[#allocation16 + $0x584] sm:$0xf]  ;;  %v5689_v0 = vld [vmem:[#allocation16 + $0x590] sm:$0xf0]  ;;  %v5564_v4 = vor.u32 %v7622_v22, %v5561_v39  ;;  %1797 = vmatmul.bf16.vlgmr.msrb.gmra.mxu3 %v8470_v23  ;;  %v5359_v59 = vld [vmem:[#allocation16 + $0x2e8] sm:$0xf]  ;;  %v5104_v22 = vor.u32 %v7509_v60, %v5103_v53 }
  0x85   :  { %1816 = vmatpush.bf16.msra.mxu1 %v5468_v40  ;;  %1758 = vmatmul.bf16.vlgmr.msrb.gmra.mxu0 %v8485_v20  ;;  %v7554_v1 = vld [vmem:[#allocation16 + $0x264] sm:$0xf]  ;;  %v5289_v2 = vld [vmem:[#allocation16 + $0x270] sm:$0xf0]  ;;  %v5692_v6 = vor.u32 %v7654_v63, %v5689_v0  ;;  %v7573_v39 = vld [vmem:[#allocation16 + $0x2f4] sm:$0xf0] }
  0x86   :  { %1829 = vmatpush.bf16.msra.mxu2 %v5596_v33  ;;  %v7586_v5 = vld [vmem:[#allocation16 + $0x364] sm:$0xf]  ;;  %v5417_v7 = vld [vmem:[#allocation16 + $0x370] sm:$0xf0]  ;;  %v5292_v10 = vor.u32 %v7554_v1, %v5289_v2  ;;  %v7605_v63 = vld [vmem:[#allocation16 + $0x3f4] sm:$0xf0] }
  0x87   :  { %1842 = vmatpush.bf16.msra.mxu3 %v5724_v51  ;;  %v7618_v8 = vld [vmem:[#allocation16 + $0x464] sm:$0xf]  ;;  %v5545_v9 = vld [vmem:[#allocation16 + $0x470] sm:$0xf0]  ;;  %1784 = vmatmul.bf16.vlgmr.msrb.gmra.mxu2 %v8457_v37  ;;  %v5420_v15 = vor.u32 %v7586_v5, %v5417_v7  ;;  %v5087_v2 = vld [vmem:[#allocation16 + $0xc8] sm:$0xf] }
  0x88   :  { %1804 = vmatpush.bf16.msra.mxu0 %v5324_v52  ;;  %v7650_v11 = vld [vmem:[#allocation16 + $0x564] sm:$0xf]  ;;  %v5673_v12 = vld [vmem:[#allocation16 + $0x570] sm:$0xf0]  ;;  %v5548_v16 = vor.u32 %v7618_v8, %v5545_v9  ;;  %v5215_v8 = vld [vmem:[#allocation16 + $0x1c8] sm:$0xf] }
  0x89   :  { %1817 = vmatpush.bf16.msra.mxu1 %v5452_v55  ;;  %v7550_v13 = vld [vmem:[#allocation16 + $0x244] sm:$0xf]  ;;  %v5273_v14 = vld [vmem:[#allocation16 + $0x250] sm:$0xf0]  ;;  %v5676_v18 = vor.u32 %v7650_v11, %v5673_v12  ;;  %v7537_v9 = vld [vmem:[#allocation16 + $0x1d4] sm:$0xf0] }
  0x8a   :  { %1830 = vmatpush.bf16.msra.mxu2 %v5580_v56  ;;  %v7582_v17 = vld [vmem:[#allocation16 + $0x344] sm:$0xf]  ;;  %v5401_v19 = vld [vmem:[#allocation16 + $0x350] sm:$0xf0]  ;;  %v5276_v26 = vor.u32 %v7550_v13, %v5273_v14  ;;  %v7569_v12 = vld [vmem:[#allocation16 + $0x2d4] sm:$0xf0] }
  0x8b   :  { %1843 = vmatpush.bf16.msra.mxu3 %v5708_v58  ;;  %v7614_v24 = vld [vmem:[#allocation16 + $0x444] sm:$0xf]  ;;  %v5529_v25 = vld [vmem:[#allocation16 + $0x450] sm:$0xf0]  ;;  %v5404_v31 = vor.u32 %v7582_v17, %v5401_v19  ;;  %v7541_v58 = vld [vmem:[#allocation16 + $0x1f4] sm:$0xf0]  ;;  %v5216_v17 = vor.u32 %v7537_v9, %v5215_v8 }
  0x8c   :  { %1805 = vmatpush.bf16.msra.mxu0 %v5308_v62  ;;  %v7646_v27 = vld [vmem:[#allocation16 + $0x544] sm:$0xf]  ;;  %v5657_v28 = vld [vmem:[#allocation16 + $0x550] sm:$0xf0]  ;;  %v5532_v34 = vor.u32 %v7614_v24, %v5529_v25  ;;  %v5487_v62 = vld [vmem:[#allocation16 + $0x3e8] sm:$0xf]  ;;  %v5232_v5 = vor.u32 %v7541_v58, %v5231_v57 }
  0x8d   :  { %1818 = vmatpush.bf16.msra.mxu1 %v5436_v3  ;;  %v7546_v29 = vld [vmem:[#allocation16 + $0x224] sm:$0xf]  ;;  %v5257_v30 = vld [vmem:[#allocation16 + $0x230] sm:$0xf0]  ;;  %v5660_v36 = vor.u32 %v7646_v27, %v5657_v28  ;;  %v7505_v3 = vld [vmem:[#allocation16 + $0xd4] sm:$0xf0]  ;;  %v5488_v7 = vor.u32 %v7605_v63, %v5487_v62 }
  0x8e   :  { %1831 = vmatpush.bf16.msra.mxu2 %v5564_v4  ;;  %v7578_v35 = vld [vmem:[#allocation16 + $0x324] sm:$0xf]  ;;  %v5385_v41 = vld [vmem:[#allocation16 + $0x330] sm:$0xf0]  ;;  %v5260_v45 = vor.u32 %v7546_v29, %v5257_v30  ;;  %v5088_v11 = vor.u32 %v7505_v3, %v5087_v2  ;;  %v5471_v13 = vld [vmem:[#allocation16 + $0x3c8] sm:$0xf] }
  0x8f   :  { %1844 = vmatpush.bf16.msra.mxu3 %v5692_v6  ;;  %v7610_v40 = vld [vmem:[#allocation16 + $0x424] sm:$0xf]  ;;  %v5513_v32 = vld [vmem:[#allocation16 + $0x430] sm:$0xf0]  ;;  %v5388_v48 = vor.u32 %v7578_v35, %v5385_v41  ;;  %v5360_v6 = vor.u32 %v7573_v39, %v5359_v59  ;;  %v7601_v14 = vld [vmem:[#allocation16 + $0x3d4] sm:$0xf0] }
  0x90   :  { %1806 = vmatpush.bf16.msra.mxu0 %v5292_v10  ;;  %v7642_v33 = vld [vmem:[#allocation16 + $0x524] sm:$0xf]  ;;  %v5641_v42 = vld [vmem:[#allocation16 + $0x530] sm:$0xf0]  ;;  %v5516_v49 = vor.u32 %v7610_v40, %v5513_v32  ;;  %v5343_v10 = vld [vmem:[#allocation16 + $0x2c8] sm:$0xf]  ;;  %v5472_v19 = vor.u32 %v7601_v14, %v5471_v13 }
  0x91   :  { %1819 = vmatpush.bf16.msra.mxu1 %v5420_v15  ;;  %v7542_v43 = vld [vmem:[#allocation16 + $0x204] sm:$0xf]  ;;  %v5241_v46 = vld [vmem:[#allocation16 + $0x210] sm:$0xf0]  ;;  %v5644_v54 = vor.u32 %v7642_v33, %v5641_v42  ;;  %v5071_v15 = vld [vmem:[#allocation16 + $0xa8] sm:$0xf] }
  0x92   :  { %1832 = vmatpush.bf16.msra.mxu2 %v5548_v16  ;;  %v7574_v51 = vld [vmem:[#allocation16 + $0x304] sm:$0xf]  ;;  %v5369_v47 = vld [vmem:[#allocation16 + $0x310] sm:$0xf0]  ;;  %v5244_v56 = vor.u32 %v7542_v43, %v5241_v46  ;;  %v7501_v16 = vld [vmem:[#allocation16 + $0xb4] sm:$0xf0] }
  0x93   :  { %1845 = vmatpush.bf16.msra.mxu3 %v5676_v18  ;;  %v7606_v52 = vld [vmem:[#allocation16 + $0x404] sm:$0xf]  ;;  %v5497_v21 = vld [vmem:[#allocation16 + $0x410] sm:$0xf0]  ;;  %v5372_v0 = vor.u32 %v7574_v51, %v5369_v47  ;;  %v5344_v18 = vor.u32 %v7569_v12, %v5343_v10  ;;  %v5199_v24 = vld [vmem:[#allocation16 + $0x1a8] sm:$0xf]  ;;  %v5072_v27 = vor.u32 %v7501_v16, %v5071_v15 }
  0x94   :  { %1807 = vmatpush.bf16.msra.mxu0 %v5276_v26  ;;  %v7638_v38 = vld [vmem:[#allocation16 + $0x504] sm:$0xf]  ;;  %v5625_v55 = vld [vmem:[#allocation16 + $0x510] sm:$0xf0]  ;;  %v5500_v1 = vor.u32 %v7606_v52, %v5497_v21  ;;  %v7533_v25 = vld [vmem:[#allocation16 + $0x1b4] sm:$0xf0] }
  0x95   :  { %1820 = vmatpush.bf16.msra.mxu1 %v5404_v31  ;;  %v5628_v4 = vor.u32 %v7638_v38, %v5625_v55  ;;  %v5327_v26 = vld [vmem:[#allocation16 + $0x2a8] sm:$0xf]  ;;  %v7565_v28 = vld [vmem:[#allocation16 + $0x2b4] sm:$0xf0]  ;;  %v5200_v35 = vor.u32 %v7533_v25, %v5199_v24 }
  0x96   :  { %1833 = vmatpush.bf16.msra.mxu2 %v5532_v34  ;;  %v5455_v29 = vld [vmem:[#allocation16 + $0x3a8] sm:$0xf]  ;;  %v7597_v30 = vld [vmem:[#allocation16 + $0x3b4] sm:$0xf0] }
  0x97   :  { %1846 = vmatpush.bf16.msra.mxu3 %v5660_v36  ;;  %v5055_v31 = vld [vmem:[#allocation16 + $0x88] sm:$0xf]  ;;  %v7497_v34 = vld [vmem:[#allocation16 + $0x94] sm:$0xf0]  ;;  %v5328_v36 = vor.u32 %v7565_v28, %v5327_v26  ;;  %v5456_v41 = vor.u32 %v7597_v30, %v5455_v29 }
  0x98   :  { %1808 = vmatpush.bf16.msra.mxu0 %v5260_v45  ;;  %v5183_v40 = vld [vmem:[#allocation16 + $0x188] sm:$0xf]  ;;  %v7529_v32 = vld [vmem:[#allocation16 + $0x194] sm:$0xf0]  ;;  %v5056_v33 = vor.u32 %v7497_v34, %v5055_v31 }
  0x99   :  { %1821 = vmatpush.bf16.msra.mxu1 %v5388_v48  ;;  %v5311_v45 = vld [vmem:[#allocation16 + $0x288] sm:$0xf]  ;;  %v7561_v42 = vld [vmem:[#allocation16 + $0x294] sm:$0xf0]  ;;  %v5184_v48 = vor.u32 %v7529_v32, %v5183_v40 }
  0x9a   :  { %1834 = vmatpush.bf16.msra.mxu2 %v5516_v49  ;;  %v5439_v43 = vld [vmem:[#allocation16 + $0x388] sm:$0xf]  ;;  %v7593_v46 = vld [vmem:[#allocation16 + $0x394] sm:$0xf0]  ;;  %v5312_v49 = vor.u32 %v7561_v42, %v5311_v45  ;;  %v7507_v45 = vld [vmem:[#allocation16 + $0xec] sm:$0xf] }
  0x9b   :  { %1847 = vmatpush.bf16.msra.mxu3 %v5644_v54  ;;  %v5039_v51 = vld [vmem:[#allocation16 + $0x68] sm:$0xf]  ;;  %v7493_v47 = vld [vmem:[#allocation16 + $0x74] sm:$0xf0]  ;;  %v5440_v52 = vor.u32 %v7593_v46, %v5439_v43  ;;  %v7539_v42 = vld [vmem:[#allocation16 + $0x1ec] sm:$0xf] }
  0x9c   :  { %1809 = vmatpush.bf16.msra.mxu0 %v5244_v56  ;;  %v5167_v53 = vld [vmem:[#allocation16 + $0x168] sm:$0xf]  ;;  %v7525_v60 = vld [vmem:[#allocation16 + $0x174] sm:$0xf0]  ;;  %v5040_v21 = vor.u32 %v7493_v47, %v5039_v51  ;;  %v5233_v46 = vld [vmem:[#allocation16 + $0x1f8] sm:$0xf0] }
  0x9d   :  { %1822 = vmatpush.bf16.msra.mxu1 %v5372_v0  ;;  %v5295_v54 = vld [vmem:[#allocation16 + $0x268] sm:$0xf]  ;;  %v7557_v38 = vld [vmem:[#allocation16 + $0x274] sm:$0xf0]  ;;  %v5168_v59 = vor.u32 %v7525_v60, %v5167_v53 }
  0x9e   :  { %1835 = vmatpush.bf16.msra.mxu2 %v5500_v1  ;;  %v5423_v55 = vld [vmem:[#allocation16 + $0x368] sm:$0xf]  ;;  %v7589_v56 = vld [vmem:[#allocation16 + $0x374] sm:$0xf0]  ;;  %v5296_v62 = vor.u32 %v7557_v38, %v5295_v54 }
  0x9f   :  { %1848 = vmatpush.bf16.msra.mxu3 %v5628_v4  ;;  %1810 = vmatmul.bf16.vlgmr.msra.gmra.mxu0 %v8459_v44  ;;  %v5023_v57 = vld [vmem:[#allocation16 + $0x48] sm:$0xf]  ;;  %v7489_v58 = vld [vmem:[#allocation16 + $0x54] sm:$0xf0]  ;;  %v5424_v63 = vor.u32 %v7589_v56, %v5423_v55  ;;  %v7503_v55 = vld [vmem:[#allocation16 + $0xcc] sm:$0xf] }
  0xa0   :  { %1854 = vmatpush.bf16.msrb.mxu0 %v5104_v22  ;;  %1823 = vmatmul.bf16.vlgmr.msra.gmra.mxu1 %v8464_v50  ;;  %v5151_v22 = vld [vmem:[#allocation16 + $0x148] sm:$0xf]  ;;  %v7521_v39 = vld [vmem:[#allocation16 + $0x154] sm:$0xf0]  ;;  %v5024_v3 = vor.u32 %v7489_v58, %v5023_v57  ;;  %v5089_v56 = vld [vmem:[#allocation16 + $0xd8] sm:$0xf0] }
  0xa1   :  { %1867 = vmatpush.bf16.msrb.mxu1 %v5232_v5  ;;  %1836 = vmatmul.bf16.vlgmr.msra.gmra.mxu2 %v8485_v20  ;;  %v5279_v0 = vld [vmem:[#allocation16 + $0x248] sm:$0xf]  ;;  %v7553_v1 = vld [vmem:[#allocation16 + $0x254] sm:$0xf0]  ;;  %v7535_v57 = vld [vmem:[#allocation16 + $0x1cc] sm:$0xf] }
  0xa2   :  { %1880 = vmatpush.bf16.msrb.mxu2 %v5360_v6  ;;  %1849 = vmatmul.bf16.vlgmr.msra.gmra.mxu3 %v8487_v61  ;;  %v5407_v2 = vld [vmem:[#allocation16 + $0x348] sm:$0xf]  ;;  %v7585_v4 = vld [vmem:[#allocation16 + $0x354] sm:$0xf0]  ;;  %v5280_v8 = vor.u32 %v7553_v1, %v5279_v0  ;;  %v5217_v58 = vld [vmem:[#allocation16 + $0x1d8] sm:$0xf0] }
  0xa3   :  { %1893 = vmatpush.bf16.msrb.mxu3 %v5488_v7  ;;  %v5007_v5 = vld [vmem:[#allocation16 + $0x28] sm:$0xf]  ;;  %v7485_v6 = vld [vmem:[#allocation16 + $0x34] sm:$0xf0]  ;;  %v5152_v7 = vor.u32 %v7521_v39, %v5151_v22  ;;  %v5408_v9 = vor.u32 %v7585_v4, %v5407_v2  ;;  %v5220_v1 = vor.u32 %v7535_v57, %v5217_v58  ;;  %v5073_v4 = vld [vmem:[#allocation16 + $0xb8] sm:$0xf0] }
  0xa4   :  { %1855 = vmatpush.bf16.msrb.mxu0 %v5088_v11  ;;  %v5135_v10 = vld [vmem:[#allocation16 + $0x128] sm:$0xf]  ;;  %v7517_v11 = vld [vmem:[#allocation16 + $0x134] sm:$0xf0]  ;;  %v5008_v13 = vor.u32 %v7485_v6, %v5007_v5  ;;  %v7531_v5 = vld [vmem:[#allocation16 + $0x1ac] sm:$0xf] }
  0xa5   :  { %1868 = vmatpush.bf16.msrb.mxu1 %v5216_v17  ;;  %v5263_v12 = vld [vmem:[#allocation16 + $0x228] sm:$0xf]  ;;  %v7549_v14 = vld [vmem:[#allocation16 + $0x234] sm:$0xf0]  ;;  %v5136_v24 = vor.u32 %v7517_v11, %v5135_v10  ;;  %v5201_v6 = vld [vmem:[#allocation16 + $0x1b8] sm:$0xf0] }
  0xa6   :  { %1881 = vmatpush.bf16.msrb.mxu2 %v5344_v18  ;;  %v5391_v15 = vld [vmem:[#allocation16 + $0x328] sm:$0xf]  ;;  %v7581_v16 = vld [vmem:[#allocation16 + $0x334] sm:$0xf0]  ;;  %v5264_v28 = vor.u32 %v7549_v14, %v5263_v12  ;;  %v7483_v57 = vld [vmem:[#allocation16 + $0x2c] sm:$0xf] }
  0xa7   :  { %1894 = vmatpush.bf16.msrb.mxu3 %v5472_v19  ;;  %v4991_v17 = vld [vmem:[#allocation16 + $0x8] sm:$0xf]  ;;  %v7481_v18 = vld [vmem:[#allocation16 + $0x14] sm:$0xf0]  ;;  %v5392_v29 = vor.u32 %v7581_v16, %v5391_v15  ;;  %v7495_v15 = vld [vmem:[#allocation16 + $0x8c] sm:$0xf] }
  0xa8   :  { %1856 = vmatpush.bf16.msrb.mxu0 %v5072_v27  ;;  %v5119_v19 = vld [vmem:[#allocation16 + $0x108] sm:$0xf]  ;;  %v7513_v25 = vld [vmem:[#allocation16 + $0x114] sm:$0xf0]  ;;  %v5057_v16 = vld [vmem:[#allocation16 + $0x98] sm:$0xf0] }
  0xa9   :  { %1869 = vmatpush.bf16.msrb.mxu1 %v5200_v35  ;;  %v5615_v26 = vld [vmem:[#allocation16 + $0x4e8] sm:$0xf]  ;;  %v7637_v27 = vld [vmem:[#allocation16 + $0x4f4] sm:$0xf0]  ;;  %v4992_v35 = vor.u32 %v7481_v18, %v4991_v17  ;;  %v5120_v43 = vor.u32 %v7513_v25, %v5119_v19  ;;  %v7527_v17 = vld [vmem:[#allocation16 + $0x18c] sm:$0xf] }
  0xaa   :  { %1882 = vmatpush.bf16.msrb.mxu2 %v5328_v36  ;;  %v5247_v30 = vld [vmem:[#allocation16 + $0x208] sm:$0xf]  ;;  %v7545_v31 = vld [vmem:[#allocation16 + $0x214] sm:$0xf0]  ;;  %v5616_v32 = vor.u32 %v7637_v27, %v5615_v26  ;;  %v5185_v18 = vld [vmem:[#allocation16 + $0x198] sm:$0xf0]  ;;  %v5060_v26 = vor.u32 %v7495_v15, %v5057_v16 }
  0xab   :  { %1895 = vmatpush.bf16.msrb.mxu3 %v5456_v41  ;;  %v5375_v34 = vld [vmem:[#allocation16 + $0x308] sm:$0xf]  ;;  %v7577_v36 = vld [vmem:[#allocation16 + $0x314] sm:$0xf0]  ;;  %v5009_v58 = vld [vmem:[#allocation16 + $0x38] sm:$0xf0] }
  0xac   :  { %1857 = vmatpush.bf16.msrb.mxu0 %v5056_v33  ;;  %v5743_v41 = vld [vmem:[#allocation16 + $0x5e8] sm:$0xf]  ;;  %v7669_v40 = vld [vmem:[#allocation16 + $0x5f4] sm:$0xf0]  ;;  %v5105_v33 = vld [vmem:[#allocation16 + $0xf8] sm:$0xf0] }
  0xad   :  { %1870 = vmatpush.bf16.msrb.mxu1 %v5184_v48  ;;  %v5599_v51 = vld [vmem:[#allocation16 + $0x4c8] sm:$0xf]  ;;  %v7633_v47 = vld [vmem:[#allocation16 + $0x4d4] sm:$0xf0]  ;;  %v5248_v48 = vor.u32 %v7545_v31, %v5247_v30  ;;  %v5108_v53 = vor.u32 %v7507_v45, %v5105_v33  ;;  %v7491_v31 = vld [vmem:[#allocation16 + $0x6c] sm:$0xf] }
  0xae   :  { %1883 = vmatpush.bf16.msrb.mxu2 %v5312_v49  ;;  %v5376_v49 = vor.u32 %v7577_v36, %v5375_v34  ;;  %v5727_v60 = vld [vmem:[#allocation16 + $0x5c8] sm:$0xf]  ;;  %v7665_v54 = vld [vmem:[#allocation16 + $0x5d4] sm:$0xf0]  ;;  %v5600_v38 = vor.u32 %v7633_v47, %v5599_v51  ;;  %v5041_v34 = vld [vmem:[#allocation16 + $0x78] sm:$0xf0] }
  0xaf   :  { %1896 = vmatpush.bf16.msrb.mxu3 %v5440_v52  ;;  %v5744_v52 = vor.u32 %v7669_v40, %v5743_v41  ;;  %v7629_v22 = vld [vmem:[#allocation16 + $0x4b4] sm:$0xf0]  ;;  %v5728_v39 = vor.u32 %v7665_v54, %v5727_v60  ;;  %v5695_v11 = vld [vmem:[#allocation16 + $0x588] sm:$0xf]  ;;  %v5169_v36 = vld [vmem:[#allocation16 + $0x178] sm:$0xf0]  ;;  %v5044_v45 = vor.u32 %v7491_v31, %v5041_v34 }
  0xb0   :  { %1858 = vmatpush.bf16.msrb.mxu0 %v5040_v21  ;;  %v5236_v21 = vor.u32 %v7539_v42, %v5233_v46  ;;  %v7661_v0 = vld [vmem:[#allocation16 + $0x5b4] sm:$0xf0]  ;;  %v5551_v19 = vld [vmem:[#allocation16 + $0x468] sm:$0xf]  ;;  %v7487_v51 = vld [vmem:[#allocation16 + $0x4c] sm:$0xf] }
  0xb1   :  { %1871 = vmatpush.bf16.msrb.mxu1 %v5168_v59  ;;  %v5583_v59 = vld [vmem:[#allocation16 + $0x4a8] sm:$0xf]  ;;  %v7657_v12 = vld [vmem:[#allocation16 + $0x594] sm:$0xf0]  ;;  %v5025_v47 = vld [vmem:[#allocation16 + $0x58] sm:$0xf0] }
  0xb2   :  { %1884 = vmatpush.bf16.msrb.mxu2 %v5296_v62  ;;  %v5092_v62 = vor.u32 %v7503_v55, %v5089_v56  ;;  %v5584_v2 = vor.u32 %v7629_v22, %v5583_v59  ;;  %v5696_v25 = vor.u32 %v7657_v12, %v5695_v11  ;;  %v5679_v27 = vld [vmem:[#allocation16 + $0x568] sm:$0xf]  ;;  %v7617_v40 = vld [vmem:[#allocation16 + $0x454] sm:$0xf0]  ;;  %v5028_v54 = vor.u32 %v7487_v51, %v5025_v47  ;;  %v7515_v59 = vld [vmem:[#allocation16 + $0x12c] sm:$0xf] }
  0xb3   :  { %1897 = vmatpush.bf16.msrb.mxu3 %v5424_v63  ;;  %v5711_v63 = vld [vmem:[#allocation16 + $0x5a8] sm:$0xf]  ;;  %v7649_v42 = vld [vmem:[#allocation16 + $0x554] sm:$0xf0]  ;;  %v5137_v22 = vld [vmem:[#allocation16 + $0x138] sm:$0xf0] }
  0xb4   :  { %1859 = vmatpush.bf16.msrb.mxu0 %v5024_v3  ;;  %v7499_v3 = vld [vmem:[#allocation16 + $0xac] sm:$0xf]  ;;  %v5535_v41 = vld [vmem:[#allocation16 + $0x448] sm:$0xf]  ;;  %v5617_v15 = vld [vmem:[#allocation16 + $0x4f8] sm:$0xf0] }
  0xb5   :  { %1872 = vmatpush.bf16.msrb.mxu1 %v5152_v7  ;;  %v5567_v7 = vld [vmem:[#allocation16 + $0x488] sm:$0xf]  ;;  %v5076_v10 = vor.u32 %v7499_v3, %v5073_v4  ;;  %v5536_v46 = vor.u32 %v7617_v40, %v5535_v41  ;;  %v7641_v4 = vld [vmem:[#allocation16 + $0x514] sm:$0xf0]  ;;  %v7603_v12 = vld [vmem:[#allocation16 + $0x3ec] sm:$0xf] }
  0xb6   :  { %1885 = vmatpush.bf16.msrb.mxu2 %v5280_v8  ;;  %v7625_v8 = vld [vmem:[#allocation16 + $0x494] sm:$0xf0]  ;;  %v5663_v33 = vld [vmem:[#allocation16 + $0x548] sm:$0xf]  ;;  %v7667_v16 = vld [vmem:[#allocation16 + $0x5ec] sm:$0xf] }
  0xb7   :  { %1898 = vmatpush.bf16.msrb.mxu3 %v5408_v9  ;;  %v5712_v9 = vor.u32 %v7661_v0, %v5711_v63  ;;  %v5568_v14 = vor.u32 %v7625_v8, %v5567_v7  ;;  %v5664_v60 = vor.u32 %v7649_v42, %v5663_v33  ;;  %v7571_v63 = vld [vmem:[#allocation16 + $0x2ec] sm:$0xf]  ;;  %v5361_v0 = vld [vmem:[#allocation16 + $0x2f8] sm:$0xf0]  ;;  %v5631_v3 = vld [vmem:[#allocation16 + $0x508] sm:$0xf] }
  0xb8   :  { %1860 = vmatpush.bf16.msrb.mxu0 %v5008_v13  ;;  %v5204_v13 = vor.u32 %v7531_v5, %v5201_v6  ;;  %v7479_v5 = vld [vmem:[#allocation16 + $0xc] sm:$0xf]  ;;  %v5140_v6 = vor.u32 %v7515_v59, %v5137_v22  ;;  %v4993_v8 = vld [vmem:[#allocation16 + $0x18] sm:$0xf0]  ;;  %v5364_v11 = vor.u32 %v7571_v63, %v5361_v0 }
  0xb9   :  { %1873 = vmatpush.bf16.msrb.mxu1 %v5136_v24  ;;  %v7621_v24 = vld [vmem:[#allocation16 + $0x474] sm:$0xf0]  ;;  %v5473_v31 = vld [vmem:[#allocation16 + $0x3d8] sm:$0xf0]  ;;  %v7631_v34 = vld [vmem:[#allocation16 + $0x4cc] sm:$0xf] }
  0xba   :  { %1886 = vmatpush.bf16.msrb.mxu2 %v5264_v28  ;;  %v7653_v28 = vld [vmem:[#allocation16 + $0x574] sm:$0xf0]  ;;  %v5552_v30 = vor.u32 %v7621_v24, %v5551_v19  ;;  %v4996_v19 = vor.u32 %v7479_v5, %v4993_v8  ;;  %v7567_v24 = vld [vmem:[#allocation16 + $0x2cc] sm:$0xf]  ;;  %v5729_v40 = vld [vmem:[#allocation16 + $0x5d8] sm:$0xf0] }
  0xbb   :  { %1899 = vmatpush.bf16.msrb.mxu3 %v5392_v29  ;;  %v5188_v29 = vor.u32 %v7527_v17, %v5185_v18  ;;  %v5745_v17 = vld [vmem:[#allocation16 + $0x5f8] sm:$0xf0]  ;;  %v5632_v18 = vor.u32 %v7641_v4, %v5631_v3  ;;  %v7663_v41 = vld [vmem:[#allocation16 + $0x5cc] sm:$0xf] }
  0xbc   :  { %1861 = vmatpush.bf16.msrb.mxu0 %v4992_v35  ;;  %v7523_v35 = vld [vmem:[#allocation16 + $0x16c] sm:$0xf]  ;;  %v5457_v51 = vld [vmem:[#allocation16 + $0x3b8] sm:$0xf0] }
  0xbd   :  { %1874 = vmatpush.bf16.msrb.mxu1 %v5120_v43  ;;  %v5172_v43 = vor.u32 %v7523_v35, %v5169_v36  ;;  %v5601_v36 = vld [vmem:[#allocation16 + $0x4d8] sm:$0xf0]  ;;  %v7627_v47 = vld [vmem:[#allocation16 + $0x4ac] sm:$0xf] }
  0xbe   :  { %1887 = vmatpush.bf16.msrb.mxu2 %v5248_v48  ;;  %v7519_v48 = vld [vmem:[#allocation16 + $0x14c] sm:$0xf]  ;;  %v5604_v42 = vor.u32 %v7631_v34, %v5601_v36  ;;  %v5569_v22 = vld [vmem:[#allocation16 + $0x498] sm:$0xf0] }
  0xbf   :  { %1900 = vmatpush.bf16.msrb.mxu3 %v5376_v49  ;;  %1862 = vmatmul.bf16.vlgmr.msrb.gmra.mxu0 %v8457_v37  ;;  %v5153_v49 = vld [vmem:[#allocation16 + $0x158] sm:$0xf0]  ;;  %v7555_v63 = vld [vmem:[#allocation16 + $0x26c] sm:$0xf] }
  0xc0   :  { %1906 = vmatpush.bf16.msra.mxu0 %v5616_v32  ;;  %1875 = vmatmul.bf16.vlgmr.msrb.gmra.mxu1 %v8470_v23  ;;  %v5680_v32 = vor.u32 %v7653_v28, %v5679_v27  ;;  %v5156_v55 = vor.u32 %v7519_v48, %v5153_v49  ;;  %v5585_v49 = vld [vmem:[#allocation16 + $0x4b8] sm:$0xf0]  ;;  %v7619_v4 = vld [vmem:[#allocation16 + $0x46c] sm:$0xf] }
  0xc1   :  { %1919 = vmatpush.bf16.msra.mxu1 %v5744_v52  ;;  %1888 = vmatmul.bf16.vlgmr.msrb.gmra.mxu2 %v8459_v44  ;;  %v5519_v52 = vld [vmem:[#allocation16 + $0x428] sm:$0xf]  ;;  %v5297_v0 = vld [vmem:[#allocation16 + $0x278] sm:$0xf0]  ;;  %v7611_v34 = vld [vmem:[#allocation16 + $0x42c] sm:$0xf] }
  0xc2   :  { %1932 = vmatpush.bf16.msra.mxu2 %v5108_v53  ;;  %1901 = vmatmul.bf16.vlgmr.msrb.gmra.mxu3 %v8464_v50  ;;  %v7613_v53 = vld [vmem:[#allocation16 + $0x434] sm:$0xf0]  ;;  %v5425_v3 = vld [vmem:[#allocation16 + $0x378] sm:$0xf0]  ;;  %v5300_v5 = vor.u32 %v7555_v63, %v5297_v0 }
  0xc3   :  { %1945 = vmatpush.bf16.msra.mxu3 %v5236_v21  ;;  %v5647_v21 = vld [vmem:[#allocation16 + $0x528] sm:$0xf]  ;;  %v5520_v56 = vor.u32 %v7613_v53, %v5519_v52  ;;  %v7659_v52 = vld [vmem:[#allocation16 + $0x5ac] sm:$0xf]  ;;  %v5713_v53 = vld [vmem:[#allocation16 + $0x5b8] sm:$0xf0] }
  0xc4   :  { %1907 = vmatpush.bf16.msra.mxu0 %v5600_v38  ;;  %v7645_v38 = vld [vmem:[#allocation16 + $0x534] sm:$0xf0]  ;;  %v5681_v8 = vld [vmem:[#allocation16 + $0x578] sm:$0xf0] }
  0xc5   :  { %1920 = vmatpush.bf16.msra.mxu1 %v5728_v39  ;;  %v5503_v39 = vld [vmem:[#allocation16 + $0x408] sm:$0xf]  ;;  %v5521_v36 = vld [vmem:[#allocation16 + $0x438] sm:$0xf0] }
  0xc6   :  { %1933 = vmatpush.bf16.msra.mxu2 %v5092_v62  ;;  %v7609_v62 = vld [vmem:[#allocation16 + $0x414] sm:$0xf0] }
  0xc7   :  { %1946 = vmatpush.bf16.msra.mxu3 %v5220_v1  ;;  %v5648_v1 = vor.u32 %v7645_v38, %v5647_v21  ;;  %v5504_v7 = vor.u32 %v7609_v62, %v5503_v39  ;;  %v5588_v38 = vor.u32 %v7627_v47, %v5585_v49  ;;  %v7655_v39 = vld [vmem:[#allocation16 + $0x58c] sm:$0xf]  ;;  %v5697_v62 = vld [vmem:[#allocation16 + $0x598] sm:$0xf0]  ;;  %v5524_v47 = vor.u32 %v7611_v34, %v5521_v36  ;;  %v5943_v34 = vld [vmem:[#allocation15 + $0x180] sm:$0xf] }
  0xc8   :  { %1908 = vmatpush.bf16.msra.mxu0 %v5584_v2  ;;  %v5012_v2 = vor.u32 %v7483_v57, %v5009_v58  ;;  %v5441_v57 = vld [vmem:[#allocation16 + $0x398] sm:$0xf0]  ;;  %v7623_v58 = vld [vmem:[#allocation16 + $0x48c] sm:$0xf] }
  0xc9   :  { %1921 = vmatpush.bf16.msra.mxu1 %v5712_v9  ;;  %v7511_v9 = vld [vmem:[#allocation16 + $0x10c] sm:$0xf] }
  0xca   :  { %1934 = vmatpush.bf16.msra.mxu2 %v5076_v10  ;;  %v5121_v10 = vld [vmem:[#allocation16 + $0x118] sm:$0xf0]  ;;  %v7607_v49 = vld [vmem:[#allocation16 + $0x40c] sm:$0xf] }
  0xcb   :  { %1947 = vmatpush.bf16.msra.mxu3 %v5204_v13  ;;  %v5489_v13 = vld [vmem:[#allocation16 + $0x3f8] sm:$0xf0] }
  0xcc   :  { %1909 = vmatpush.bf16.msra.mxu0 %v5568_v14  ;;  %v7635_v14 = vld [vmem:[#allocation16 + $0x4ec] sm:$0xf]  ;;  %v5492_v27 = vor.u32 %v7603_v12, %v5489_v13 }
  0xcd   :  { %1922 = vmatpush.bf16.msra.mxu1 %v5696_v25  ;;  %v5345_v25 = vld [vmem:[#allocation16 + $0x2d8] sm:$0xf0]  ;;  %v5620_v28 = vor.u32 %v7635_v14, %v5617_v15  ;;  %v7583_v14 = vld [vmem:[#allocation16 + $0x34c] sm:$0xf] }
  0xce   :  { %1935 = vmatpush.bf16.msra.mxu2 %v5060_v26  ;;  %v5124_v26 = vor.u32 %v7511_v9, %v5121_v10  ;;  %v5348_v35 = vor.u32 %v7567_v24, %v5345_v25  ;;  %v7551_v9 = vld [vmem:[#allocation16 + $0x24c] sm:$0xf]  ;;  %v5281_v10 = vld [vmem:[#allocation16 + $0x258] sm:$0xf0] }
  0xcf   :  { %1948 = vmatpush.bf16.msra.mxu3 %v5188_v29  ;;  %v5748_v29 = vor.u32 %v7667_v16, %v5745_v17  ;;  %v5409_v15 = vld [vmem:[#allocation16 + $0x358] sm:$0xf0]  ;;  %v7615_v16 = vld [vmem:[#allocation16 + $0x44c] sm:$0xf]  ;;  %v5284_v17 = vor.u32 %v7551_v9, %v5281_v10  ;;  %v7408_v9 = vld [vmem:[#allocation15 + $0x3cc] sm:$0xf0] }
  0xd0   :  { %1910 = vmatpush.bf16.msra.mxu0 %v5552_v30  ;;  %v7599_v30 = vld [vmem:[#allocation16 + $0x3cc] sm:$0xf]  ;;  %v5665_v24 = vld [vmem:[#allocation16 + $0x558] sm:$0xf0]  ;;  %v5831_v10 = vld [vmem:[#allocation15 + $0xa0] sm:$0xf] }
  0xd1   :  { %1923 = vmatpush.bf16.msra.mxu1 %v5680_v32  ;;  %v7563_v32 = vld [vmem:[#allocation16 + $0x2ac] sm:$0xf]  ;;  %v5476_v33 = vor.u32 %v7599_v30, %v5473_v31  ;;  %v5393_v31 = vld [vmem:[#allocation16 + $0x338] sm:$0xf0] }
  0xd2   :  { %1936 = vmatpush.bf16.msra.mxu2 %v5044_v45  ;;  %v5329_v45 = vld [vmem:[#allocation16 + $0x2b8] sm:$0xf0]  ;;  %v7547_v25 = vld [vmem:[#allocation16 + $0x22c] sm:$0xf] }
  0xd3   :  { %1949 = vmatpush.bf16.msra.mxu3 %v5172_v43  ;;  %v5732_v43 = vor.u32 %v7663_v41, %v5729_v40  ;;  %v5332_v48 = vor.u32 %v7563_v32, %v5329_v45  ;;  %v7579_v30 = vld [vmem:[#allocation16 + $0x32c] sm:$0xf]  ;;  %v5649_v40 = vld [vmem:[#allocation16 + $0x538] sm:$0xf0] }
  0xd4   :  { %1911 = vmatpush.bf16.msra.mxu0 %v5536_v46  ;;  %v7595_v46 = vld [vmem:[#allocation16 + $0x3ac] sm:$0xf]  ;;  %v5249_v45 = vld [vmem:[#allocation16 + $0x218] sm:$0xf0] }
  0xd5   :  { %1924 = vmatpush.bf16.msra.mxu1 %v5664_v60  ;;  %v7559_v60 = vld [vmem:[#allocation16 + $0x28c] sm:$0xf]  ;;  %v5460_v21 = vor.u32 %v7595_v46, %v5457_v51  ;;  %v5863_v46 = vld [vmem:[#allocation15 + $0xe0] sm:$0xf]  ;;  %v7316_v51 = vld [vmem:[#allocation15 + $0xec] sm:$0xf0] }
  0xd6   :  { %1937 = vmatpush.bf16.msra.mxu2 %v5028_v54  ;;  %v5313_v54 = vld [vmem:[#allocation16 + $0x298] sm:$0xf0]  ;;  %v7643_v41 = vld [vmem:[#allocation16 + $0x52c] sm:$0xf] }
  0xd7   :  { %1950 = vmatpush.bf16.msra.mxu3 %v5156_v55  ;;  %v5716_v55 = vor.u32 %v7659_v52, %v5713_v53  ;;  %v5316_v59 = vor.u32 %v7559_v60, %v5313_v54  ;;  %v7543_v32 = vld [vmem:[#allocation16 + $0x20c] sm:$0xf]  ;;  %v5505_v52 = vld [vmem:[#allocation16 + $0x418] sm:$0xf0] }
  0xd8   :  { %1912 = vmatpush.bf16.msra.mxu0 %v5520_v56  ;;  %v7591_v56 = vld [vmem:[#allocation16 + $0x38c] sm:$0xf]  ;;  %v5252_v60 = vor.u32 %v7543_v32, %v5249_v45  ;;  %v5633_v54 = vld [vmem:[#allocation16 + $0x518] sm:$0xf0]  ;;  %v5508_v63 = vor.u32 %v7607_v49, %v5505_v52  ;;  %v7368_v32 = vld [vmem:[#allocation15 + $0x28c] sm:$0xf0] }
  0xd9   :  { %1925 = vmatpush.bf16.msra.mxu1 %v5648_v1  ;;  %v5572_v1 = vor.u32 %v7623_v58, %v5569_v22  ;;  %v7639_v53 = vld [vmem:[#allocation16 + $0x50c] sm:$0xf]  ;;  %v6247_v58 = vld [vmem:[#allocation15 + $0x3e0] sm:$0xf]  ;;  %v7412_v22 = vld [vmem:[#allocation15 + $0x3ec] sm:$0xf0] }
  0xda   :  { %1938 = vmatpush.bf16.msra.mxu2 %v5012_v2  ;;  %v7587_v2 = vld [vmem:[#allocation16 + $0x36c] sm:$0xf]  ;;  %v5636_v0 = vor.u32 %v7639_v53, %v5633_v54  ;;  %v6199_v45 = vld [vmem:[#allocation15 + $0x380] sm:$0xf]  ;;  %v7332_v49 = vld [vmem:[#allocation15 + $0x16c] sm:$0xf0] }
  0xdb   :  { %1951 = vmatpush.bf16.msra.mxu3 %v5140_v6  ;;  %v5553_v6 = vld [vmem:[#allocation16 + $0x478] sm:$0xf0]  ;;  %v6055_v54 = vld [vmem:[#allocation15 + $0x260] sm:$0xf] }
  0xdc   :  { %1913 = vmatpush.bf16.msra.mxu0 %v5504_v7  ;;  %v7651_v7 = vld [vmem:[#allocation16 + $0x56c] sm:$0xf]  ;;  %v5556_v12 = vor.u32 %v7619_v4, %v5553_v6  ;;  %v7376_v6 = vld [vmem:[#allocation15 + $0x2cc] sm:$0xf0] }
  0xdd   :  { %1926 = vmatpush.bf16.msra.mxu1 %v5632_v18  ;;  %v5684_v13 = vor.u32 %v7651_v7, %v5681_v8  ;;  %v5537_v18 = vld [vmem:[#allocation16 + $0x458] sm:$0xf0]  ;;  %v6231_v7 = vld [vmem:[#allocation15 + $0x3c0] sm:$0xf] }
  0xde   :  { %1939 = vmatpush.bf16.msra.mxu2 %v4996_v19  ;;  %v7647_v19 = vld [vmem:[#allocation16 + $0x54c] sm:$0xf] }
  0xdf   :  { %1952 = vmatpush.bf16.msra.mxu3 %v5124_v26  ;;  %1914 = vmatmul.bf16.vlgmr.msra.gmra.mxu0 %v8485_v20  ;;  %v5265_v26 = vld [vmem:[#allocation16 + $0x238] sm:$0xf0] }
  0xe0   :  { %1958 = vmatpush.bf16.msrb.mxu0 %v5364_v11  ;;  %1927 = vmatmul.bf16.vlgmr.msra.gmra.mxu1 %v8487_v61  ;;  %v5428_v11 = vor.u32 %v7587_v2, %v5425_v3  ;;  %v7344_v2 = vld [vmem:[#allocation15 + $0x1cc] sm:$0xf0]  ;;  %v6248_v3 = vor.u32 %v7412_v22, %v6247_v58  ;;  %v5911_v22 = vld [vmem:[#allocation15 + $0x140] sm:$0xf] }
  0xe1   :  { %1971 = vmatpush.bf16.msrb.mxu1 %v5492_v27  ;;  %1940 = vmatmul.bf16.vlgmr.msra.gmra.mxu2 %v8457_v37  ;;  %v5444_v37 = vor.u32 %v7591_v56, %v5441_v57  ;;  %v5412_v27 = vor.u32 %v7583_v14, %v5409_v15  ;;  %v6119_v56 = vld [vmem:[#allocation15 + $0x2e0] sm:$0xf]  ;;  %v7380_v57 = vld [vmem:[#allocation15 + $0x2ec] sm:$0xf0] }
  0xe2   :  { %1984 = vmatpush.bf16.msrb.mxu2 %v5620_v28  ;;  %1953 = vmatmul.bf16.vlgmr.msra.gmra.mxu3 %v8470_v23  ;;  %v5700_v23 = vor.u32 %v7655_v39, %v5697_v62  ;;  %v5540_v28 = vor.u32 %v7615_v16, %v5537_v18  ;;  %v5847_v39 = vld [vmem:[#allocation15 + $0xc0] sm:$0xf]  ;;  %v7312_v62 = vld [vmem:[#allocation15 + $0xcc] sm:$0xf0] }
  0xe3   :  { %1997 = vmatpush.bf16.msrb.mxu3 %v5748_v29  ;;  %v5668_v29 = vor.u32 %v7647_v19, %v5665_v24  ;;  %v5848_v4 = vor.u32 %v7312_v62, %v5847_v39  ;;  %v5959_v14 = vld [vmem:[#allocation15 + $0x1a0] sm:$0xf]  ;;  %v7340_v15 = vld [vmem:[#allocation15 + $0x1ac] sm:$0xf0] }
  0xe4   :  { %1959 = vmatpush.bf16.msrb.mxu0 %v5348_v35  ;;  %v5268_v35 = vor.u32 %v7547_v25, %v5265_v26  ;;  %v6087_v19 = vld [vmem:[#allocation15 + $0x2a0] sm:$0xf]  ;;  %v7372_v24 = vld [vmem:[#allocation15 + $0x2ac] sm:$0xf0] }
  0xe5   :  { %1972 = vmatpush.bf16.msrb.mxu1 %v5476_v33  ;;  %v7575_v33 = vld [vmem:[#allocation16 + $0x30c] sm:$0xf]  ;;  %v6215_v25 = vld [vmem:[#allocation15 + $0x3a0] sm:$0xf]  ;;  %v7328_v39 = vld [vmem:[#allocation15 + $0x14c] sm:$0xf0] }
  0xe6   :  { %1985 = vmatpush.bf16.msrb.mxu2 %v5604_v42  ;;  %v5396_v42 = vor.u32 %v7579_v30, %v5393_v31  ;;  %v5960_v30 = vor.u32 %v7340_v15, %v5959_v14  ;;  %v6088_v31 = vor.u32 %v7372_v24, %v6087_v19  ;;  %v5751_v19 = vld [vmem:[#allocation15] sm:$0xf] }
  0xe7   :  { %1998 = vmatpush.bf16.msrb.mxu3 %v5732_v43  ;;  %v5377_v43 = vld [vmem:[#allocation16 + $0x318] sm:$0xf0] }
  0xe8   :  { %1960 = vmatpush.bf16.msrb.mxu0 %v5332_v48  ;;  %v5652_v48 = vor.u32 %v7643_v41, %v5649_v40 }
  0xe9   :  { %1973 = vmatpush.bf16.msrb.mxu1 %v5460_v21  ;;  %v5991_v21 = vld [vmem:[#allocation15 + $0x1e0] sm:$0xf] }
  0xea   :  { %1986 = vmatpush.bf16.msrb.mxu2 %v5588_v38  ;;  %v7348_v38 = vld [vmem:[#allocation15 + $0x1ec] sm:$0xf0] }
  0xeb   :  { %1999 = vmatpush.bf16.msrb.mxu3 %v5716_v55  ;;  %v5864_v55 = vor.u32 %v7316_v51, %v5863_v46 }
  0xec   :  { %1961 = vmatpush.bf16.msrb.mxu0 %v5316_v59  ;;  %v5380_v59 = vor.u32 %v7575_v33, %v5377_v43  ;;  %v5799_v43 = vld [vmem:[#allocation15 + $0x60] sm:$0xf] }
  0xed   :  { %1974 = vmatpush.bf16.msrb.mxu1 %v5444_v37  ;;  %v5992_v37 = vor.u32 %v7348_v38, %v5991_v21  ;;  %v7364_v21 = vld [vmem:[#allocation15 + $0x26c] sm:$0xf0]  ;;  %v6183_v38 = vld [vmem:[#allocation15 + $0x360] sm:$0xf] }
  0xee   :  { %1987 = vmatpush.bf16.msrb.mxu2 %v5572_v1  ;;  %v6120_v1 = vor.u32 %v7380_v57, %v6119_v56  ;;  %v5783_v56 = vld [vmem:[#allocation15 + $0x40] sm:$0xf]  ;;  %v7296_v57 = vld [vmem:[#allocation15 + $0x4c] sm:$0xf0] }
  0xef   :  { %2000 = vmatpush.bf16.msrb.mxu3 %v5700_v23  ;;  %v5975_v23 = vld [vmem:[#allocation15 + $0x1c0] sm:$0xf]  ;;  %v1720_v16 = vpop.f32.mrf.mxu1 }
  0xf0   :  { %1962 = vmatpush.bf16.msrb.mxu0 %v5300_v5  ;;  %v6103_v5 = vld [vmem:[#allocation15 + $0x2c0] sm:$0xf] }
  0xf1   :  { %1975 = vmatpush.bf16.msrb.mxu1 %v5428_v11  ;;  %v7308_v11 = vld [vmem:[#allocation15 + $0xac] sm:$0xf0] }
  0xf2   :  { %1988 = vmatpush.bf16.msrb.mxu2 %v5556_v12  ;;  %v1707_v8 = vpop.f32.mrf.mxu0  ;;  %v5976_v12 = vor.u32 %v7344_v2, %v5975_v23  ;;  %v5832_v18 = vor.u32 %v7308_v11, %v5831_v10  ;;  %v7360_v23 = vld [vmem:[#allocation15 + $0x24c] sm:$0xf0]  ;;  %v6167_v2 = vld [vmem:[#allocation15 + $0x340] sm:$0xf] }
  0xf3   :  { %2001 = vmatpush.bf16.msrb.mxu3 %v5684_v13  ;;  %v6104_v13 = vor.u32 %v7376_v6, %v6103_v5  ;;  %v1721_v26 = vadd.f32 %v1720_v16, %v1707_v8  ;;  %v1746_v41 = vpop.f32.mrf.mxu3  ;;  %v5767_v5 = vld [vmem:[#allocation15 + $0x20] sm:$0xf]  ;;  %v7292_v6 = vld [vmem:[#allocation15 + $0x2c] sm:$0xf0] }
  0xf4   :  { %1963 = vmatpush.bf16.msrb.mxu0 %v5284_v17  ;;  %v6232_v17 = vor.u32 %v7408_v9, %v6231_v7  ;;  %v5895_v8 = vld [vmem:[#allocation15 + $0x120] sm:$0xf]  ;;  %v5912_v9 = vor.u32 %v7328_v39, %v5911_v22  ;;  %v7324_v11 = vld [vmem:[#allocation15 + $0x12c] sm:$0xf0]  ;;  %v5768_v16 = vor.u32 %v7292_v6, %v5767_v5  ;;  %v7342_v5 = vld [vmem:[#allocation15 + $0x1c4] sm:$0xf] }
  0xf5   :  { %1976 = vmatpush.bf16.msrb.mxu1 %v5412_v27  ;;  %v7404_v27 = vld [vmem:[#allocation15 + $0x3ac] sm:$0xf0]  ;;  %v5977_v6 = vld [vmem:[#allocation15 + $0x1d0] sm:$0xf0] }
  0xf6   :  { %1989 = vmatpush.bf16.msrb.mxu2 %v5540_v28  ;;  %v5815_v28 = vld [vmem:[#allocation15 + $0x80] sm:$0xf]  ;;  %v7440_v22 = vld [vmem:[#allocation15 + $0x4cc] sm:$0xf0] }
  0xf7   :  { %2002 = vmatpush.bf16.msrb.mxu3 %v5668_v29  ;;  %v7304_v29 = vld [vmem:[#allocation15 + $0x8c] sm:$0xf0]  ;;  %v1722_v52 = vpop.f32.mrf.mxu1 }
  0xf8   :  { %1964 = vmatpush.bf16.msrb.mxu0 %v5268_v35  ;;  %v7336_v35 = vld [vmem:[#allocation15 + $0x18c] sm:$0xf0]  ;;  %v5816_v40 = vor.u32 %v7304_v29, %v5815_v28  ;;  %v6007_v28 = vld [vmem:[#allocation15 + $0x200] sm:$0xf]  ;;  %v7346_v52 = vld [vmem:[#allocation15 + $0x1e4] sm:$0xf] }
  0xf9   :  { %1977 = vmatpush.bf16.msrb.mxu1 %v5396_v42  ;;  %v5944_v51 = vor.u32 %v7336_v35, %v5943_v34  ;;  %v7352_v29 = vld [vmem:[#allocation15 + $0x20c] sm:$0xf0]  ;;  %v5896_v34 = vor.u32 %v7324_v11, %v5895_v8  ;;  %v6343_v11 = vld [vmem:[#allocation15 + $0x4a0] sm:$0xf] }
  0xfa   :  { %1990 = vmatpush.bf16.msrb.mxu2 %v5524_v47  ;;  %v1733_v36 = vpop.f32.mrf.mxu2  ;;  %v1709_v42 = vpop.f32.mrf.mxu0 }
  0xfb   :  { %2003 = vmatpush.bf16.msrb.mxu3 %v5652_v48  ;;  %v1734_v33 = vadd.f32 %v1733_v36, %v1721_v26  ;;  %v5927_v48 = vld [vmem:[#allocation15 + $0x160] sm:$0xf]  ;;  %v258_v42 = vld [vmem:[#allocation6 + $0x18] sm:$0xff] }
  0xfc   :  { %1965 = vmatpush.bf16.msrb.mxu0 %v5252_v60  ;;  %v5928_v58 = vor.u32 %v7332_v49, %v5927_v48  ;;  %v5879_v26 = vld [vmem:[#allocation15 + $0x100] sm:$0xf]  ;;  %v5865_v49 = vld [vmem:[#allocation15 + $0xf0] sm:$0xf0] }
  0xfd   :  { %1978 = vmatpush.bf16.msrb.mxu1 %v5380_v59  ;;  %v1747_v46 = vadd.f32 %v1746_v41, %v1734_v33  ;;  %v6056_v59 = vor.u32 %v7364_v21, %v6055_v54  ;;  %v6135_v36 = vld [vmem:[#allocation15 + $0x300] sm:$0xf]  ;;  %v256_v33 = vld [vmem:[#allocation6 + $0x8] sm:$0xff]  ;;  %v6008_v21 = vor.u32 %v7352_v29, %v6007_v28 }
  0xfe   :  { %1991 = vmatpush.bf16.msrb.mxu2 %v5508_v63  ;;  %v1748_v63 = vpop.f32.mrf.mxu3  ;;  %v255_v41 = vld [vmem:[#allocation6] sm:$0xff] }
  0xff   :  { %2004 = vmatpush.bf16.msrb.mxu3 %v5636_v0  ;;  %1966 = vmatmul.bf16.vlgmr.msrb.gmra.mxu0 %v8459_v44  ;;  %v6071_v44 = vld [vmem:[#allocation15 + $0x280] sm:$0xf]  ;;  %v1772_v14 = vpop.f32.mrf.mxu1 }
 0x100   :  { %2970 = vmatpush.bf16.msra.mxu0 %v5864_v55  ;;  %1979 = vmatmul.bf16.vlgmr.msrb.gmra.mxu1 %v8464_v50  ;;  %v7300_v50 = vld [vmem:[#allocation15 + $0x6c] sm:$0xf0]  ;;  %v6072_v47 = vor.u32 %v7368_v32, %v6071_v44 }
 0x101   :  { %2983 = vmatpush.bf16.msra.mxu1 %v5992_v37  ;;  %1992 = vmatmul.bf16.vlgmr.msrb.gmra.mxu2 %v8485_v20  ;;  %v6216_v20 = vor.u32 %v7404_v27, %v6215_v25  ;;  %v5800_v60 = vor.u32 %v7300_v50, %v5799_v43  ;;  %v7396_v55 = vld [vmem:[#allocation15 + $0x36c] sm:$0xf0]  ;;  %v5784_v37 = vor.u32 %v7296_v57, %v5783_v56  ;;  %v6503_v43 = vld [vmem:[#allocation15 + $0x5e0] sm:$0xf] }
 0x102   :  { %2996 = vmatpush.bf16.msra.mxu2 %v6120_v1  ;;  %2005 = vmatmul.bf16.vlgmr.msrb.gmra.mxu3 %v8487_v61  ;;  %v7400_v61 = vld [vmem:[#allocation15 + $0x38c] sm:$0xf0]  ;;  %v1735_v62 = vpop.f32.mrf.mxu2  ;;  %v6184_v0 = vor.u32 %v7396_v55, %v6183_v38  ;;  %v6039_v1 = vld [vmem:[#allocation15 + $0x240] sm:$0xf] }
 0x103   :  { %3009 = vmatpush.bf16.msra.mxu3 %v6248_v3  ;;  %v6200_v53 = vor.u32 %v7400_v61, %v6199_v45  ;;  %v1759_v3 = vpop.f32.mrf.mxu0  ;;  %v6040_v10 = vor.u32 %v7360_v23, %v6039_v1  ;;  %v7288_v25 = vld [vmem:[#allocation15 + $0xc] sm:$0xf0]  ;;  %v7310_v23 = vld [vmem:[#allocation15 + $0xc4] sm:$0xf] }
 0x104   :  { %2971 = vmatpush.bf16.msra.mxu0 %v5848_v4  ;;  %v7392_v4 = vld [vmem:[#allocation15 + $0x34c] sm:$0xf0]  ;;  %v1760_v7 = vadd.f32 %v1759_v3, %v1747_v46  ;;  %v5752_v32 = vor.u32 %v7288_v25, %v5751_v19  ;;  %v7314_v46 = vld [vmem:[#allocation15 + $0xe4] sm:$0xf]  ;;  %v5833_v19 = vld [vmem:[#allocation15 + $0xb0] sm:$0xf0] }
 0x105   :  { %2984 = vmatpush.bf16.msra.mxu1 %v5976_v12  ;;  %v6023_v12 = vld [vmem:[#allocation15 + $0x220] sm:$0xf]  ;;  %v6168_v15 = vor.u32 %v7392_v4, %v6167_v2  ;;  %v7320_v27 = vld [vmem:[#allocation15 + $0x10c] sm:$0xf0]  ;;  %v5868_v63 = vor.u32 %v7314_v46, %v5865_v49  ;;  %v5849_v4 = vld [vmem:[#allocation15 + $0xd0] sm:$0xf0] }
 0x106   :  { %2997 = vmatpush.bf16.msra.mxu2 %v6104_v13  ;;  %v7356_v13 = vld [vmem:[#allocation15 + $0x22c] sm:$0xf0]  ;;  %v8511_v24 = vadd.f32 %v1772_v14, %v1760_v7  ;;  %v5880_v48 = vor.u32 %v7320_v27, %v5879_v26  ;;  %v5980_v14 = vor.u32 %v7342_v5, %v5977_v6  ;;  %v7338_v25 = vld [vmem:[#allocation15 + $0x1a4] sm:$0xf]  ;;  %v5961_v26 = vld [vmem:[#allocation15 + $0x1b0] sm:$0xf0] }
 0x107   :  { %3010 = vmatpush.bf16.msra.mxu3 %v6232_v17  ;;  %v6151_v17 = vld [vmem:[#allocation15 + $0x320] sm:$0xf]  ;;  %v6024_v35 = vor.u32 %v7356_v13, %v6023_v12  ;;  %v7384_v45 = vld [vmem:[#allocation15 + $0x30c] sm:$0xf0]  ;;  %v1798_v56 = vpop.f32.mrf.mxu3  ;;  %v1774_v62 = vpop.f32.mrf.mxu1  ;;  %v5852_v13 = vor.u32 %v7310_v23, %v5849_v4  ;;  %v5801_v49 = vld [vmem:[#allocation15 + $0x70] sm:$0xf0] }
 0x108   :  { %2972 = vmatpush.bf16.msra.mxu0 %v5832_v18  ;;  %v7388_v18 = vld [vmem:[#allocation15 + $0x32c] sm:$0xf0]  ;;  %v6136_v57 = vor.u32 %v7384_v45, %v6135_v36  ;;  %v6455_v36 = vld [vmem:[#allocation15 + $0x580] sm:$0xf]  ;;  %v5945_v45 = vld [vmem:[#allocation15 + $0x190] sm:$0xf0] }
 0x109   :  { %2985 = vmatpush.bf16.msra.mxu1 %v5960_v30  ;;  %v6375_v30 = vld [vmem:[#allocation15 + $0x4e0] sm:$0xf]  ;;  %v6152_v44 = vor.u32 %v7388_v18, %v6151_v17  ;;  %v7476_v50 = vld [vmem:[#allocation15 + $0x5ec] sm:$0xf0]  ;;  %v7306_v17 = vld [vmem:[#allocation15 + $0xa4] sm:$0xf] }
 0x10a   :  { %2998 = vmatpush.bf16.msra.mxu2 %v6088_v31  ;;  %v7444_v31 = vld [vmem:[#allocation15 + $0x4ec] sm:$0xf0]  ;;  %v5913_v23 = vld [vmem:[#allocation15 + $0x150] sm:$0xf0] }
 0x10b   :  { %3011 = vmatpush.bf16.msra.mxu3 %v6216_v20  ;;  %v8514_v20 = vstv %s8509_s30  ;;  %v6376_v61 = vor.u32 %v7444_v31, %v6375_v30  ;;  %v7472_v1 = vld [vmem:[#allocation15 + $0x5cc] sm:$0xf0]  ;;  %v6327_v30 = vld [vmem:[#allocation15 + $0x480] sm:$0xf] }
 0x10c   :  { %2973 = vmatpush.bf16.msra.mxu0 %v5816_v40  ;;  %v257_v40 = vld [vmem:[#allocation6 + $0x10] sm:$0xff]  ;;  %v263_v38 = vmul.f32 %v8514_v20, %v256_v33  ;;  %v265_v55 = vmul.f32 %v8514_v20, %v258_v42 }
 0x10d   :  { %2986 = vmatpush.bf16.msra.mxu1 %v5944_v51  ;;  %v1785_v51 = vpop.f32.mrf.mxu2  ;;  %v264_v54 = vmul.f32 %v8514_v20, %v257_v40  ;;  %v7436_v12 = vld [vmem:[#allocation15 + $0x4ac] sm:$0xf0]  ;;  %v7302_v40 = vld [vmem:[#allocation15 + $0x84] sm:$0xf] }
 0x10e   :  { %2999 = vmatpush.bf16.msra.mxu2 %v6072_v47  ;;  %v1761_v47 = vpop.f32.mrf.mxu0  ;;  %v8520_v39 = vadd.f32 %v1798_v56, %v1785_v51  ;;  %v8526_v7 = vpack.c.bf16 %v263_v38, %v263_v38  ;;  %v8528_v8 = vpack.c.bf16 %v265_v55, %v265_v55  ;;  %v6344_v28 = vor.u32 %v7436_v12, %v6343_v11  ;;  %v7432_v31 = vld [vmem:[#allocation15 + $0x48c] sm:$0xf0]  ;;  %v6439_v51 = vld [vmem:[#allocation15 + $0x560] sm:$0xf] }
 0x10f   :  { %3012 = vmatpush.bf16.msra.mxu3 %v6200_v53  ;;  %v5993_v53 = vld [vmem:[#allocation15 + $0x1f0] sm:$0xf0]  ;;  %v8524_v3 = vpack.c.bf16 %v264_v54, %v264_v54  ;;  %v1800_v27 = vpop.f32.mrf.mxu3  ;;  %v6328_v33 = vor.u32 %v7432_v31, %v6327_v30  ;;  %v7460_v47 = vld [vmem:[#allocation15 + $0x56c] sm:$0xf0]  ;;  %v6295_v55 = vld [vmem:[#allocation15 + $0x440] sm:$0xf] }
 0x110   :  { %2974 = vmatpush.bf16.msra.mxu0 %v5800_v60  ;;  %v262_v60 = vmul.f32 %v8514_v20, %v255_v41  ;;  %v7464_v41 = vld [vmem:[#allocation15 + $0x58c] sm:$0xf0]  ;;  %v6440_v38 = vor.u32 %v7460_v47, %v6439_v51  ;;  %v6263_v27 = vld [vmem:[#allocation15 + $0x400] sm:$0xf]  ;;  %v7442_v51 = vld [vmem:[#allocation15 + $0x4e4] sm:$0xf] }
 0x111   :  { %2987 = vmatpush.bf16.msra.mxu1 %v5928_v58  ;;  %v6504_v58 = vor.u32 %v7476_v50, %v6503_v43  ;;  %v6456_v42 = vor.u32 %v7464_v41, %v6455_v36  ;;  %v7428_v43 = vld [vmem:[#allocation15 + $0x46c] sm:$0xf0]  ;;  %v5753_v36 = vld [vmem:[#allocation15 + $0x10] sm:$0xf0] }
 0x112   :  { %3000 = vmatpush.bf16.msra.mxu2 %v6056_v59  ;;  %v6359_v59 = vld [vmem:[#allocation15 + $0x4c0] sm:$0xf]  ;;  %v8522_v2 = vpack.c.bf16 %v262_v60, %v262_v60  ;;  %v7424_v56 = vld [vmem:[#allocation15 + $0x44c] sm:$0xf0] }
 0x113   :  { %3013 = vmatpush.bf16.msra.mxu3 %v6184_v0  ;;  %v5996_v0 = vor.u32 %v7346_v52, %v5993_v53  ;;  %v7330_v52 = vld [vmem:[#allocation15 + $0x164] sm:$0xf]  ;;  %v5929_v53 = vld [vmem:[#allocation15 + $0x170] sm:$0xf0]  ;;  %v7456_v62 = vld [vmem:[#allocation15 + $0x54c] sm:$0xf0] }
 0x114   :  { %2975 = vmatpush.bf16.msra.mxu0 %v5784_v37  ;;  %v6487_v37 = vld [vmem:[#allocation15 + $0x5c0] sm:$0xf]  ;;  %v7420_v11 = vld [vmem:[#allocation15 + $0x42c] sm:$0xf0] }
 0x115   :  { %2988 = vmatpush.bf16.msra.mxu1 %v5912_v9  ;;  %v6360_v9 = vor.u32 %v7440_v22, %v6359_v59  ;;  %v1787_v18 = vpop.f32.mrf.mxu2  ;;  %v6423_v22 = vld [vmem:[#allocation15 + $0x540] sm:$0xf] }
 0x116   :  { %3001 = vmatpush.bf16.msra.mxu2 %v6040_v10  ;;  %v6488_v10 = vor.u32 %v7472_v1, %v6487_v37  ;;  %v5785_v37 = vld [vmem:[#allocation15 + $0x50] sm:$0xf0]  ;;  %v7326_v1 = vld [vmem:[#allocation15 + $0x144] sm:$0xf]  ;;  %v6424_v5 = vor.u32 %v7456_v62, %v6423_v22 }
 0x117   :  { %3014 = vmatpush.bf16.msra.mxu3 %v6168_v15  ;;  %v6471_v15 = vld [vmem:[#allocation15 + $0x5a0] sm:$0xf]  ;;  %v5769_v18 = vld [vmem:[#allocation15 + $0x30] sm:$0xf0] }
 0x118   :  { %2976 = vmatpush.bf16.msra.mxu0 %v5768_v16  ;;  %v7468_v16 = vld [vmem:[#allocation15 + $0x5ac] sm:$0xf0]  ;;  %v6105_v22 = vld [vmem:[#allocation15 + $0x2d0] sm:$0xf0] }
 0x119   :  { %2989 = vmatpush.bf16.msra.mxu1 %v5896_v34  ;;  %v6472_v29 = vor.u32 %v7468_v16, %v6471_v15  ;;  %v5836_v34 = vor.u32 %v7306_v17, %v5833_v19  ;;  %v7452_v15 = vld [vmem:[#allocation15 + $0x52c] sm:$0xf0]  ;;  %v7290_v16 = vld [vmem:[#allocation15 + $0x24] sm:$0xf] }
 0x11a   :  { %3002 = vmatpush.bf16.msra.mxu2 %v6024_v35  ;;  %v5964_v35 = vor.u32 %v7338_v25, %v5961_v26  ;;  %v7322_v19 = vld [vmem:[#allocation15 + $0x124] sm:$0xf]  ;;  %v5897_v25 = vld [vmem:[#allocation15 + $0x130] sm:$0xf0]  ;;  %v5772_v41 = vor.u32 %v7290_v16, %v5769_v18 }
 0x11b   :  { %3015 = vmatpush.bf16.msra.mxu3 %v6152_v44  ;;  %v5817_v44 = vld [vmem:[#allocation15 + $0x90] sm:$0xf0]  ;;  %v7434_v16 = vld [vmem:[#allocation15 + $0x4a4] sm:$0xf] }
 0x11c   :  { %2977 = vmatpush.bf16.msra.mxu0 %v5752_v32  ;;  %v7334_v32 = vld [vmem:[#allocation15 + $0x184] sm:$0xf]  ;;  %v5820_v50 = vor.u32 %v7302_v40, %v5817_v44  ;;  %v1811_v60 = vpop.f32.mrf.mxu0  ;;  %v5900_v40 = vor.u32 %v7322_v19, %v5897_v25  ;;  %v6345_v18 = vld [vmem:[#allocation15 + $0x4b0] sm:$0xf0] }
 0x11d   :  { %2990 = vmatpush.bf16.msra.mxu1 %v5880_v48  ;;  %v5948_v46 = vor.u32 %v7334_v32, %v5945_v45  ;;  %v7298_v48 = vld [vmem:[#allocation15 + $0x64] sm:$0xf]  ;;  %v1812_v54 = vadd.f32 %v1811_v60, %v8520_v39  ;;  %v1824_v59 = vpop.f32.mrf.mxu1  ;;  %v6296_v39 = vor.u32 %v7424_v56, %v6295_v55  ;;  %v5881_v32 = vld [vmem:[#allocation15 + $0x110] sm:$0xf0] }
 0x11e   :  { %3003 = vmatpush.bf16.msra.mxu2 %v6008_v21  ;;  %v7318_v44 = vld [vmem:[#allocation15 + $0x104] sm:$0xf]  ;;  %v6505_v60 = vld [vmem:[#allocation15 + $0x5f0] sm:$0xf0] }
 0x11f   :  { %3016 = vmatpush.bf16.msra.mxu3 %v6136_v57  ;;  %2978 = vmatmul.bf16.vlgmr.msra.gmra.mxu0 %v8522_v2  ;;  %v5804_v57 = vor.u32 %v7298_v48, %v5801_v49  ;;  %v259_v45 = vld [vmem:[#allocation6 + $0x20] sm:$0xff]  ;;  %v5884_v55 = vor.u32 %v7318_v44, %v5881_v32  ;;  %v6473_v25 = vld [vmem:[#allocation15 + $0x5b0] sm:$0xf0] }
 0x120   :  { %3022 = vmatpush.bf16.msrb.mxu0 %v6376_v61  ;;  %2991 = vmatmul.bf16.vlgmr.msra.gmra.mxu1 %v8526_v7  ;;  %v6311_v61 = vld [vmem:[#allocation15 + $0x460] sm:$0xf]  ;;  %v7466_v19 = vld [vmem:[#allocation15 + $0x5a4] sm:$0xf]  ;;  %v6457_v44 = vld [vmem:[#allocation15 + $0x590] sm:$0xf0] }
 0x121   :  { %3035 = vmatpush.bf16.msrb.mxu1 %v6504_v58  ;;  %3004 = vmatmul.bf16.vlgmr.msra.gmra.mxu2 %v8524_v3  ;;  %v6312_v21 = vor.u32 %v7428_v43, %v6311_v61  ;;  %v5932_v58 = vor.u32 %v7330_v52, %v5929_v53  ;;  %v6121_v61 = vld [vmem:[#allocation15 + $0x2f0] sm:$0xf0]  ;;  %v260_v43 = vld [vmem:[#allocation6 + $0x28] sm:$0xff]  ;;  %v7474_v53 = vld [vmem:[#allocation15 + $0x5e4] sm:$0xf] }
 0x122   :  { %3048 = vmatpush.bf16.msrb.mxu2 %v5868_v63  ;;  %3017 = vmatmul.bf16.vlgmr.msra.gmra.mxu3 %v8528_v8  ;;  %v7294_v63 = vld [vmem:[#allocation15 + $0x44] sm:$0xf]  ;;  %v6377_v52 = vld [vmem:[#allocation15 + $0x4f0] sm:$0xf0]  ;;  %v267_v56 = vmul.f32 %v8514_v20, %v260_v43 }
 0x123   :  { %3061 = vmatpush.bf16.msrb.mxu3 %v5996_v0  ;;  %v1825_v0 = vadd.f32 %v1824_v59, %v1812_v54  ;;  %v5788_v12 = vor.u32 %v7294_v63, %v5785_v37  ;;  %v266_v54 = vmul.f32 %v8514_v20, %v259_v45  ;;  %v7374_v59 = vld [vmem:[#allocation15 + $0x2c4] sm:$0xf]  ;;  %v6380_v62 = vor.u32 %v7442_v51, %v6377_v52  ;;  %v6233_v37 = vld [vmem:[#allocation15 + $0x3d0] sm:$0xf0] }
 0x124   :  { %3023 = vmatpush.bf16.msrb.mxu0 %v6360_v9  ;;  %v1837_v4 = vpop.f32.mrf.mxu2  ;;  %v1813_v26 = vpop.f32.mrf.mxu0  ;;  %v6508_v63 = vor.u32 %v7474_v53, %v6505_v60  ;;  %v6108_v20 = vor.u32 %v7374_v59, %v6105_v22  ;;  %v7426_v51 = vld [vmem:[#allocation15 + $0x464] sm:$0xf]  ;;  %v6441_v52 = vld [vmem:[#allocation15 + $0x570] sm:$0xf0] }
 0x125   :  { %3036 = vmatpush.bf16.msrb.mxu1 %v6488_v10  ;;  %v1838_v6 = vadd.f32 %v1837_v4, %v1825_v0  ;;  %v1850_v9 = vpop.f32.mrf.mxu3  ;;  %v6279_v10 = vld [vmem:[#allocation15 + $0x420] sm:$0xf]  ;;  %v7406_v0 = vld [vmem:[#allocation15 + $0x3c4] sm:$0xf]  ;;  %v6361_v4 = vld [vmem:[#allocation15 + $0x4d0] sm:$0xf0] }
 0x126   :  { %3049 = vmatpush.bf16.msrb.mxu2 %v5852_v13  ;;  %v5916_v13 = vor.u32 %v7326_v1, %v5913_v23  ;;  %v6280_v30 = vor.u32 %v7420_v11, %v6279_v10  ;;  %v7438_v1 = vld [vmem:[#allocation15 + $0x4c4] sm:$0xf]  ;;  %v8539_v23 = vpack.c.bf16 %v266_v54, %v266_v54  ;;  %v6089_v11 = vld [vmem:[#allocation15 + $0x2b0] sm:$0xf0] }
 0x127   :  { %3062 = vmatpush.bf16.msrb.mxu3 %v5980_v14  ;;  %v6407_v14 = vld [vmem:[#allocation15 + $0x520] sm:$0xf]  ;;  %v8535_v17 = vadd.f32 %v1850_v9, %v1838_v6  ;;  %v8541_v6 = vpack.c.bf16 %v267_v56, %v267_v56  ;;  %v6236_v9 = vor.u32 %v7406_v0, %v6233_v37  ;;  %v7370_v10 = vld [vmem:[#allocation15 + $0x2a4] sm:$0xf]  ;;  %v6169_v59 = vld [vmem:[#allocation15 + $0x350] sm:$0xf0] }
 0x128   :  { %3024 = vmatpush.bf16.msrb.mxu0 %v6344_v28  ;;  %v7416_v28 = vld [vmem:[#allocation15 + $0x40c] sm:$0xf0]  ;;  %v6408_v31 = vor.u32 %v7452_v15, %v6407_v14  ;;  %v7402_v14 = vld [vmem:[#allocation15 + $0x3a4] sm:$0xf]  ;;  %v6217_v15 = vld [vmem:[#allocation15 + $0x3b0] sm:$0xf0]  ;;  %v6092_v26 = vor.u32 %v7370_v10, %v6089_v11 }
 0x129   :  { %3037 = vmatpush.bf16.msrb.mxu1 %v6472_v29  ;;  %v6391_v29 = vld [vmem:[#allocation15 + $0x500] sm:$0xf]  ;;  %v6264_v48 = vor.u32 %v7416_v28, %v6263_v27  ;;  %v6220_v27 = vor.u32 %v7402_v14, %v6217_v15  ;;  %v7366_v28 = vld [vmem:[#allocation15 + $0x284] sm:$0xf]  ;;  %v6425_v0 = vld [vmem:[#allocation15 + $0x550] sm:$0xf0] }
 0x12a   :  { %3050 = vmatpush.bf16.msrb.mxu2 %v5836_v34  ;;  %v7448_v34 = vld [vmem:[#allocation15 + $0x50c] sm:$0xf0]  ;;  %v7422_v22 = vld [vmem:[#allocation15 + $0x444] sm:$0xf] }
 0x12b   :  { %3063 = vmatpush.bf16.msrb.mxu3 %v5964_v35  ;;  %v7286_v35 = vld [vmem:[#allocation15 + $0x4] sm:$0xf]  ;;  %v6392_v49 = vor.u32 %v7448_v34, %v6391_v29  ;;  %v6073_v29 = vld [vmem:[#allocation15 + $0x290] sm:$0xf0] }
 0x12c   :  { %3025 = vmatpush.bf16.msrb.mxu0 %v6328_v33  ;;  %v1826_v33 = vpop.f32.mrf.mxu1  ;;  %v1839_v47 = vpop.f32.mrf.mxu2  ;;  %v7398_v34 = vld [vmem:[#allocation15 + $0x384] sm:$0xf]  ;;  %v6076_v32 = vor.u32 %v7366_v28, %v6073_v29 }
 0x12d   :  { %3038 = vmatpush.bf16.msrb.mxu1 %v6456_v42  ;;  %v7378_v42 = vld [vmem:[#allocation15 + $0x2e4] sm:$0xf] }
 0x12e   :  { %3051 = vmatpush.bf16.msrb.mxu2 %v5820_v50  ;;  %v7410_v50 = vld [vmem:[#allocation15 + $0x3e4] sm:$0xf] }
 0x12f   :  { %3064 = vmatpush.bf16.msrb.mxu3 %v5948_v46  ;;  %v6249_v46 = vld [vmem:[#allocation15 + $0x3f0] sm:$0xf0]  ;;  %v7362_v33 = vld [vmem:[#allocation15 + $0x264] sm:$0xf] }
 0x130   :  { %3026 = vmatpush.bf16.msrb.mxu0 %v6312_v21  ;;  %v1852_v21 = vpop.f32.mrf.mxu3  ;;  %v7418_v14 = vld [vmem:[#allocation15 + $0x424] sm:$0xf] }
 0x131   :  { %3039 = vmatpush.bf16.msrb.mxu1 %v6440_v38  ;;  %v5756_v38 = vor.u32 %v7286_v35, %v5753_v36  ;;  %v6201_v35 = vld [vmem:[#allocation15 + $0x390] sm:$0xf0]  ;;  %v7430_v36 = vld [vmem:[#allocation15 + $0x484] sm:$0xf] }
 0x132   :  { %3052 = vmatpush.bf16.msrb.mxu2 %v5804_v57  ;;  %v6124_v57 = vor.u32 %v7378_v42, %v6121_v61  ;;  %v6204_v45 = vor.u32 %v7398_v34, %v6201_v35  ;;  %v6057_v42 = vld [vmem:[#allocation15 + $0x270] sm:$0xf0] }
 0x133   :  { %3065 = vmatpush.bf16.msrb.mxu3 %v5932_v58  ;;  %v6252_v58 = vor.u32 %v7410_v50, %v6249_v46  ;;  %v7394_v50 = vld [vmem:[#allocation15 + $0x364] sm:$0xf]  ;;  %v6185_v46 = vld [vmem:[#allocation15 + $0x370] sm:$0xf0]  ;;  %v6060_v54 = vor.u32 %v7362_v33, %v6057_v42  ;;  %v7317_v33 = vld [vmem:[#allocation15 + $0xf4] sm:$0xf0] }
 0x134   :  { %3027 = vmatpush.bf16.msrb.mxu0 %v6296_v39  ;;  %v7470_v39 = vld [vmem:[#allocation15 + $0x5c4] sm:$0xf]  ;;  %v6188_v21 = vor.u32 %v7394_v50, %v6185_v46  ;;  %v6137_v34 = vld [vmem:[#allocation15 + $0x310] sm:$0xf0]  ;;  %v5999_v42 = vld [vmem:[#allocation15 + $0x1e8] sm:$0xf] }
 0x135   :  { %3040 = vmatpush.bf16.msrb.mxu1 %v6424_v5  ;;  %v6489_v5 = vld [vmem:[#allocation15 + $0x5d0] sm:$0xf0] }
 0x136   :  { %3053 = vmatpush.bf16.msrb.mxu2 %v5788_v12  ;;  %v6364_v12 = vor.u32 %v7438_v1, %v6361_v4 }
 0x137   :  { %3066 = vmatpush.bf16.msrb.mxu3 %v5916_v13  ;;  %v6492_v13 = vor.u32 %v7470_v39, %v6489_v5  ;;  %v7354_v39 = vld [vmem:[#allocation15 + $0x224] sm:$0xf]  ;;  %v6025_v5 = vld [vmem:[#allocation15 + $0x230] sm:$0xf0] }
 0x138   :  { %3028 = vmatpush.bf16.msrb.mxu0 %v6280_v30  ;;  %v6348_v30 = vor.u32 %v7434_v16, %v6345_v18  ;;  %v6281_v16 = vld [vmem:[#allocation15 + $0x430] sm:$0xf0]  ;;  %v7450_v18 = vld [vmem:[#allocation15 + $0x524] sm:$0xf]  ;;  %v6028_v28 = vor.u32 %v7354_v39, %v6025_v5  ;;  %v7309_v39 = vld [vmem:[#allocation15 + $0xb4] sm:$0xf0] }
 0x139   :  { %3041 = vmatpush.bf16.msrb.mxu1 %v6408_v31  ;;  %v6476_v31 = vor.u32 %v7466_v19, %v6473_v25  ;;  %v6409_v19 = vld [vmem:[#allocation15 + $0x530] sm:$0xf0]  ;;  %v6284_v35 = vor.u32 %v7418_v14, %v6281_v16  ;;  %v7405_v14 = vld [vmem:[#allocation15 + $0x3b4] sm:$0xf0] }
 0x13a   :  { %3054 = vmatpush.bf16.msrb.mxu2 %v5772_v41  ;;  %v6329_v41 = vld [vmem:[#allocation15 + $0x490] sm:$0xf0] }
 0x13b   :  { %3067 = vmatpush.bf16.msrb.mxu3 %v5900_v40  ;;  %v7462_v40 = vld [vmem:[#allocation15 + $0x584] sm:$0xf]  ;;  %v6332_v61 = vor.u32 %v7430_v36, %v6329_v41  ;;  %v6412_v36 = vor.u32 %v7450_v18, %v6409_v19  ;;  %v5823_v18 = vld [vmem:[#allocation15 + $0x88] sm:$0xf]  ;;  %v7305_v19 = vld [vmem:[#allocation15 + $0x94] sm:$0xf0] }
 0x13c   :  { %3029 = vmatpush.bf16.msrb.mxu0 %v6264_v48  ;;  %v6460_v43 = vor.u32 %v7462_v40, %v6457_v44  ;;  %v1863_v47 = vpop.f32.mrf.mxu0  ;;  %v6313_v48 = vld [vmem:[#allocation15 + $0x470] sm:$0xf0]  ;;  %v7414_v41 = vld [vmem:[#allocation15 + $0x404] sm:$0xf] }
 0x13d   :  { %3042 = vmatpush.bf16.msrb.mxu1 %v6392_v49  ;;  %v7458_v49 = vld [vmem:[#allocation15 + $0x564] sm:$0xf]  ;;  %v1876_v53 = vpop.f32.mrf.mxu1  ;;  %v6316_v56 = vor.u32 %v7426_v51, %v6313_v48  ;;  %v6265_v40 = vld [vmem:[#allocation15 + $0x410] sm:$0xf0]  ;;  %v6255_v48 = vld [vmem:[#allocation15 + $0x3e8] sm:$0xf] }
 0x13e   :  { %3055 = vmatpush.bf16.msrb.mxu2 %v5756_v38  ;;  %v1877_v60 = vadd.f32 %v1876_v53, %v1863_v47  ;;  %v7358_v38 = vld [vmem:[#allocation15 + $0x244] sm:$0xf]  ;;  %v7381_v47 = vld [vmem:[#allocation15 + $0x2f4] sm:$0xf0]  ;;  %v6268_v53 = vor.u32 %v7414_v41, %v6265_v40  ;;  %v5807_v40 = vld [vmem:[#allocation15 + $0x68] sm:$0xf] }
 0x13f   :  { %3068 = vmatpush.bf16.msrb.mxu3 %v5884_v55  ;;  %3030 = vmatmul.bf16.vlgmr.msrb.gmra.mxu0 %v8539_v23  ;;  %v6041_v55 = vld [vmem:[#allocation15 + $0x250] sm:$0xf0]  ;;  %v7446_v44 = vld [vmem:[#allocation15 + $0x504] sm:$0xf] }
 0x140   :  { %3074 = vmatpush.bf16.msra.mxu0 %v6124_v57  ;;  %3043 = vmatmul.bf16.vlgmr.msrb.gmra.mxu1 %v8541_v6  ;;  %v6444_v57 = vor.u32 %v7458_v49, %v6441_v52  ;;  %v6044_v1 = vor.u32 %v7358_v38, %v6041_v55  ;;  %v7413_v49 = vld [vmem:[#allocation15 + $0x3f4] sm:$0xf0]  ;;  %v5855_v38 = vld [vmem:[#allocation15 + $0xc8] sm:$0xf] }
 0x141   :  { %3087 = vmatpush.bf16.msra.mxu1 %v6252_v58  ;;  %3056 = vmatmul.bf16.vlgmr.msrb.gmra.mxu2 %v8522_v2  ;;  %v7390_v58 = vld [vmem:[#allocation15 + $0x344] sm:$0xf]  ;;  %v7313_v55 = vld [vmem:[#allocation15 + $0xd4] sm:$0xf0] }
 0x142   :  { %3100 = vmatpush.bf16.msra.mxu2 %v6380_v62  ;;  %3069 = vmatmul.bf16.vlgmr.msrb.gmra.mxu3 %v8526_v7  ;;  %v6297_v62 = vld [vmem:[#allocation15 + $0x450] sm:$0xf0]  ;;  %v6172_v4 = vor.u32 %v7390_v58, %v6169_v59  ;;  %v5983_v58 = vld [vmem:[#allocation15 + $0x1c8] sm:$0xf]  ;;  %v7345_v59 = vld [vmem:[#allocation15 + $0x1d4] sm:$0xf0] }
 0x143   :  { %3113 = vmatpush.bf16.msra.mxu3 %v6508_v63  ;;  %v7454_v63 = vld [vmem:[#allocation15 + $0x544] sm:$0xf]  ;;  %v6300_v10 = vor.u32 %v7422_v22, %v6297_v62  ;;  %v6111_v22 = vld [vmem:[#allocation15 + $0x2c8] sm:$0xf]  ;;  %v7377_v62 = vld [vmem:[#allocation15 + $0x2d4] sm:$0xf0] }
 0x144   :  { %3075 = vmatpush.bf16.msra.mxu0 %v6108_v20  ;;  %v1889_v37 = vpop.f32.mrf.mxu2  ;;  %v6428_v11 = vor.u32 %v7454_v63, %v6425_v0  ;;  %v1865_v15 = vpop.f32.mrf.mxu0  ;;  %v6239_v63 = vld [vmem:[#allocation15 + $0x3c8] sm:$0xf]  ;;  %v7409_v0 = vld [vmem:[#allocation15 + $0x3d4] sm:$0xf0]  ;;  %v6112_v5 = vor.u32 %v7377_v62, %v6111_v22 }
 0x145   :  { %3088 = vmatpush.bf16.msra.mxu1 %v6236_v9  ;;  %v1890_v20 = vadd.f32 %v1889_v37, %v1877_v60  ;;  %v1902_v9 = vpop.f32.mrf.mxu3  ;;  %v5856_v37 = vor.u32 %v7313_v55, %v5855_v38  ;;  %v5919_v55 = vld [vmem:[#allocation15 + $0x148] sm:$0xf]  ;;  %v7393_v22 = vld [vmem:[#allocation15 + $0x354] sm:$0xf0] }
 0x146   :  { %3101 = vmatpush.bf16.msra.mxu2 %v6364_v12  ;;  %v7386_v12 = vld [vmem:[#allocation15 + $0x324] sm:$0xf] }
 0x147   :  { %3114 = vmatpush.bf16.msra.mxu3 %v6492_v13  ;;  %v6153_v13 = vld [vmem:[#allocation15 + $0x330] sm:$0xf0]  ;;  %v8547_v25 = vadd.f32 %v1902_v9, %v1890_v20  ;;  %v6240_v20 = vor.u32 %v7409_v0, %v6239_v63  ;;  %v5967_v9 = vld [vmem:[#allocation15 + $0x1a8] sm:$0xf] }
 0x148   :  { %3076 = vmatpush.bf16.msra.mxu0 %v6092_v26  ;;  %v1878_v26 = vpop.f32.mrf.mxu1  ;;  %v6156_v29 = vor.u32 %v7386_v12, %v6153_v13  ;;  %v7373_v12 = vld [vmem:[#allocation15 + $0x2b4] sm:$0xf0]  ;;  %v6223_v13 = vld [vmem:[#allocation15 + $0x3a8] sm:$0xf] }
 0x149   :  { %3089 = vmatpush.bf16.msra.mxu1 %v6220_v27  ;;  %v7350_v27 = vld [vmem:[#allocation15 + $0x204] sm:$0xf]  ;;  %v5775_v0 = vld [vmem:[#allocation15 + $0x28] sm:$0xf] }
 0x14a   :  { %3102 = vmatpush.bf16.msra.mxu2 %v6348_v30  ;;  %v6009_v30 = vld [vmem:[#allocation15 + $0x210] sm:$0xf0] }
 0x14b   :  { %3115 = vmatpush.bf16.msra.mxu3 %v6476_v31  ;;  %v7382_v31 = vld [vmem:[#allocation15 + $0x304] sm:$0xf]  ;;  %v6012_v46 = vor.u32 %v7350_v27, %v6009_v30  ;;  %v6224_v27 = vor.u32 %v7405_v14, %v6223_v13  ;;  %v6079_v30 = vld [vmem:[#allocation15 + $0x288] sm:$0xf]  ;;  %v7357_v13 = vld [vmem:[#allocation15 + $0x234] sm:$0xf0] }
 0x14c   :  { %3077 = vmatpush.bf16.msra.mxu0 %v6076_v32  ;;  %v6393_v32 = vld [vmem:[#allocation15 + $0x510] sm:$0xf0]  ;;  %v1891_v50 = vpop.f32.mrf.mxu2  ;;  %v6140_v51 = vor.u32 %v7382_v31, %v6137_v34  ;;  %v7369_v31 = vld [vmem:[#allocation15 + $0x294] sm:$0xf0]  ;;  %v6207_v34 = vld [vmem:[#allocation15 + $0x388] sm:$0xf] }
 0x14d   :  { %3090 = vmatpush.bf16.msra.mxu1 %v6204_v45  ;;  %v5871_v45 = vld [vmem:[#allocation15 + $0xe8] sm:$0xf]  ;;  %v1904_v52 = vpop.f32.mrf.mxu3  ;;  %v6396_v60 = vor.u32 %v7446_v44, %v6393_v32  ;;  %v7301_v44 = vld [vmem:[#allocation15 + $0x74] sm:$0xf0] }
 0x14e   :  { %3103 = vmatpush.bf16.msra.mxu2 %v6332_v61  ;;  %v7349_v61 = vld [vmem:[#allocation15 + $0x1f4] sm:$0xf0]  ;;  %v6159_v14 = vld [vmem:[#allocation15 + $0x328] sm:$0xf] }
 0x14f   :  { %3116 = vmatpush.bf16.msra.mxu3 %v6460_v43  ;;  %v6127_v43 = vld [vmem:[#allocation15 + $0x2e8] sm:$0xf] }
 0x150   :  { %3078 = vmatpush.bf16.msra.mxu0 %v6060_v54  ;;  %v5872_v54 = vor.u32 %v7317_v33, %v5871_v45  ;;  %v6080_v45 = vor.u32 %v7369_v31, %v6079_v30  ;;  %v6015_v31 = vld [vmem:[#allocation15 + $0x208] sm:$0xf] }
 0x151   :  { %3091 = vmatpush.bf16.msra.mxu1 %v6188_v21  ;;  %v6000_v21 = vor.u32 %v7349_v61, %v5999_v42  ;;  %v5935_v42 = vld [vmem:[#allocation15 + $0x168] sm:$0xf]  ;;  %v7333_v61 = vld [vmem:[#allocation15 + $0x174] sm:$0xf0] }
 0x152   :  { %3104 = vmatpush.bf16.msra.mxu2 %v6316_v56  ;;  %v6128_v56 = vor.u32 %v7381_v47, %v6127_v43  ;;  %v6063_v43 = vld [vmem:[#allocation15 + $0x268] sm:$0xf]  ;;  %v7397_v47 = vld [vmem:[#allocation15 + $0x374] sm:$0xf0]  ;;  %v5936_v52 = vor.u32 %v7333_v61, %v5935_v42 }
 0x153   :  { %3117 = vmatpush.bf16.msra.mxu3 %v6444_v57  ;;  %v6256_v57 = vor.u32 %v7413_v49, %v6255_v48  ;;  %v5808_v49 = vor.u32 %v7301_v44, %v5807_v40  ;;  %v7445_v40 = vld [vmem:[#allocation15 + $0x4f4] sm:$0xf0]  ;;  %v6511_v44 = vld [vmem:[#allocation15 + $0x5e8] sm:$0xf] }
 0x154   :  { %3079 = vmatpush.bf16.msra.mxu0 %v6044_v1  ;;  %v5984_v1 = vor.u32 %v7345_v59, %v5983_v58  ;;  %v7361_v58 = vld [vmem:[#allocation15 + $0x254] sm:$0xf0]  ;;  %v6175_v59 = vld [vmem:[#allocation15 + $0x348] sm:$0xf] }
 0x155   :  { %3092 = vmatpush.bf16.msra.mxu1 %v6172_v4  ;;  %v5839_v4 = vld [vmem:[#allocation15 + $0xa8] sm:$0xf] }
 0x156   :  { %3105 = vmatpush.bf16.msra.mxu2 %v6300_v10  ;;  %v7341_v10 = vld [vmem:[#allocation15 + $0x1b4] sm:$0xf0]  ;;  %v5840_v15 = vor.u32 %v7309_v39, %v5839_v4 }
 0x157   :  { %3118 = vmatpush.bf16.msra.mxu3 %v6428_v11  ;;  %v6095_v11 = vld [vmem:[#allocation15 + $0x2a8] sm:$0xf]  ;;  %v5968_v16 = vor.u32 %v7341_v10, %v5967_v9  ;;  %v7325_v9 = vld [vmem:[#allocation15 + $0x134] sm:$0xf0] }
 0x158   :  { %3080 = vmatpush.bf16.msra.mxu0 %v6028_v28  ;;  %v6096_v26 = vor.u32 %v7373_v12, %v6095_v11  ;;  %v5951_v28 = vld [vmem:[#allocation15 + $0x188] sm:$0xf] }
 0x159   :  { %3093 = vmatpush.bf16.msra.mxu1 %v6156_v29  ;;  %v7337_v29 = vld [vmem:[#allocation15 + $0x194] sm:$0xf0]  ;;  %v6031_v10 = vld [vmem:[#allocation15 + $0x228] sm:$0xf] }
 0x15a   :  { %3106 = vmatpush.bf16.msra.mxu2 %v6284_v35  ;;  %v7401_v35 = vld [vmem:[#allocation15 + $0x394] sm:$0xf0]  ;;  %v5952_v41 = vor.u32 %v7337_v29, %v5951_v28  ;;  %v6032_v29 = vor.u32 %v7357_v13, %v6031_v10  ;;  %v5969_v10 = vld [vmem:[#allocation15 + $0x1b8] sm:$0xf0] }
 0x15b   :  { %3119 = vmatpush.bf16.msra.mxu3 %v6412_v36  ;;  %v5824_v36 = vor.u32 %v7305_v19, %v5823_v18  ;;  %v6208_v33 = vor.u32 %v7401_v35, %v6207_v34  ;;  %v7321_v28 = vld [vmem:[#allocation15 + $0x114] sm:$0xf0]  ;;  %v6143_v35 = vld [vmem:[#allocation15 + $0x308] sm:$0xf] }
 0x15c   :  { %3081 = vmatpush.bf16.msra.mxu0 %v6012_v46  ;;  %v1915_v50 = vpop.f32.mrf.mxu0  ;;  %v7365_v46 = vld [vmem:[#allocation15 + $0x274] sm:$0xf0] }
 0x15d   :  { %3094 = vmatpush.bf16.msra.mxu1 %v6140_v51  ;;  %v1928_v32 = vpop.f32.mrf.mxu1  ;;  %v6191_v51 = vld [vmem:[#allocation15 + $0x368] sm:$0xf]  ;;  %v1916_v48 = vadd.f32 %v1915_v50, %v8547_v25  ;;  %v7353_v34 = vld [vmem:[#allocation15 + $0x214] sm:$0xf0]  ;;  %v7347_v50 = vld [vmem:[#allocation15 + $0x1ec] sm:$0xf] }
 0x15e   :  { %3107 = vmatpush.bf16.msra.mxu2 %v6268_v53  ;;  %v6192_v38 = vor.u32 %v7397_v47, %v6191_v51  ;;  %v6016_v47 = vor.u32 %v7353_v34, %v6015_v31 }
 0x15f   :  { %3120 = vmatpush.bf16.msra.mxu3 %v6396_v60  ;;  %3082 = vmatmul.bf16.vlgmr.msra.gmra.mxu0 %v8524_v3  ;;  %v8554_v53 = vadd.f32 %v1928_v32, %v1916_v48  ;;  %v5791_v60 = vld [vmem:[#allocation15 + $0x48] sm:$0xf]  ;;  %v7477_v32 = vld [vmem:[#allocation15 + $0x5f4] sm:$0xf0] }
 0x160   :  { %3126 = vmatpush.bf16.msrb.mxu0 %v5872_v54  ;;  %3095 = vmatmul.bf16.vlgmr.msra.gmra.mxu1 %v8528_v8  ;;  %v7297_v54 = vld [vmem:[#allocation15 + $0x54] sm:$0xf0] }
 0x161   :  { %3139 = vmatpush.bf16.msrb.mxu1 %v6000_v21  ;;  %3108 = vmatmul.bf16.vlgmr.msra.gmra.mxu2 %v8539_v23  ;;  %v6064_v21 = vor.u32 %v7365_v46, %v6063_v43  ;;  %v5792_v25 = vor.u32 %v7297_v54, %v5791_v60  ;;  %v5873_v43 = vld [vmem:[#allocation15 + $0xf8] sm:$0xf0]  ;;  %v6367_v60 = vld [vmem:[#allocation15 + $0x4c8] sm:$0xf]  ;;  %v7441_v54 = vld [vmem:[#allocation15 + $0x4d4] sm:$0xf0] }
 0x162   :  { %3152 = vmatpush.bf16.msrb.mxu2 %v6128_v56  ;;  %3121 = vmatmul.bf16.vlgmr.msra.gmra.mxu3 %v8541_v6  ;;  %v7329_v56 = vld [vmem:[#allocation15 + $0x154] sm:$0xf0]  ;;  %v6001_v46 = vld [vmem:[#allocation15 + $0x1f8] sm:$0xf0] }
 0x163   :  { %3165 = vmatpush.bf16.msrb.mxu3 %v6256_v57  ;;  %v6047_v57 = vld [vmem:[#allocation15 + $0x248] sm:$0xf]  ;;  %v5920_v63 = vor.u32 %v7329_v56, %v5919_v55  ;;  %v7473_v56 = vld [vmem:[#allocation15 + $0x5d4] sm:$0xf0] }
 0x164   :  { %3127 = vmatpush.bf16.msrb.mxu0 %v5856_v37  ;;  %v1941_v62 = vpop.f32.mrf.mxu2  ;;  %v7293_v37 = vld [vmem:[#allocation15 + $0x34] sm:$0xf0]  ;;  %v6048_v39 = vor.u32 %v7361_v58, %v6047_v57  ;;  %v1917_v12 = vpop.f32.mrf.mxu0  ;;  %v6495_v55 = vld [vmem:[#allocation15 + $0x5c8] sm:$0xf]  ;;  %v7311_v57 = vld [vmem:[#allocation15 + $0xcc] sm:$0xf] }
 0x165   :  { %3140 = vmatpush.bf16.msrb.mxu1 %v5984_v1  ;;  %v1954_v1 = vpop.f32.mrf.mxu3  ;;  %v1930_v4 = vpop.f32.mrf.mxu1  ;;  %v5776_v18 = vor.u32 %v7293_v37, %v5775_v0  ;;  %v5857_v58 = vld [vmem:[#allocation15 + $0xd8] sm:$0xf0]  ;;  %v7437_v0 = vld [vmem:[#allocation15 + $0x4b4] sm:$0xf0] }
 0x166   :  { %3153 = vmatpush.bf16.msrb.mxu2 %v6112_v5  ;;  %v6176_v5 = vor.u32 %v7393_v22, %v6175_v59  ;;  %v8556_v11 = vadd.f32 %v1954_v1, %v1941_v62  ;;  %v7343_v59 = vld [vmem:[#allocation15 + $0x1cc] sm:$0xf]  ;;  %v5985_v22 = vld [vmem:[#allocation15 + $0x1d8] sm:$0xf0]  ;;  %v6368_v62 = vor.u32 %v7441_v54, %v6367_v60  ;;  %v5860_v37 = vor.u32 %v7311_v57, %v5857_v58  ;;  %v6479_v4 = vld [vmem:[#allocation15 + $0x5a8] sm:$0xf] }
 0x167   :  { %3166 = vmatpush.bf16.msrb.mxu3 %v6240_v20  ;;  %v5903_v20 = vld [vmem:[#allocation15 + $0x128] sm:$0xf]  ;;  %v5988_v1 = vor.u32 %v7343_v59, %v5985_v22  ;;  %v5921_v57 = vld [vmem:[#allocation15 + $0x158] sm:$0xf0] }
 0x168   :  { %3128 = vmatpush.bf16.msrb.mxu0 %v5840_v15  ;;  %v7389_v15 = vld [vmem:[#allocation15 + $0x334] sm:$0xf0]  ;;  %v5904_v19 = vor.u32 %v7325_v9, %v5903_v20  ;;  %v5841_v20 = vld [vmem:[#allocation15 + $0xb8] sm:$0xf0]  ;;  %v7339_v9 = vld [vmem:[#allocation15 + $0x1ac] sm:$0xf] }
 0x169   :  { %3141 = vmatpush.bf16.msrb.mxu1 %v5968_v16  ;;  %v5759_v16 = vld [vmem:[#allocation15 + $0x8] sm:$0xf]  ;;  %v6160_v30 = vor.u32 %v7389_v15, %v6159_v14  ;;  %v7433_v15 = vld [vmem:[#allocation15 + $0x494] sm:$0xf0] }
 0x16a   :  { %3154 = vmatpush.bf16.msrb.mxu2 %v6096_v26  ;;  %v7289_v26 = vld [vmem:[#allocation15 + $0x14] sm:$0xf0]  ;;  %v6335_v14 = vld [vmem:[#allocation15 + $0x488] sm:$0xf] }
 0x16b   :  { %3167 = vmatpush.bf16.msrb.mxu3 %v6224_v27  ;;  %v5887_v27 = vld [vmem:[#allocation15 + $0x108] sm:$0xf]  ;;  %v5760_v42 = vor.u32 %v7289_v26, %v5759_v16  ;;  %v7465_v26 = vld [vmem:[#allocation15 + $0x594] sm:$0xf0]  ;;  %v6336_v31 = vor.u32 %v7433_v15, %v6335_v14  ;;  %v5905_v14 = vld [vmem:[#allocation15 + $0x138] sm:$0xf0] }
 0x16c   :  { %3129 = vmatpush.bf16.msrb.mxu0 %v5824_v36  ;;  %v7385_v36 = vld [vmem:[#allocation15 + $0x314] sm:$0xf0]  ;;  %v5888_v61 = vor.u32 %v7321_v28, %v5887_v27  ;;  %v7303_v27 = vld [vmem:[#allocation15 + $0x8c] sm:$0xf]  ;;  %v5825_v28 = vld [vmem:[#allocation15 + $0x98] sm:$0xf0] }
 0x16d   :  { %3142 = vmatpush.bf16.msrb.mxu1 %v5952_v41  ;;  %v6383_v41 = vld [vmem:[#allocation15 + $0x4e8] sm:$0xf]  ;;  %v1956_v51 = vpop.f32.mrf.mxu3  ;;  %v6144_v48 = vor.u32 %v7385_v36, %v6143_v35  ;;  %v7429_v36 = vld [vmem:[#allocation15 + $0x474] sm:$0xf0] }
 0x16e   :  { %3155 = vmatpush.bf16.msrb.mxu2 %v6080_v45  ;;  %v7315_v45 = vld [vmem:[#allocation15 + $0xec] sm:$0xf]  ;;  %v6319_v35 = vld [vmem:[#allocation15 + $0x468] sm:$0xf] }
 0x16f   :  { %3168 = vmatpush.bf16.msrb.mxu3 %v6208_v33  ;;  %v1943_v33 = vpop.f32.mrf.mxu2  ;;  %v6271_v15 = vld [vmem:[#allocation15 + $0x408] sm:$0xf] }
 0x170   :  { %3130 = vmatpush.bf16.msrb.mxu0 %v5808_v49  ;;  %v6384_v49 = vor.u32 %v7445_v40, %v6383_v41  ;;  %v5828_v40 = vor.u32 %v7303_v27, %v5825_v28  ;;  %v7299_v33 = vld [vmem:[#allocation15 + $0x6c] sm:$0xf]  ;;  %v7449_v27 = vld [vmem:[#allocation15 + $0x514] sm:$0xf0] }
 0x171   :  { %3143 = vmatpush.bf16.msrb.mxu1 %v5936_v52  ;;  %v6512_v52 = vor.u32 %v7477_v32, %v6511_v44  ;;  %v6447_v32 = vld [vmem:[#allocation15 + $0x568] sm:$0xf] }
 0x172   :  { %3156 = vmatpush.bf16.msrb.mxu2 %v6064_v21  ;;  %v5876_v21 = vor.u32 %v7315_v45, %v5873_v43  ;;  %v7461_v45 = vld [vmem:[#allocation15 + $0x574] sm:$0xf0]  ;;  %v5809_v43 = vld [vmem:[#allocation15 + $0x78] sm:$0xf0] }
 0x173   :  { %3169 = vmatpush.bf16.msrb.mxu3 %v6192_v38  ;;  %v6004_v38 = vor.u32 %v7347_v50, %v6001_v46  ;;  %v7331_v50 = vld [vmem:[#allocation15 + $0x16c] sm:$0xf]  ;;  %v5937_v46 = vld [vmem:[#allocation15 + $0x178] sm:$0xf0]  ;;  %v5812_v60 = vor.u32 %v7299_v33, %v5809_v43 }
 0x174   :  { %3131 = vmatpush.bf16.msrb.mxu0 %v5792_v25  ;;  %v6496_v25 = vor.u32 %v7473_v56, %v6495_v55  ;;  %v5940_v54 = vor.u32 %v7331_v50, %v5937_v46  ;;  %v7295_v55 = vld [vmem:[#allocation15 + $0x4c] sm:$0xf]  ;;  %v5793_v56 = vld [vmem:[#allocation15 + $0x58] sm:$0xf0] }
 0x175   :  { %3144 = vmatpush.bf16.msrb.mxu1 %v5920_v63  ;;  %v6351_v63 = vld [vmem:[#allocation15 + $0x4a8] sm:$0xf]  ;;  %v6385_v43 = vld [vmem:[#allocation15 + $0x4f8] sm:$0xf0]  ;;  %v7475_v50 = vld [vmem:[#allocation15 + $0x5ec] sm:$0xf] }
 0x176   :  { %3157 = vmatpush.bf16.msrb.mxu2 %v6048_v39  ;;  %v7469_v39 = vld [vmem:[#allocation15 + $0x5b4] sm:$0xf0]  ;;  %v6352_v12 = vor.u32 %v7437_v0, %v6351_v63  ;;  %v6287_v63 = vld [vmem:[#allocation15 + $0x428] sm:$0xf]  ;;  %v6513_v46 = vld [vmem:[#allocation15 + $0x5f8] sm:$0xf0] }
 0x177   :  { %3170 = vmatpush.bf16.msrb.mxu3 %v6176_v5  ;;  %v7307_v5 = vld [vmem:[#allocation15 + $0xac] sm:$0xf]  ;;  %v6480_v13 = vor.u32 %v7469_v39, %v6479_v4  ;;  %v7421_v0 = vld [vmem:[#allocation15 + $0x434] sm:$0xf0] }
 0x178   :  { %3132 = vmatpush.bf16.msrb.mxu0 %v5776_v18  ;;  %v5844_v16 = vor.u32 %v7307_v5, %v5841_v20  ;;  %v5972_v18 = vor.u32 %v7339_v9, %v5969_v10  ;;  %v6415_v5 = vld [vmem:[#allocation15 + $0x528] sm:$0xf]  ;;  %v7453_v20 = vld [vmem:[#allocation15 + $0x534] sm:$0xf0]  ;;  %v7291_v9 = vld [vmem:[#allocation15 + $0x2c] sm:$0xf] }
 0x179   :  { %3145 = vmatpush.bf16.msrb.mxu1 %v5904_v19  ;;  %v6463_v19 = vld [vmem:[#allocation15 + $0x588] sm:$0xf] }
 0x17a   :  { %3158 = vmatpush.bf16.msrb.mxu2 %v6032_v29  ;;  %v7335_v29 = vld [vmem:[#allocation15 + $0x18c] sm:$0xf]  ;;  %v6464_v34 = vor.u32 %v7465_v26, %v6463_v19  ;;  %v7417_v19 = vld [vmem:[#allocation15 + $0x414] sm:$0xf0]  ;;  %v6399_v26 = vld [vmem:[#allocation15 + $0x508] sm:$0xf] }
 0x17b   :  { %3171 = vmatpush.bf16.msrb.mxu3 %v6160_v30  ;;  %v5953_v30 = vld [vmem:[#allocation15 + $0x198] sm:$0xf0] }
 0x17c   :  { %3133 = vmatpush.bf16.msrb.mxu0 %v5760_v42  ;;  %v1967_v41 = vpop.f32.mrf.mxu0  ;;  %v5956_v44 = vor.u32 %v7335_v29, %v5953_v30  ;;  %v7287_v30 = vld [vmem:[#allocation15 + $0xc] sm:$0xf] }
 0x17d   :  { %3146 = vmatpush.bf16.msrb.mxu1 %v5888_v61  ;;  %v1968_v42 = vadd.f32 %v1967_v41, %v8556_v11  ;;  %v1980_v61 = vpop.f32.mrf.mxu1  ;;  %v7327_v11 = vld [vmem:[#allocation15 + $0x14c] sm:$0xf]  ;;  %v6129_v41 = vld [vmem:[#allocation15 + $0x2f8] sm:$0xf0] }
 0x17e   :  { %3159 = vmatpush.bf16.msrb.mxu2 %v6016_v47  ;;  %v6320_v47 = vor.u32 %v7429_v36, %v6319_v35  ;;  %v5924_v4 = vor.u32 %v7327_v11, %v5921_v57  ;;  %v5889_v35 = vld [vmem:[#allocation15 + $0x118] sm:$0xf0]  ;;  %v7379_v36 = vld [vmem:[#allocation15 + $0x2ec] sm:$0xf] }
 0x17f   :  { %3172 = vmatpush.bf16.msrb.mxu3 %v6144_v48  ;;  %3134 = vmatmul.bf16.vlgmr.msrb.gmra.mxu0 %v8522_v2  ;;  %v1981_v51 = vadd.f32 %v1980_v61, %v1968_v42  ;;  %v6448_v48 = vor.u32 %v7461_v45, %v6447_v32  ;;  %v6257_v32 = vld [vmem:[#allocation15 + $0x3f8] sm:$0xf0]  ;;  %v7443_v45 = vld [vmem:[#allocation15 + $0x4ec] sm:$0xf]  ;;  %v6272_v42 = vor.u32 %v7417_v19, %v6271_v15 }
 0x180   :  { %3178 = vmatpush.bf16.msra.mxu0 %v6384_v49  ;;  %3147 = vmatmul.bf16.vlgmr.msrb.gmra.mxu1 %v8526_v7  ;;  %v6303_v49 = vld [vmem:[#allocation15 + $0x448] sm:$0xf]  ;;  %v6400_v61 = vor.u32 %v7449_v27, %v6399_v26  ;;  %v6369_v11 = vld [vmem:[#allocation15 + $0x4d8] sm:$0xf0]  ;;  %v7471_v57 = vld [vmem:[#allocation15 + $0x5cc] sm:$0xf] }
 0x181   :  { %3191 = vmatpush.bf16.msra.mxu1 %v6512_v52  ;;  %3160 = vmatmul.bf16.vlgmr.msrb.gmra.mxu2 %v8524_v3  ;;  %v7425_v52 = vld [vmem:[#allocation15 + $0x454] sm:$0xf0]  ;;  %v6209_v19 = vld [vmem:[#allocation15 + $0x398] sm:$0xf0]  ;;  %v7463_v27 = vld [vmem:[#allocation15 + $0x58c] sm:$0xf] }
 0x182   :  { %3204 = vmatpush.bf16.msra.mxu2 %v5876_v21  ;;  %3173 = vmatmul.bf16.vlgmr.msrb.gmra.mxu3 %v8528_v8  ;;  %v6431_v21 = vld [vmem:[#allocation15 + $0x548] sm:$0xf]  ;;  %v6337_v26 = vld [vmem:[#allocation15 + $0x498] sm:$0xf0] }
 0x183   :  { %3217 = vmatpush.bf16.msra.mxu3 %v6004_v38  ;;  %v7457_v38 = vld [vmem:[#allocation15 + $0x554] sm:$0xf0] }
 0x184   :  { %3179 = vmatpush.bf16.msra.mxu0 %v6368_v62  ;;  %v1993_v58 = vpop.f32.mrf.mxu2  ;;  %v6304_v62 = vor.u32 %v7425_v52, %v6303_v49  ;;  %v7375_v52 = vld [vmem:[#allocation15 + $0x2cc] sm:$0xf] }
 0x185   :  { %3192 = vmatpush.bf16.msra.mxu1 %v6496_v25  ;;  %v1994_v59 = vadd.f32 %v1993_v58, %v1981_v51  ;;  %v2006_v22 = vpop.f32.mrf.mxu3  ;;  %v6432_v25 = vor.u32 %v7457_v38, %v6431_v21  ;;  %v1982_v10 = vpop.f32.mrf.mxu1  ;;  %v6516_v21 = vor.u32 %v7475_v50, %v6513_v46  ;;  %v7407_v38 = vld [vmem:[#allocation15 + $0x3cc] sm:$0xf]  ;;  %v6497_v58 = vld [vmem:[#allocation15 + $0x5d8] sm:$0xf0] }
 0x186   :  { %3205 = vmatpush.bf16.msra.mxu2 %v5860_v37  ;;  %v1969_v37 = vpop.f32.mrf.mxu0  ;;  %v7359_v46 = vld [vmem:[#allocation15 + $0x24c] sm:$0xf] }
 0x187   :  { %3218 = vmatpush.bf16.msra.mxu3 %v5988_v1  ;;  %v5796_v1 = vor.u32 %v7295_v55, %v5793_v56  ;;  %v8563_v39 = vadd.f32 %v2006_v22, %v1994_v59  ;;  %v6241_v55 = vld [vmem:[#allocation15 + $0x3d8] sm:$0xf0]  ;;  %v7439_v56 = vld [vmem:[#allocation15 + $0x4cc] sm:$0xf] }
 0x188   :  { %3180 = vmatpush.bf16.msra.mxu0 %v6352_v12  ;;  %v5777_v12 = vld [vmem:[#allocation15 + $0x38] sm:$0xf0]  ;;  %v6244_v22 = vor.u32 %v7407_v38, %v6241_v55  ;;  %v7403_v37 = vld [vmem:[#allocation15 + $0x3ac] sm:$0xf] }
 0x189   :  { %3193 = vmatpush.bf16.msra.mxu1 %v6480_v13  ;;  %v7323_v13 = vld [vmem:[#allocation15 + $0x12c] sm:$0xf]  ;;  %v5780_v28 = vor.u32 %v7291_v9, %v5777_v12  ;;  %v6481_v9 = vld [vmem:[#allocation15 + $0x5b8] sm:$0xf0] }
 0x18a   :  { %3206 = vmatpush.bf16.msra.mxu2 %v5844_v16  ;;  %v6288_v16 = vor.u32 %v7421_v0, %v6287_v63  ;;  %v5908_v29 = vor.u32 %v7323_v13, %v5905_v14  ;;  %v6372_v63 = vor.u32 %v7439_v56, %v6369_v11  ;;  %v6500_v0 = vor.u32 %v7471_v57, %v6497_v58  ;;  %v7367_v13 = vld [vmem:[#allocation15 + $0x28c] sm:$0xf]  ;;  %v6081_v14 = vld [vmem:[#allocation15 + $0x298] sm:$0xf0] }
 0x18b   :  { %3219 = vmatpush.bf16.msra.mxu3 %v5972_v18  ;;  %v6416_v18 = vor.u32 %v7453_v20, %v6415_v5  ;;  %v6353_v5 = vld [vmem:[#allocation15 + $0x4b8] sm:$0xf0]  ;;  %v7467_v20 = vld [vmem:[#allocation15 + $0x5ac] sm:$0xf] }
 0x18c   :  { %3181 = vmatpush.bf16.msra.mxu0 %v6336_v31  ;;  %v5761_v31 = vld [vmem:[#allocation15 + $0x18] sm:$0xf0]  ;;  %v7455_v56 = vld [vmem:[#allocation15 + $0x54c] sm:$0xf] }
 0x18d   :  { %3194 = vmatpush.bf16.msra.mxu1 %v6464_v34  ;;  %v7319_v34 = vld [vmem:[#allocation15 + $0x10c] sm:$0xf]  ;;  %v2008_v33 = vpop.f32.mrf.mxu3  ;;  %v5764_v51 = vor.u32 %v7287_v30, %v5761_v31  ;;  %v6084_v30 = vor.u32 %v7367_v13, %v6081_v14  ;;  %v6305_v55 = vld [vmem:[#allocation15 + $0x458] sm:$0xf0] }
 0x18e   :  { %3207 = vmatpush.bf16.msra.mxu2 %v5828_v40  ;;  %v1995_v40 = vpop.f32.mrf.mxu2  ;;  %v6433_v11 = vld [vmem:[#allocation15 + $0x558] sm:$0xf0] }
 0x18f   :  { %3220 = vmatpush.bf16.msra.mxu3 %v5956_v44  ;;  %v7411_v44 = vld [vmem:[#allocation15 + $0x3ec] sm:$0xf] }
 0x190   :  { %3182 = vmatpush.bf16.msra.mxu0 %v6320_v47  ;;  %v5892_v47 = vor.u32 %v7319_v34, %v5889_v35  ;;  %v6260_v49 = vor.u32 %v7411_v44, %v6257_v32  ;;  %v7363_v35 = vld [vmem:[#allocation15 + $0x26c] sm:$0xf]  ;;  %v6193_v32 = vld [vmem:[#allocation15 + $0x378] sm:$0xf0] }
 0x191   :  { %3195 = vmatpush.bf16.msra.mxu1 %v6448_v48  ;;  %v6132_v48 = vor.u32 %v7379_v36, %v6129_v41  ;;  %v6065_v36 = vld [vmem:[#allocation15 + $0x278] sm:$0xf0]  ;;  %v7395_v44 = vld [vmem:[#allocation15 + $0x36c] sm:$0xf] }
 0x192   :  { %3208 = vmatpush.bf16.msra.mxu2 %v5812_v60  ;;  %v6113_v60 = vld [vmem:[#allocation15 + $0x2d8] sm:$0xf0]  ;;  %v6068_v50 = vor.u32 %v7363_v35, %v6065_v36  ;;  %v6759_v35 = vld [vmem:[#allocation18 + $0x1e0] sm:$0xf]  ;;  %v7732_v36 = vld [vmem:[#allocation18 + $0x1ec] sm:$0xf0] }
 0x193   :  { %3221 = vmatpush.bf16.msra.mxu3 %v5940_v54  ;;  %v6388_v54 = vor.u32 %v7443_v45, %v6385_v43  ;;  %v6116_v59 = vor.u32 %v7375_v52, %v6113_v60  ;;  %v7427_v45 = vld [vmem:[#allocation15 + $0x46c] sm:$0xf]  ;;  %v6449_v43 = vld [vmem:[#allocation15 + $0x578] sm:$0xf0] }
 0x194   :  { %3183 = vmatpush.bf16.msra.mxu0 %v6304_v62  ;;  %v7371_v62 = vld [vmem:[#allocation15 + $0x2ac] sm:$0xf]  ;;  %v6177_v60 = vld [vmem:[#allocation15 + $0x358] sm:$0xf0] }
 0x195   :  { %3196 = vmatpush.bf16.msra.mxu1 %v6432_v25  ;;  %v6097_v25 = vld [vmem:[#allocation15 + $0x2b8] sm:$0xf0]  ;;  %v7391_v52 = vld [vmem:[#allocation15 + $0x34c] sm:$0xf] }
 0x196   :  { %3209 = vmatpush.bf16.msra.mxu2 %v5796_v1  ;;  %v6225_v1 = vld [vmem:[#allocation15 + $0x3b8] sm:$0xf0]  ;;  %v6100_v10 = vor.u32 %v7371_v62, %v6097_v25  ;;  %v7355_v62 = vld [vmem:[#allocation15 + $0x22c] sm:$0xf] }
 0x197   :  { %3222 = vmatpush.bf16.msra.mxu3 %v5924_v4  ;;  %v7435_v4 = vld [vmem:[#allocation15 + $0x4ac] sm:$0xf]  ;;  %v6228_v12 = vor.u32 %v7403_v37, %v6225_v1  ;;  %v6033_v25 = vld [vmem:[#allocation15 + $0x238] sm:$0xf0]  ;;  %v6436_v37 = vor.u32 %v7455_v56, %v6433_v11  ;;  %v6599_v56 = vld [vmem:[#allocation18 + $0xa0] sm:$0xf] }
 0x198   :  { %3184 = vmatpush.bf16.msra.mxu0 %v6288_v16  ;;  %v6356_v15 = vor.u32 %v7435_v4, %v6353_v5  ;;  %v6484_v16 = vor.u32 %v7467_v20, %v6481_v9  ;;  %v7387_v1 = vld [vmem:[#allocation15 + $0x32c] sm:$0xf]  ;;  %v6161_v4 = vld [vmem:[#allocation15 + $0x338] sm:$0xf0]  ;;  %v6036_v13 = vor.u32 %v7355_v62, %v6033_v25  ;;  %v7692_v11 = vld [vmem:[#allocation18 + $0xac] sm:$0xf0] }
 0x199   :  { %3197 = vmatpush.bf16.msra.mxu1 %v6416_v18  ;;  %v7399_v18 = vld [vmem:[#allocation15 + $0x38c] sm:$0xf]  ;;  %v6289_v20 = vld [vmem:[#allocation15 + $0x438] sm:$0xf0]  ;;  %v6164_v14 = vor.u32 %v7387_v1, %v6161_v4  ;;  %v7724_v62 = vld [vmem:[#allocation18 + $0x1ac] sm:$0xf0]  ;;  %v6600_v1 = vor.u32 %v7692_v11, %v6599_v56 }
 0x19a   :  { %3210 = vmatpush.bf16.msra.mxu2 %v5780_v28  ;;  %v6465_v28 = vld [vmem:[#allocation15 + $0x598] sm:$0xf0]  ;;  %v6212_v31 = vor.u32 %v7399_v18, %v6209_v19  ;;  %v7419_v5 = vld [vmem:[#allocation15 + $0x42c] sm:$0xf]  ;;  %v7690_v25 = vld [vmem:[#allocation18 + $0xa4] sm:$0xf] }
 0x19b   :  { %3223 = vmatpush.bf16.msra.mxu3 %v5908_v29  ;;  %v6468_v40 = vor.u32 %v7463_v27, %v6465_v28  ;;  %v7451_v9 = vld [vmem:[#allocation15 + $0x52c] sm:$0xf]  ;;  %v6145_v18 = vld [vmem:[#allocation15 + $0x318] sm:$0xf0]  ;;  %v6292_v19 = vor.u32 %v7419_v5, %v6289_v20  ;;  %v6583_v5 = vld [vmem:[#allocation18 + $0x80] sm:$0xf] }
 0x19c   :  { %3185 = vmatpush.bf16.msra.mxu0 %v6272_v42  ;;  %v2979_v29 = vpop.f32.mrf.mxu0  ;;  %v6321_v42 = vld [vmem:[#allocation15 + $0x478] sm:$0xf0]  ;;  %v7447_v28 = vld [vmem:[#allocation15 + $0x50c] sm:$0xf]  ;;  %v7688_v20 = vld [vmem:[#allocation18 + $0x8c] sm:$0xf0] }
 0x19d   :  { %3198 = vmatpush.bf16.msra.mxu1 %v6400_v61  ;;  %v2992_v34 = vpop.f32.mrf.mxu1  ;;  %v7459_v61 = vld [vmem:[#allocation15 + $0x56c] sm:$0xf]  ;;  %v6273_v27 = vld [vmem:[#allocation15 + $0x418] sm:$0xf0]  ;;  %v6663_v11 = vld [vmem:[#allocation18 + $0x120] sm:$0xf] }
 0x19e   :  { %3211 = vmatpush.bf16.msra.mxu2 %v5764_v51  ;;  %v6049_v51 = vld [vmem:[#allocation15 + $0x258] sm:$0xf0] }
 0x19f   :  { %3224 = vmatpush.bf16.msra.mxu3 %v5892_v47  ;;  %3186 = vmatmul.bf16.vlgmr.msra.gmra.mxu0 %v8539_v23  ;;  %v6324_v47 = vor.u32 %v7427_v45, %v6321_v42  ;;  %v7730_v45 = vld [vmem:[#allocation18 + $0x1e4] sm:$0xf] }
 0x1a0   :  { %3230 = vmatpush.bf16.msrb.mxu0 %v6132_v48  ;;  %3199 = vmatmul.bf16.vlgmr.msra.gmra.mxu1 %v8541_v6  ;;  %v6452_v48 = vor.u32 %v7459_v61, %v6449_v43 }
 0x1a1   :  { %3243 = vmatpush.bf16.msrb.mxu1 %v6260_v49  ;;  %3212 = vmatmul.bf16.vlgmr.msra.gmra.mxu2 %v8522_v2  ;;  %v7431_v2 = vld [vmem:[#allocation15 + $0x48c] sm:$0xf] }
 0x1a2   :  { %3256 = vmatpush.bf16.msrb.mxu2 %v6388_v54  ;;  %3225 = vmatmul.bf16.vlgmr.msra.gmra.mxu3 %v8526_v7  ;;  %v2980_v7 = vadd.f32 %v2979_v29, %v8511_v24  ;;  %v6340_v41 = vor.u32 %v7431_v2, %v6337_v26  ;;  %v6196_v24 = vor.u32 %v7395_v44, %v6193_v32  ;;  %v7423_v54 = vld [vmem:[#allocation15 + $0x44c] sm:$0xf]  ;;  %v6633_v32 = vld [vmem:[#allocation18 + $0xf0] sm:$0xf0] }
 0x1a3   :  { %3269 = vmatpush.bf16.msrb.mxu3 %v6516_v21  ;;  %v7415_v26 = vld [vmem:[#allocation15 + $0x40c] sm:$0xf] }
 0x1a4   :  { %3231 = vmatpush.bf16.msrb.mxu0 %v6116_v59  ;;  %v2993_v33 = vadd.f32 %v2992_v34, %v2980_v7  ;;  %v3005_v49 = vpop.f32.mrf.mxu2  ;;  %v2981_v57 = vpop.f32.mrf.mxu0  ;;  %v6052_v59 = vor.u32 %v7359_v46, %v6049_v51  ;;  %v6401_v7 = vld [vmem:[#allocation15 + $0x518] sm:$0xf0]  ;;  %v6276_v42 = vor.u32 %v7415_v26, %v6273_v27  ;;  %v7696_v46 = vld [vmem:[#allocation18 + $0xcc] sm:$0xf0] }
 0x1a5   :  { %3244 = vmatpush.bf16.msrb.mxu1 %v6244_v22  ;;  %v3018_v38 = vpop.f32.mrf.mxu3  ;;  %v6180_v22 = vor.u32 %v7391_v52, %v6177_v60  ;;  %v6404_v61 = vor.u32 %v7447_v28, %v6401_v7  ;;  %v7694_v52 = vld [vmem:[#allocation18 + $0xc4] sm:$0xf]  ;;  %v6617_v60 = vld [vmem:[#allocation18 + $0xd0] sm:$0xf0]  ;;  %v7684_v26 = vld [vmem:[#allocation18 + $0x6c] sm:$0xf0] }
 0x1a6   :  { %3257 = vmatpush.bf16.msrb.mxu2 %v6372_v63  ;;  %v3006_v21 = vadd.f32 %v3005_v49, %v2993_v33  ;;  %v2994_v63 = vpop.f32.mrf.mxu1  ;;  %v6761_v33 = vld [vmem:[#allocation18 + $0x1f0] sm:$0xf0]  ;;  %v7728_v49 = vld [vmem:[#allocation18 + $0x1cc] sm:$0xf0]  ;;  %v6620_v57 = vor.u32 %v7694_v52, %v6617_v60 }
 0x1a7   :  { %3270 = vmatpush.bf16.msrb.mxu3 %v6500_v0  ;;  %v6308_v0 = vor.u32 %v7423_v54, %v6305_v55  ;;  %v7726_v54 = vld [vmem:[#allocation18 + $0x1c4] sm:$0xf]  ;;  %v6601_v63 = vld [vmem:[#allocation18 + $0xb0] sm:$0xf0]  ;;  %v7716_v7 = vld [vmem:[#allocation18 + $0x16c] sm:$0xf0] }
 0x1a8   :  { %3232 = vmatpush.bf16.msrb.mxu0 %v6100_v10  ;;  %v8570_v58 = vadd.f32 %v3018_v38, %v3006_v21  ;;  %v6417_v10 = vld [vmem:[#allocation15 + $0x538] sm:$0xf0]  ;;  %v6745_v21 = vld [vmem:[#allocation18 + $0x1d0] sm:$0xf0] }
 0x1a9   :  { %3245 = vmatpush.bf16.msrb.mxu1 %v6228_v12  ;;  %v7351_v12 = vld [vmem:[#allocation15 + $0x20c] sm:$0xf]  ;;  %v6420_v2 = vor.u32 %v7451_v9, %v6417_v10  ;;  %v6604_v9 = vor.u32 %v7690_v25, %v6601_v63  ;;  %v6519_v25 = vld [vmem:[#allocation18] sm:$0xf] }
 0x1aa   :  { %3258 = vmatpush.bf16.msrb.mxu2 %v6356_v15  ;;  %v6017_v15 = vld [vmem:[#allocation15 + $0x218] sm:$0xf0] }
 0x1ab   :  { %3271 = vmatpush.bf16.msrb.mxu3 %v6484_v16  ;;  %v7383_v16 = vld [vmem:[#allocation15 + $0x30c] sm:$0xf] }
 0x1ac   :  { %3233 = vmatpush.bf16.msrb.mxu0 %v6084_v30  ;;  %v3007_v29 = vpop.f32.mrf.mxu2  ;;  %v6631_v30 = vld [vmem:[#allocation18 + $0xe0] sm:$0xf]  ;;  %v6148_v44 = vor.u32 %v7383_v16, %v6145_v18 }
 0x1ad   :  { %3246 = vmatpush.bf16.msrb.mxu1 %v6212_v31  ;;  %v7700_v31 = vld [vmem:[#allocation18 + $0xec] sm:$0xf0]  ;;  %v3020_v34 = vpop.f32.mrf.mxu3  ;;  %v6695_v29 = vld [vmem:[#allocation18 + $0x160] sm:$0xf] }
 0x1ae   :  { %3259 = vmatpush.bf16.msrb.mxu2 %v6340_v41  ;;  %v7698_v41 = vld [vmem:[#allocation18 + $0xe4] sm:$0xf]  ;;  %v6632_v43 = vor.u32 %v7700_v31, %v6631_v30  ;;  %v6569_v34 = vld [vmem:[#allocation18 + $0x70] sm:$0xf0] }
 0x1af   :  { %3272 = vmatpush.bf16.msrb.mxu3 %v6468_v40  ;;  %v6020_v40 = vor.u32 %v7351_v12, %v6017_v15  ;;  %v6636_v51 = vor.u32 %v7698_v41, %v6633_v32  ;;  %v7720_v12 = vld [vmem:[#allocation18 + $0x18c] sm:$0xf0]  ;;  %v6713_v15 = vld [vmem:[#allocation18 + $0x190] sm:$0xf0]  ;;  %v7682_v30 = vld [vmem:[#allocation18 + $0x64] sm:$0xf]  ;;  %v6696_v41 = vor.u32 %v7716_v7, %v6695_v29 }
 0x1b0   :  { %3234 = vmatpush.bf16.msrb.mxu0 %v6068_v50  ;;  %v6760_v50 = vor.u32 %v7732_v36, %v6759_v35  ;;  %v7714_v35 = vld [vmem:[#allocation18 + $0x164] sm:$0xf]  ;;  %v6697_v36 = vld [vmem:[#allocation18 + $0x170] sm:$0xf0]  ;;  %v6572_v32 = vor.u32 %v7682_v30, %v6569_v34  ;;  %v3316_v30 = vld [vmem:[#allocation13 + $0x8] sm:$0xff] }
 0x1b1   :  { %3247 = vmatpush.bf16.msrb.mxu1 %v6196_v24  ;;  %v6615_v24 = vld [vmem:[#allocation18 + $0xc0] sm:$0xf]  ;;  %v3315_v7 = vld [vmem:[#allocation13] sm:$0xff] }
 0x1b2   :  { %3260 = vmatpush.bf16.msrb.mxu2 %v6324_v47  ;;  %v6764_v47 = vor.u32 %v7730_v45, %v6761_v33  ;;  %v6616_v38 = vor.u32 %v7696_v46, %v6615_v24  ;;  %v6700_v45 = vor.u32 %v7714_v35, %v6697_v36  ;;  %v6553_v46 = vld [vmem:[#allocation18 + $0x50] sm:$0xf0]  ;;  %v6623_v36 = vld [vmem:[#allocation18 + $0xc8] sm:$0xf] }
 0x1b3   :  { %3273 = vmatpush.bf16.msrb.mxu3 %v6452_v48  ;;  %v6743_v48 = vld [vmem:[#allocation18 + $0x1c0] sm:$0xf] }
 0x1b4   :  { %3235 = vmatpush.bf16.msrb.mxu0 %v6052_v59  ;;  %v6744_v55 = vor.u32 %v7728_v49, %v6743_v48  ;;  %v6748_v59 = vor.u32 %v7726_v54, %v6745_v21  ;;  %v6535_v54 = vld [vmem:[#allocation18 + $0x20] sm:$0xf]  ;;  %v7676_v21 = vld [vmem:[#allocation18 + $0x2c] sm:$0xf0] }
 0x1b5   :  { %3248 = vmatpush.bf16.msrb.mxu1 %v6180_v22  ;;  %v6727_v22 = vld [vmem:[#allocation18 + $0x1a0] sm:$0xf]  ;;  %v6536_v63 = vor.u32 %v7676_v21, %v6535_v54  ;;  %v7725_v54 = vld [vmem:[#allocation18 + $0x1b4] sm:$0xf0]  ;;  %v7691_v21 = vld [vmem:[#allocation18 + $0xac] sm:$0xf] }
 0x1b6   :  { %3261 = vmatpush.bf16.msrb.mxu2 %v6308_v0  ;;  %v7722_v0 = vld [vmem:[#allocation18 + $0x1a4] sm:$0xf]  ;;  %v6728_v4 = vor.u32 %v7724_v62, %v6727_v22  ;;  %v6665_v62 = vld [vmem:[#allocation18 + $0x130] sm:$0xf0] }
 0x1b7   :  { %3274 = vmatpush.bf16.msrb.mxu3 %v6436_v37  ;;  %v6729_v37 = vld [vmem:[#allocation18 + $0x1b0] sm:$0xf0]  ;;  %v7706_v22 = vld [vmem:[#allocation18 + $0x124] sm:$0xf] }
 0x1b8   :  { %3236 = vmatpush.bf16.msrb.mxu0 %v6036_v13  ;;  %v6732_v10 = vor.u32 %v7722_v0, %v6729_v37  ;;  %v6585_v13 = vld [vmem:[#allocation18 + $0x90] sm:$0xf0]  ;;  %v7672_v37 = vld [vmem:[#allocation18 + $0xc] sm:$0xf0] }
 0x1b9   :  { %3249 = vmatpush.bf16.msrb.mxu1 %v6164_v14  ;;  %v7718_v14 = vld [vmem:[#allocation18 + $0x184] sm:$0xf] }
 0x1ba   :  { %3262 = vmatpush.bf16.msrb.mxu2 %v6292_v19  ;;  %v6716_v28 = vor.u32 %v7718_v14, %v6713_v15  ;;  %v7701_v14 = vld [vmem:[#allocation18 + $0xf4] sm:$0xf0] }
 0x1bb   :  { %3275 = vmatpush.bf16.msrb.mxu3 %v6420_v2  ;;  %v6567_v2 = vld [vmem:[#allocation18 + $0x60] sm:$0xf] }
 0x1bc   :  { %3237 = vmatpush.bf16.msrb.mxu0 %v6020_v40  ;;  %v3031_v16 = vpop.f32.mrf.mxu0  ;;  %v6551_v40 = vld [vmem:[#allocation18 + $0x40] sm:$0xf] }
 0x1bd   :  { %3250 = vmatpush.bf16.msrb.mxu1 %v6148_v44  ;;  %v3044_v19 = vpop.f32.mrf.mxu1  ;;  %v7680_v44 = vld [vmem:[#allocation18 + $0x4c] sm:$0xf0] }
 0x1be   :  { %3263 = vmatpush.bf16.msrb.mxu2 %v6276_v42  ;;  %v6679_v42 = vld [vmem:[#allocation18 + $0x140] sm:$0xf]  ;;  %v6552_v52 = vor.u32 %v7680_v44, %v6551_v40  ;;  %v6751_v44 = vld [vmem:[#allocation18 + $0x1c8] sm:$0xf] }
 0x1bf   :  { %3276 = vmatpush.bf16.msrb.mxu3 %v6404_v61  ;;  %3238 = vmatmul.bf16.vlgmr.msrb.gmra.mxu0 %v8524_v3  ;;  %v6711_v3 = vld [vmem:[#allocation18 + $0x180] sm:$0xf]  ;;  %v7712_v61 = vld [vmem:[#allocation18 + $0x14c] sm:$0xf0] }
 0x1c0   :  { %3703 = vmatpush.bf16.msra.mxu0 %v6632_v43  ;;  %3251 = vmatmul.bf16.vlgmr.msrb.gmra.mxu1 %v8528_v8  ;;  %v3032_v8 = vadd.f32 %v3031_v16, %v8570_v58  ;;  %v6712_v18 = vor.u32 %v7720_v12, %v6711_v3  ;;  %v6568_v58 = vor.u32 %v7684_v26, %v6567_v2  ;;  %v7678_v43 = vld [vmem:[#allocation18 + $0x44] sm:$0xf]  ;;  %v6767_v16 = vld [vmem:[#allocation18 + $0x1e8] sm:$0xf]  ;;  %v6641_v2 = vld [vmem:[#allocation18 + $0xf8] sm:$0xf0] }
 0x1c1   :  { %3716 = vmatpush.bf16.msra.mxu1 %v6760_v50  ;;  %3264 = vmatmul.bf16.vlgmr.msrb.gmra.mxu2 %v8539_v23  ;;  %v7686_v23 = vld [vmem:[#allocation18 + $0x84] sm:$0xf]  ;;  %v6680_v60 = vor.u32 %v7712_v61, %v6679_v42  ;;  %v7731_v26 = vld [vmem:[#allocation18 + $0x1ec] sm:$0xf]  ;;  %v8584_v42 = vpack.c.bf16 %v3316_v30, %v3316_v30  ;;  %v6625_v61 = vld [vmem:[#allocation18 + $0xd8] sm:$0xf0] }
 0x1c2   :  { %3729 = vmatpush.bf16.msra.mxu2 %v6636_v51  ;;  %3277 = vmatmul.bf16.vlgmr.msrb.gmra.mxu3 %v8541_v6  ;;  %v6584_v6 = vor.u32 %v7688_v20, %v6583_v5  ;;  %v6588_v27 = vor.u32 %v7686_v23, %v6585_v13  ;;  %v8577_v31 = vadd.f32 %v3044_v19, %v3032_v8  ;;  %v7710_v51 = vld [vmem:[#allocation18 + $0x144] sm:$0xf]  ;;  %v6649_v23 = vld [vmem:[#allocation18 + $0x110] sm:$0xf0]  ;;  %v6639_v13 = vld [vmem:[#allocation18 + $0xe8] sm:$0xf] }
 0x1c3   :  { %3742 = vmatpush.bf16.msra.mxu3 %v6764_v47  ;;  %v6681_v47 = vld [vmem:[#allocation18 + $0x150] sm:$0xf0]  ;;  %v6668_v20 = vor.u32 %v7706_v22, %v6665_v62  ;;  %v7702_v3 = vld [vmem:[#allocation18 + $0x104] sm:$0xf]  ;;  %v7733_v8 = vld [vmem:[#allocation18 + $0x1f4] sm:$0xf0]  ;;  %v6640_v34 = vor.u32 %v7701_v14, %v6639_v13 }
 0x1c4   :  { %3704 = vmatpush.bf16.msra.mxu0 %v6616_v38  ;;  %v3057_v33 = vpop.f32.mrf.mxu2  ;;  %v3033_v48 = vpop.f32.mrf.mxu0  ;;  %v6684_v56 = vor.u32 %v7710_v51, %v6681_v47  ;;  %v6652_v29 = vor.u32 %v7702_v3, %v6649_v23  ;;  %v6768_v35 = vor.u32 %v7733_v8, %v6767_v16  ;;  %v6607_v51 = vld [vmem:[#allocation18 + $0xa8] sm:$0xf]  ;;  %v7693_v47 = vld [vmem:[#allocation18 + $0xb4] sm:$0xf0]  ;;  %v7683_v8 = vld [vmem:[#allocation18 + $0x6c] sm:$0xf] }
 0x1c5   :  { %3717 = vmatpush.bf16.msra.mxu1 %v6744_v55  ;;  %v3058_v50 = vadd.f32 %v3057_v33, %v8535_v17  ;;  %v3070_v24 = vpop.f32.mrf.mxu3  ;;  %v3046_v38 = vpop.f32.mrf.mxu1  ;;  %v6556_v55 = vor.u32 %v7678_v43, %v6553_v46  ;;  %v7708_v17 = vld [vmem:[#allocation18 + $0x12c] sm:$0xf0]  ;;  %v8582_v33 = vpack.c.bf16 %v3315_v7, %v3315_v7  ;;  %v7727_v43 = vld [vmem:[#allocation18 + $0x1cc] sm:$0xf]  ;;  %v7685_v23 = vld [vmem:[#allocation18 + $0x74] sm:$0xf0] }
 0x1c6   :  { %3730 = vmatpush.bf16.msra.mxu2 %v6620_v57  ;;  %v7674_v57 = vld [vmem:[#allocation18 + $0x24] sm:$0xf]  ;;  %v6664_v0 = vor.u32 %v7708_v17, %v6663_v11  ;;  %v6609_v38 = vld [vmem:[#allocation18 + $0xb8] sm:$0xf0]  ;;  %v6608_v11 = vor.u32 %v7693_v47, %v6607_v51  ;;  %v7717_v16 = vld [vmem:[#allocation18 + $0x174] sm:$0xf0] }
 0x1c7   :  { %3743 = vmatpush.bf16.msra.mxu3 %v6748_v59  ;;  %v8580_v49 = vadd.f32 %v3070_v24, %v3058_v50  ;;  %v6537_v59 = vld [vmem:[#allocation18 + $0x30] sm:$0xf0]  ;;  %v6753_v50 = vld [vmem:[#allocation18 + $0x1d8] sm:$0xf0]  ;;  %v6612_v22 = vor.u32 %v7691_v21, %v6609_v38  ;;  %v7707_v38 = vld [vmem:[#allocation18 + $0x12c] sm:$0xf] }
 0x1c8   :  { %3705 = vmatpush.bf16.msra.mxu0 %v6600_v1  ;;  %v6647_v1 = vld [vmem:[#allocation18 + $0x100] sm:$0xf]  ;;  %v6540_v5 = vor.u32 %v7674_v57, %v6537_v59  ;;  %v6591_v57 = vld [vmem:[#allocation18 + $0x88] sm:$0xf]  ;;  %v7689_v59 = vld [vmem:[#allocation18 + $0x94] sm:$0xf0] }
 0x1c9   :  { %3718 = vmatpush.bf16.msra.mxu1 %v6728_v4  ;;  %v7704_v4 = vld [vmem:[#allocation18 + $0x10c] sm:$0xf0]  ;;  %v6545_v21 = vld [vmem:[#allocation18 + $0x38] sm:$0xf0] }
 0x1ca   :  { %3731 = vmatpush.bf16.msra.mxu2 %v6604_v9  ;;  %v7670_v9 = vld [vmem:[#allocation18 + $0x4] sm:$0xf]  ;;  %v6648_v19 = vor.u32 %v7704_v4, %v6647_v1  ;;  %v7719_v1 = vld [vmem:[#allocation18 + $0x18c] sm:$0xf]  ;;  %v6721_v4 = vld [vmem:[#allocation18 + $0x198] sm:$0xf0] }
 0x1cb   :  { %3744 = vmatpush.bf16.msra.mxu3 %v6732_v10  ;;  %v6521_v10 = vld [vmem:[#allocation18 + $0x10] sm:$0xf0]  ;;  %v6724_v14 = vor.u32 %v7719_v1, %v6721_v4  ;;  %v7703_v1 = vld [vmem:[#allocation18 + $0x10c] sm:$0xf]  ;;  %v6657_v4 = vld [vmem:[#allocation18 + $0x118] sm:$0xf0] }
 0x1cc   :  { %3706 = vmatpush.bf16.msra.mxu0 %v6584_v6  ;;  %v3059_v12 = vpop.f32.mrf.mxu2  ;;  %v7699_v6 = vld [vmem:[#allocation18 + $0xec] sm:$0xf] }
 0x1cd   :  { %3719 = vmatpush.bf16.msra.mxu1 %v6712_v18  ;;  %v3072_v15 = vpop.f32.mrf.mxu3  ;;  %v6520_v18 = vor.u32 %v7672_v37, %v6519_v25  ;;  %v6719_v25 = vld [vmem:[#allocation18 + $0x188] sm:$0xf]  ;;  %v6593_v37 = vld [vmem:[#allocation18 + $0x98] sm:$0xf0] }
 0x1ce   :  { %3732 = vmatpush.bf16.msra.mxu2 %v6588_v27  ;;  %v6769_v27 = vld [vmem:[#allocation18 + $0x1f8] sm:$0xf0]  ;;  %v6575_v12 = vld [vmem:[#allocation18 + $0x68] sm:$0xf] }
 0x1cf   :  { %3745 = vmatpush.bf16.msra.mxu3 %v6716_v28  ;;  %v6524_v28 = vor.u32 %v7670_v9, %v6521_v10  ;;  %v6772_v40 = vor.u32 %v7731_v26, %v6769_v27  ;;  %v6592_v9 = vor.u32 %v7689_v59, %v6591_v57  ;;  %v6703_v15 = vld [vmem:[#allocation18 + $0x168] sm:$0xf]  ;;  %v6576_v26 = vor.u32 %v7685_v23, %v6575_v12  ;;  %v7673_v57 = vld [vmem:[#allocation18 + $0x14] sm:$0xf0] }
 0x1d0   :  { %3707 = vmatpush.bf16.msra.mxu0 %v6568_v58  ;;  %v7697_v58 = vld [vmem:[#allocation18 + $0xd4] sm:$0xf0]  ;;  %v6559_v27 = vld [vmem:[#allocation18 + $0x48] sm:$0xf] }
 0x1d1   :  { %3720 = vmatpush.bf16.msra.mxu1 %v6696_v41  ;;  %v6644_v41 = vor.u32 %v7699_v6, %v6641_v2  ;;  %v6624_v24 = vor.u32 %v7697_v58, %v6623_v36  ;;  %v6705_v2 = vld [vmem:[#allocation18 + $0x178] sm:$0xf0]  ;;  %v7679_v36 = vld [vmem:[#allocation18 + $0x4c] sm:$0xf] }
 0x1d2   :  { %3733 = vmatpush.bf16.msra.mxu2 %v6572_v32  ;;  %v7729_v32 = vld [vmem:[#allocation18 + $0x1d4] sm:$0xf0] }
 0x1d3   :  { %3746 = vmatpush.bf16.msra.mxu3 %v6700_v45  ;;  %v7695_v45 = vld [vmem:[#allocation18 + $0xcc] sm:$0xf]  ;;  %v6752_v46 = vor.u32 %v7729_v32, %v6751_v44  ;;  %v6689_v32 = vld [vmem:[#allocation18 + $0x158] sm:$0xf0] }
 0x1d4   :  { %3708 = vmatpush.bf16.msra.mxu0 %v6552_v52  ;;  %v6628_v48 = vor.u32 %v7695_v45, %v6625_v61  ;;  %v6756_v52 = vor.u32 %v7727_v43, %v6753_v50  ;;  %v7711_v44 = vld [vmem:[#allocation18 + $0x14c] sm:$0xf] }
 0x1d5   :  { %3721 = vmatpush.bf16.msra.mxu1 %v6680_v60  ;;  %v6735_v60 = vld [vmem:[#allocation18 + $0x1a8] sm:$0xf] }
 0x1d6   :  { %3734 = vmatpush.bf16.msra.mxu2 %v6556_v55  ;;  %v7723_v55 = vld [vmem:[#allocation18 + $0x1ac] sm:$0xf]  ;;  %v6736_v17 = vor.u32 %v7725_v54, %v6735_v60  ;;  %v7709_v60 = vld [vmem:[#allocation18 + $0x134] sm:$0xf0] }
 0x1d7   :  { %3747 = vmatpush.bf16.msra.mxu3 %v6684_v56  ;;  %v6737_v56 = vld [vmem:[#allocation18 + $0x1b8] sm:$0xf0]  ;;  %v7675_v54 = vld [vmem:[#allocation18 + $0x2c] sm:$0xf] }
 0x1d8   :  { %3709 = vmatpush.bf16.msra.mxu0 %v6536_v63  ;;  %v6740_v62 = vor.u32 %v7723_v55, %v6737_v56  ;;  %v7721_v63 = vld [vmem:[#allocation18 + $0x194] sm:$0xf0]  ;;  %v6673_v55 = vld [vmem:[#allocation18 + $0x138] sm:$0xf0]  ;;  %v6548_v59 = vor.u32 %v7675_v54, %v6545_v21  ;;  %v7001_v54 = vld [vmem:[#allocation19 + $0x1d0] sm:$0xf0] }
 0x1d9   :  { %3722 = vmatpush.bf16.msra.mxu1 %v6664_v0  ;;  %v7687_v0 = vld [vmem:[#allocation18 + $0x8c] sm:$0xf]  ;;  %v6720_v10 = vor.u32 %v7721_v63, %v6719_v25  ;;  %v7705_v25 = vld [vmem:[#allocation18 + $0x114] sm:$0xf0] }
 0x1da   :  { %3735 = vmatpush.bf16.msra.mxu2 %v6540_v5  ;;  %v6596_v13 = vor.u32 %v7687_v0, %v6593_v37  ;;  %v7671_v63 = vld [vmem:[#allocation18 + $0xc] sm:$0xf]  ;;  %v6529_v37 = vld [vmem:[#allocation18 + $0x18] sm:$0xf0] }
 0x1db   :  { %3748 = vmatpush.bf16.msra.mxu3 %v6668_v20 }
 0x1dc   :  { %3710 = vmatpush.bf16.msra.mxu0 %v6520_v18  ;;  %v3083_v5 = vpop.f32.mrf.mxu0  ;;  %v6577_v18 = vld [vmem:[#allocation18 + $0x78] sm:$0xf0] }
 0x1dd   :  { %3723 = vmatpush.bf16.msra.mxu1 %v6648_v19  ;;  %v3084_v20 = vadd.f32 %v3083_v5, %v8580_v49  ;;  %v3096_v3 = vpop.f32.mrf.mxu1  ;;  %v7715_v19 = vld [vmem:[#allocation18 + $0x16c] sm:$0xf]  ;;  %v6704_v49 = vor.u32 %v7717_v16, %v6703_v15 }
 0x1de   :  { %3736 = vmatpush.bf16.msra.mxu2 %v6524_v28  ;;  %v7681_v28 = vld [vmem:[#allocation18 + $0x54] sm:$0xf0]  ;;  %v6708_v7 = vor.u32 %v7715_v19, %v6705_v2 }
 0x1df   :  { %3749 = vmatpush.bf16.msra.mxu3 %v6652_v29  ;;  %3711 = vmatmul.bf16.vlgmr.msra.gmra.mxu0 %v8582_v33  ;;  %v3097_v6 = vadd.f32 %v3096_v3, %v3084_v20  ;;  %v6580_v29 = vor.u32 %v7683_v8, %v6577_v18  ;;  %v6560_v43 = vor.u32 %v7681_v28, %v6559_v27 }
 0x1e0   :  { %3755 = vmatpush.bf16.msrb.mxu0 %v6640_v34  ;;  %3724 = vmatmul.bf16.vlgmr.msra.gmra.mxu1 %v8584_v42  ;;  %v6687_v34 = vld [vmem:[#allocation18 + $0x148] sm:$0xf]  ;;  %v6660_v3 = vor.u32 %v7703_v1, %v6657_v4  ;;  %v6855_v4 = vld [vmem:[#allocation19 + $0xa0] sm:$0xf] }
 0x1e1   :  { %3768 = vmatpush.bf16.msrb.mxu1 %v6768_v35  ;;  %3737 = vmatmul.bf16.vlgmr.msra.gmra.mxu2 %v8582_v33  ;;  %v7713_v35 = vld [vmem:[#allocation18 + $0x154] sm:$0xf0] }
 0x1e2   :  { %3781 = vmatpush.bf16.msrb.mxu2 %v6644_v41  ;;  %3750 = vmatmul.bf16.vlgmr.msra.gmra.mxu3 %v8584_v42  ;;  %v6688_v50 = vor.u32 %v7713_v35, %v6687_v34 }
 0x1e3   :  { %3794 = vmatpush.bf16.msrb.mxu3 %v6772_v40  ;;  %v6561_v40 = vld [vmem:[#allocation18 + $0x58] sm:$0xf0] }
 0x1e4   :  { %3756 = vmatpush.bf16.msrb.mxu0 %v6624_v24  ;;  %v3109_v30 = vpop.f32.mrf.mxu2  ;;  %v3085_v45 = vpop.f32.mrf.mxu0  ;;  %v6543_v24 = vld [vmem:[#allocation18 + $0x28] sm:$0xf]  ;;  %v6564_v47 = vor.u32 %v7679_v36, %v6561_v40  ;;  %v7794_v40 = vld [vmem:[#allocation19 + $0x1e4] sm:$0xf] }
 0x1e5   :  { %3769 = vmatpush.bf16.msrb.mxu1 %v6752_v46  ;;  %v3110_v58 = vadd.f32 %v3109_v30, %v3097_v6  ;;  %v3122_v41 = vpop.f32.mrf.mxu3  ;;  %v7677_v46 = vld [vmem:[#allocation18 + $0x34] sm:$0xf0]  ;;  %v3098_v51 = vpop.f32.mrf.mxu1  ;;  %v6887_v45 = vld [vmem:[#allocation19 + $0xe0] sm:$0xf] }
 0x1e6   :  { %3782 = vmatpush.bf16.msrb.mxu2 %v6628_v48  ;;  %v6692_v48 = vor.u32 %v7711_v44, %v6689_v32  ;;  %v6544_v56 = vor.u32 %v7677_v46, %v6543_v24  ;;  %v7017_v32 = vld [vmem:[#allocation19 + $0x1f0] sm:$0xf0]  ;;  %v7015_v46 = vld [vmem:[#allocation19 + $0x1e0] sm:$0xf]  ;;  %v7796_v51 = vld [vmem:[#allocation19 + $0x1ec] sm:$0xf0] }
 0x1e7   :  { %3795 = vmatpush.bf16.msrb.mxu3 %v6756_v52  ;;  %v8591_v61 = vadd.f32 %v3122_v41, %v3110_v58  ;;  %v6671_v52 = vld [vmem:[#allocation18 + $0x128] sm:$0xf]  ;;  %v7762_v58 = vld [vmem:[#allocation19 + $0xe4] sm:$0xf]  ;;  %v6889_v41 = vld [vmem:[#allocation19 + $0xf0] sm:$0xf0] }
 0x1e8   :  { %3757 = vmatpush.bf16.msrb.mxu0 %v6608_v11  ;;  %v6672_v11 = vor.u32 %v7709_v60, %v6671_v52  ;;  %v6892_v44 = vor.u32 %v7762_v58, %v6889_v41  ;;  %v6873_v52 = vld [vmem:[#allocation19 + $0xd0] sm:$0xf0]  ;;  %v7790_v60 = vld [vmem:[#allocation19 + $0x1c4] sm:$0xf]  ;;  %v6823_v58 = vld [vmem:[#allocation19 + $0x60] sm:$0xf] }
 0x1e9   :  { %3770 = vmatpush.bf16.msrb.mxu1 %v6736_v17  ;;  %v6527_v17 = vld [vmem:[#allocation18 + $0x8] sm:$0xf]  ;;  %v7748_v41 = vld [vmem:[#allocation19 + $0x6c] sm:$0xf0] }
 0x1ea   :  { %3783 = vmatpush.bf16.msrb.mxu2 %v6612_v22  ;;  %v6676_v22 = vor.u32 %v7707_v38, %v6673_v55  ;;  %v6528_v20 = vor.u32 %v7673_v57, %v6527_v17  ;;  %v7004_v55 = vor.u32 %v7790_v60, %v7001_v54  ;;  %v6999_v17 = vld [vmem:[#allocation19 + $0x1c0] sm:$0xf]  ;;  %v7744_v54 = vld [vmem:[#allocation19 + $0x4c] sm:$0xf0] }
 0x1eb   :  { %3796 = vmatpush.bf16.msrb.mxu3 %v6740_v62  ;;  %v6655_v62 = vld [vmem:[#allocation18 + $0x108] sm:$0xf]  ;;  %v6807_v60 = vld [vmem:[#allocation19 + $0x40] sm:$0xf] }
 0x1ec   :  { %3758 = vmatpush.bf16.msrb.mxu0 %v6592_v9  ;;  %v3111_v0 = vpop.f32.mrf.mxu2  ;;  %v6656_v9 = vor.u32 %v7705_v25, %v6655_v62  ;;  %v6857_v62 = vld [vmem:[#allocation19 + $0xb0] sm:$0xf0] }
 0x1ed   :  { %3771 = vmatpush.bf16.msrb.mxu1 %v6720_v10  ;;  %v3124_v5 = vpop.f32.mrf.mxu3  ;;  %v6532_v10 = vor.u32 %v7671_v63, %v6529_v37  ;;  %v7786_v63 = vld [vmem:[#allocation19 + $0x1a4] sm:$0xf]  ;;  %v6985_v0 = vld [vmem:[#allocation19 + $0x1b0] sm:$0xf0] }
 0x1ee   :  { %3784 = vmatpush.bf16.msrb.mxu2 %v6596_v13  ;;  %v6988_v1 = vor.u32 %v7786_v63, %v6985_v0  ;;  %v7756_v5 = vld [vmem:[#allocation19 + $0xac] sm:$0xf0] }
 0x1ef   :  { %3797 = vmatpush.bf16.msrb.mxu3 %v6724_v14  ;;  %v7740_v0 = vld [vmem:[#allocation19 + $0x2c] sm:$0xf0] }
 0x1f0   :  { %3759 = vmatpush.bf16.msrb.mxu0 %v6576_v26 }
 0x1f1   :  { %3772 = vmatpush.bf16.msrb.mxu1 %v6704_v49 }
 0x1f2   :  { %3785 = vmatpush.bf16.msrb.mxu2 %v6580_v29 }
 0x1f3   :  { %3798 = vmatpush.bf16.msrb.mxu3 %v6708_v7 }
 0x1f4   :  { %3760 = vmatpush.bf16.msrb.mxu0 %v6560_v43  ;;  %v7764_v43 = vld [vmem:[#allocation19 + $0xec] sm:$0xf0] }
 0x1f5   :  { %3773 = vmatpush.bf16.msrb.mxu1 %v6688_v50  ;;  %v7020_v50 = vor.u32 %v7794_v40, %v7017_v32  ;;  %v6888_v24 = vor.u32 %v7764_v43, %v6887_v45  ;;  %v6951_v40 = vld [vmem:[#allocation19 + $0x160] sm:$0xf]  ;;  %v7780_v32 = vld [vmem:[#allocation19 + $0x16c] sm:$0xf0]  ;;  %v7742_v45 = vld [vmem:[#allocation19 + $0x44] sm:$0xf] }
 0x1f6   :  { %3786 = vmatpush.bf16.msrb.mxu2 %v6564_v47  ;;  %v7758_v47 = vld [vmem:[#allocation19 + $0xc4] sm:$0xf]  ;;  %v6809_v43 = vld [vmem:[#allocation19 + $0x50] sm:$0xf0] }
 0x1f7   :  { %3799 = vmatpush.bf16.msrb.mxu3 %v6692_v48  ;;  %v6876_v38 = vor.u32 %v7758_v47, %v6873_v52  ;;  %v6937_v47 = vld [vmem:[#allocation19 + $0x150] sm:$0xf0] }
 0x1f8   :  { %3761 = vmatpush.bf16.msrb.mxu0 %v6544_v56  ;;  %v6871_v56 = vld [vmem:[#allocation19 + $0xc0] sm:$0xf] }
 0x1f9   :  { %3774 = vmatpush.bf16.msrb.mxu1 %v6672_v11  ;;  %v7760_v11 = vld [vmem:[#allocation19 + $0xcc] sm:$0xf0] }
 0x1fa   :  { %3787 = vmatpush.bf16.msrb.mxu2 %v6548_v59  ;;  %v6872_v57 = vor.u32 %v7760_v11, %v6871_v56  ;;  %v7792_v59 = vld [vmem:[#allocation19 + $0x1cc] sm:$0xf0]  ;;  %v7738_v11 = vld [vmem:[#allocation19 + $0x24] sm:$0xf] }
 0x1fb   :  { %3800 = vmatpush.bf16.msrb.mxu3 %v6676_v22  ;;  %v7754_v22 = vld [vmem:[#allocation19 + $0xa4] sm:$0xf]  ;;  %v7000_v25 = vor.u32 %v7792_v59, %v6999_v17  ;;  %v7776_v56 = vld [vmem:[#allocation19 + $0x14c] sm:$0xf0]  ;;  %v6793_v17 = vld [vmem:[#allocation19 + $0x30] sm:$0xf0] }
 0x1fc   :  { %3762 = vmatpush.bf16.msrb.mxu0 %v6528_v20  ;;  %v3135_v12 = vpop.f32.mrf.mxu0  ;;  %v6860_v37 = vor.u32 %v7754_v22, %v6857_v62  ;;  %v6983_v20 = vld [vmem:[#allocation19 + $0x1a0] sm:$0xf]  ;;  %v6796_v59 = vor.u32 %v7738_v11, %v6793_v17  ;;  %v7770_v22 = vld [vmem:[#allocation19 + $0x124] sm:$0xf]  ;;  %v6921_v62 = vld [vmem:[#allocation19 + $0x130] sm:$0xf0] }
 0x1fd   :  { %3775 = vmatpush.bf16.msrb.mxu1 %v6656_v9  ;;  %v3136_v23 = vadd.f32 %v3135_v12, %v8554_v53  ;;  %v3148_v13 = vpop.f32.mrf.mxu1  ;;  %v6856_v9 = vor.u32 %v7756_v5, %v6855_v4  ;;  %v6841_v12 = vld [vmem:[#allocation19 + $0x90] sm:$0xf0]  ;;  %v6924_v63 = vor.u32 %v7770_v22, %v6921_v62  ;;  %v6993_v17 = vld [vmem:[#allocation19 + $0x1b8] sm:$0xf0]  ;;  %v7757_v22 = vld [vmem:[#allocation19 + $0xb4] sm:$0xf0] }
 0x1fe   :  { %3788 = vmatpush.bf16.msrb.mxu2 %v6532_v10  ;;  %v7788_v10 = vld [vmem:[#allocation19 + $0x1ac] sm:$0xf0]  ;;  %v6991_v62 = vld [vmem:[#allocation19 + $0x1a8] sm:$0xf] }
 0x1ff   :  { %3801 = vmatpush.bf16.msrb.mxu3 %v6660_v3  ;;  %3763 = vmatmul.bf16.vlgmr.msrb.gmra.mxu0 %v8582_v33  ;;  %v3149_v14 = vadd.f32 %v3148_v13, %v3136_v23  ;;  %v7750_v3 = vld [vmem:[#allocation19 + $0x84] sm:$0xf]  ;;  %v6984_v23 = vor.u32 %v7788_v10, %v6983_v20 }
 0x200   :  { %3776 = vmatmul.bf16.vlgmr.msrb.gmra.mxu1 %v8584_v42  ;;  %4191 = vmatpush.bf16.msra.mxu0 %v6888_v24  ;;  %v6844_v13 = vor.u32 %v7750_v3, %v6841_v12  ;;  %v6952_v24 = vor.u32 %v7780_v32, %v6951_v40  ;;  %v7734_v20 = vld [vmem:[#allocation19 + $0x4] sm:$0xf]  ;;  %v6905_v12 = vld [vmem:[#allocation19 + $0x110] sm:$0xf0]  ;;  %v7797_v40 = vld [vmem:[#allocation19 + $0x1f4] sm:$0xf0] }
 0x201   :  { %3789 = vmatmul.bf16.vlgmr.msrb.gmra.mxu2 %v8582_v33  ;;  %v7766_v10 = vld [vmem:[#allocation19 + $0x104] sm:$0xf]  ;;  %v6881_v32 = vld [vmem:[#allocation19 + $0xd8] sm:$0xf0] }
 0x202   :  { %3802 = vmatmul.bf16.vlgmr.msrb.gmra.mxu3 %v8584_v42  ;;  %4217 = vmatpush.bf16.msra.mxu2 %v6892_v44  ;;  %v6824_v44 = vor.u32 %v7748_v41, %v6823_v58  ;;  %v7023_v58 = vld [vmem:[#allocation19 + $0x1e8] sm:$0xf] }
 0x203   :  { %4230 = vmatpush.bf16.msra.mxu3 %v7020_v50 }
 0x204   :  { %v3161_v15 = vpop.f32.mrf.mxu2  ;;  %v3137_v6 = vpop.f32.mrf.mxu0  ;;  %4192 = vmatpush.bf16.msra.mxu0 %v6872_v57 }
 0x205   :  { %v3162_v16 = vadd.f32 %v3161_v15, %v3149_v14  ;;  %v3174_v8 = vpop.f32.mrf.mxu3  ;;  %v3150_v19 = vpop.f32.mrf.mxu1  ;;  %v7782_v14 = vld [vmem:[#allocation19 + $0x184] sm:$0xf]  ;;  %v6969_v15 = vld [vmem:[#allocation19 + $0x190] sm:$0xf0]  ;;  %v6839_v6 = vld [vmem:[#allocation19 + $0x80] sm:$0xf] }
 0x206   :  { %4218 = vmatpush.bf16.msra.mxu2 %v6876_v38  ;;  %v6967_v19 = vld [vmem:[#allocation19 + $0x180] sm:$0xf] }
 0x207   :  { %v3175_v18 = vadd.f32 %v3174_v8, %v3162_v16  ;;  %4231 = vmatpush.bf16.msra.mxu3 %v7004_v55  ;;  %v6972_v16 = vor.u32 %v7782_v14, %v6969_v15  ;;  %v6808_v55 = vor.u32 %v7744_v54, %v6807_v60  ;;  %v6908_v15 = vor.u32 %v7766_v10, %v6905_v12  ;;  %v7793_v60 = vld [vmem:[#allocation19 + $0x1d4] sm:$0xf0]  ;;  %v6847_v10 = vld [vmem:[#allocation19 + $0x88] sm:$0xf] }
 0x208   :  { %4193 = vmatpush.bf16.msra.mxu0 %v6856_v9  ;;  %v6777_v9 = vld [vmem:[#allocation19 + $0x10] sm:$0xf0]  ;;  %v6975_v12 = vld [vmem:[#allocation19 + $0x188] sm:$0xf] }
 0x209   :  { %v6780_v3 = vor.u32 %v7734_v20, %v6777_v9  ;;  %v6977_v20 = vld [vmem:[#allocation19 + $0x198] sm:$0xf0] }
 0x20a   :  { %4219 = vmatpush.bf16.msra.mxu2 %v6860_v37  ;;  %v6919_v37 = vld [vmem:[#allocation19 + $0x120] sm:$0xf] }
 0x20b   :  { %4232 = vmatpush.bf16.msra.mxu3 %v6988_v1  ;;  %v7772_v1 = vld [vmem:[#allocation19 + $0x12c] sm:$0xf0] }
 0x20c   :  { %v3163_v2 = vpop.f32.mrf.mxu2  ;;  %v6920_v5 = vor.u32 %v7772_v1, %v6919_v37  ;;  %v6849_v37 = vld [vmem:[#allocation19 + $0x98] sm:$0xf0] }
 0x20d   :  { %v3176_v26 = vpop.f32.mrf.mxu3 }
 0x20e   :  { %4220 = vmatpush.bf16.msra.mxu2 %v6844_v13  ;;  %v6897_v13 = vld [vmem:[#allocation19 + $0xf8] sm:$0xf0] }
 0x20f   :  { %4233 = vmatpush.bf16.msra.mxu3 %v6972_v16 }
 0x21c   :  { %v3187_v49 = vpop.f32.mrf.mxu0 }
 0x21d   :  { %v3188_v27 = vadd.f32 %v3187_v49, %v3175_v18  ;;  %v3200_v28 = vpop.f32.mrf.mxu1  ;;  %v7752_v18 = vld [vmem:[#allocation19 + $0x8c] sm:$0xf0] }
 0x21e   :  { %v6840_v26 = vor.u32 %v7752_v18, %v6839_v6  ;;  %v7784_v49 = vld [vmem:[#allocation19 + $0x18c] sm:$0xf0]  ;;  %v7795_v6 = vld [vmem:[#allocation19 + $0x1ec] sm:$0xf]  ;;  %v7025_v18 = vld [vmem:[#allocation19 + $0x1f8] sm:$0xf0] }
 0x21f   :  { %v8598_v29 = vadd.f32 %v3200_v28, %v3188_v27  ;;  %v7746_v27 = vld [vmem:[#allocation19 + $0x64] sm:$0xf]  ;;  %v6825_v28 = vld [vmem:[#allocation19 + $0x70] sm:$0xf0] }
 0x220   :  { %4194 = vmatpush.bf16.msra.mxu0 %v6840_v26 }
 0x224   :  { %v3213_v7 = vpop.f32.mrf.mxu2  ;;  %v3189_v53 = vpop.f32.mrf.mxu0  ;;  %4195 = vmatpush.bf16.msra.mxu0 %v6824_v44  ;;  %v7759_v44 = vld [vmem:[#allocation19 + $0xcc] sm:$0xf] }
 0x225   :  { %v3214_v30 = vadd.f32 %v3213_v7, %v8563_v39  ;;  %v3226_v34 = vpop.f32.mrf.mxu3  ;;  %v3202_v36 = vpop.f32.mrf.mxu1  ;;  %v7016_v39 = vor.u32 %v7796_v51, %v7015_v46  ;;  %v6968_v7 = vor.u32 %v7784_v49, %v6967_v19  ;;  %v6953_v53 = vld [vmem:[#allocation19 + $0x170] sm:$0xf0]  ;;  %v6812_v46 = vor.u32 %v7742_v45, %v6809_v43  ;;  %v7774_v51 = vld [vmem:[#allocation19 + $0x144] sm:$0xf]  ;;  %v6775_v19 = vld [vmem:[#allocation19] sm:$0xf] }
 0x226   :  { %v7028_v49 = vor.u32 %v7795_v6, %v7025_v18  ;;  %v7024_v45 = vor.u32 %v7797_v40, %v7023_v58  ;;  %v6884_v43 = vor.u32 %v7759_v44, %v6881_v32  ;;  %v6833_v6 = vld [vmem:[#allocation19 + $0x78] sm:$0xf0]  ;;  %v7775_v44 = vld [vmem:[#allocation19 + $0x14c] sm:$0xf] }
 0x227   :  { %v8601_v35 = vadd.f32 %v3226_v34, %v3214_v30  ;;  %4204 = vmatpush.bf16.msra.mxu1 %v7016_v39  ;;  %v6828_v30 = vor.u32 %v7746_v27, %v6825_v28  ;;  %v7778_v34 = vld [vmem:[#allocation19 + $0x164] sm:$0xf]  ;;  %v6940_v39 = vor.u32 %v7774_v51, %v6937_v47  ;;  %v7736_v27 = vld [vmem:[#allocation19 + $0xc] sm:$0xf0]  ;;  %v6903_v28 = vld [vmem:[#allocation19 + $0x100] sm:$0xf] }
 0x228   :  { %v6956_v36 = vor.u32 %v7778_v34, %v6953_v53  ;;  %4196 = vmatpush.bf16.msra.mxu0 %v6808_v55  ;;  %v6895_v53 = vld [vmem:[#allocation19 + $0xe8] sm:$0xf]  ;;  %v7787_v55 = vld [vmem:[#allocation19 + $0x1ac] sm:$0xf]  ;;  %v6817_v58 = vld [vmem:[#allocation19 + $0x58] sm:$0xf0] }
 0x229   :  { %4221 = vmatpush.bf16.msra.mxu2 %v6828_v30  ;;  %v6776_v30 = vor.u32 %v7736_v27, %v6775_v19  ;;  %v6879_v51 = vld [vmem:[#allocation19 + $0xc8] sm:$0xf]  ;;  %v6945_v32 = vld [vmem:[#allocation19 + $0x158] sm:$0xf0] }
 0x22a   :  { %4234 = vmatpush.bf16.msra.mxu3 %v6956_v36  ;;  %v7765_v36 = vld [vmem:[#allocation19 + $0xf4] sm:$0xf0] }
 0x22b   :  { %4205 = vmatpush.bf16.msra.mxu1 %v7000_v25  ;;  %v6791_v25 = vld [vmem:[#allocation19 + $0x20] sm:$0xf]  ;;  %v6896_v41 = vor.u32 %v7765_v36, %v6895_v53  ;;  %v7781_v53 = vld [vmem:[#allocation19 + $0x174] sm:$0xf0]  ;;  %v7743_v36 = vld [vmem:[#allocation19 + $0x4c] sm:$0xf] }
 0x22c   :  { %v3215_v48 = vpop.f32.mrf.mxu2  ;;  %v6792_v4 = vor.u32 %v7740_v0, %v6791_v25  ;;  %v7751_v0 = vld [vmem:[#allocation19 + $0x8c] sm:$0xf]  ;;  %v6820_v40 = vor.u32 %v7743_v36, %v6817_v58 }
 0x22d   :  { %v3228_v21 = vpop.f32.mrf.mxu3  ;;  %4222 = vmatpush.bf16.msra.mxu2 %v6812_v46  ;;  %v7009_v46 = vld [vmem:[#allocation19 + $0x1d8] sm:$0xf0]  ;;  %v7835_v58 = vld [vmem:[#allocation22 + $0x28] sm:$0xff] }
 0x22e   :  { %v6935_v21 = vld [vmem:[#allocation19 + $0x140] sm:$0xf]  ;;  %4235 = vmatpush.bf16.msra.mxu3 %v6940_v39  ;;  %4197 = vmatpush.bf16.msra.mxu0 %v6792_v4  ;;  %v7761_v39 = vld [vmem:[#allocation19 + $0xd4] sm:$0xf0]  ;;  %v6852_v4 = vor.u32 %v7751_v0, %v6849_v37  ;;  %v7735_v0 = vld [vmem:[#allocation19 + $0xc] sm:$0xf] }
 0x22f   :  { %4206 = vmatpush.bf16.msra.mxu1 %v6984_v23  ;;  %v6936_v57 = vor.u32 %v7776_v56, %v6935_v21  ;;  %v7763_v23 = vld [vmem:[#allocation19 + $0xec] sm:$0xf]  ;;  %v6880_v54 = vor.u32 %v7761_v39, %v6879_v51  ;;  %v7777_v51 = vld [vmem:[#allocation19 + $0x154] sm:$0xf0]  ;;  %v6785_v37 = vld [vmem:[#allocation19 + $0x18] sm:$0xf0] }
 0x230   :  { %v6900_v16 = vor.u32 %v7763_v23, %v6897_v13  ;;  %v7755_v21 = vld [vmem:[#allocation19 + $0xac] sm:$0xf] }
 0x231   :  { %4223 = vmatpush.bf16.msra.mxu2 %v6796_v59  ;;  %v6863_v59 = vld [vmem:[#allocation19 + $0xa8] sm:$0xf] }
 0x232   :  { %4236 = vmatpush.bf16.msra.mxu3 %v6924_v63  ;;  %4198 = vmatpush.bf16.msra.mxu0 %v6776_v30  ;;  %v6864_v25 = vor.u32 %v7757_v22, %v6863_v59  ;;  %v7789_v63 = vld [vmem:[#allocation19 + $0x1b4] sm:$0xf0]  ;;  %v6959_v30 = vld [vmem:[#allocation19 + $0x168] sm:$0xf] }
 0x233   :  { %4207 = vmatpush.bf16.msra.mxu1 %v6968_v7  ;;  %v7768_v7 = vld [vmem:[#allocation19 + $0x10c] sm:$0xf0]  ;;  %v6992_v1 = vor.u32 %v7789_v63, %v6991_v62  ;;  %v6799_v59 = vld [vmem:[#allocation19 + $0x28] sm:$0xf]  ;;  %v7741_v22 = vld [vmem:[#allocation19 + $0x34] sm:$0xf0] }
 0x234   :  { %v6904_v34 = vor.u32 %v7768_v7, %v6903_v28  ;;  %v6831_v28 = vld [vmem:[#allocation19 + $0x68] sm:$0xf]  ;;  %v7749_v7 = vld [vmem:[#allocation19 + $0x74] sm:$0xf0] }
 0x235   :  { %4224 = vmatpush.bf16.msra.mxu2 %v6780_v3  ;;  %4199 = vmatmul.bf16.vlgmr.msra.gmra.mxu0 %v8582_v33  ;;  %v7753_v3 = vld [vmem:[#allocation19 + $0x94] sm:$0xf0]  ;;  %v6927_v62 = vld [vmem:[#allocation19 + $0x128] sm:$0xf] }
 0x236   :  { %4237 = vmatpush.bf16.msra.mxu3 %v6908_v15  ;;  %4243 = vmatpush.bf16.msrb.mxu0 %v6896_v41  ;;  %v7785_v15 = vld [vmem:[#allocation19 + $0x194] sm:$0xf0]  ;;  %v6960_v41 = vor.u32 %v7781_v53, %v6959_v30  ;;  %v7844_v30 = vld [vmem:[#allocation22 + $0x70] sm:$0xff]  ;;  %v7851_v53 = vld [vmem:[#allocation22 + $0xa8] sm:$0xff] }
 0x237   :  { %4208 = vmatpush.bf16.msra.mxu1 %v6952_v24  ;;  %v7791_v24 = vld [vmem:[#allocation19 + $0x1cc] sm:$0xf]  ;;  %v6976_v18 = vor.u32 %v7785_v15, %v6975_v12  ;;  %v7773_v63 = vld [vmem:[#allocation19 + $0x134] sm:$0xf0]  ;;  %v6911_v12 = vld [vmem:[#allocation19 + $0x108] sm:$0xf] }
 0x238   :  { %v7012_v47 = vor.u32 %v7791_v24, %v7009_v46  ;;  %4225 = vmatmul.bf16.vlgmr.msra.gmra.mxu2 %v8582_v33  ;;  %v7745_v24 = vld [vmem:[#allocation19 + $0x54] sm:$0xf0]  ;;  %v6943_v46 = vld [vmem:[#allocation19 + $0x148] sm:$0xf] }
 0x239   :  { %4269 = vmatpush.bf16.msrb.mxu2 %v6900_v16  ;;  %4238 = vmatmul.bf16.vlgmr.msra.gmra.mxu3 %v8584_v42  ;;  %v7747_v16 = vld [vmem:[#allocation19 + $0x6c] sm:$0xf] }
 0x23a   :  { %4282 = vmatpush.bf16.msrb.mxu3 %v7028_v49  ;;  %4244 = vmatpush.bf16.msrb.mxu0 %v6880_v54  ;;  %v6836_v19 = vor.u32 %v7747_v16, %v6833_v6  ;;  %v6961_v49 = vld [vmem:[#allocation19 + $0x178] sm:$0xf0]  ;;  %v7739_v54 = vld [vmem:[#allocation19 + $0x2c] sm:$0xf] }
 0x23b   :  { %4209 = vmatpush.bf16.msra.mxu1 %v6936_v57  ;;  %v6996_v57 = vor.u32 %v7787_v55, %v6993_v17  ;;  %v6929_v17 = vld [vmem:[#allocation19 + $0x138] sm:$0xf0] }
 0x23c   :  { %v8603_v8 = vpop.f32.mrf.mxu0 }
 0x23d   :  { %v8605_v2 = vpop.f32.mrf.mxu1  ;;  %4270 = vmatpush.bf16.msrb.mxu2 %v6884_v43  ;;  %v6948_v43 = vor.u32 %v7775_v44, %v6945_v32  ;;  %v3240_v36 = vadd.f32 %v8603_v8, %v8601_v35  ;;  %v7859_v44 = vld [vmem:[#allocation22 + $0xe8] sm:$0xff] }
 0x23e   :  { %4283 = vmatpush.bf16.msrb.mxu3 %v7012_v47  ;;  %4245 = vmatpush.bf16.msrb.mxu0 %v6864_v25  ;;  %v6800_v25 = vor.u32 %v7741_v22, %v6799_v59  ;;  %v7834_v59 = vld [vmem:[#allocation22 + $0x20] sm:$0xff] }
 0x23f   :  { %4210 = vmatpush.bf16.msra.mxu1 %v6920_v5  ;;  %v7783_v5 = vld [vmem:[#allocation19 + $0x18c] sm:$0xf]  ;;  %v3253_v32 = vadd.f32 %v8605_v2, %v3240_v36  ;;  %v7842_v22 = vld [vmem:[#allocation22 + $0x60] sm:$0xff]  ;;  %v7813_v36 = vld [vmem:[#allocation21 + $0x78] sm:$0xff] }
 0x240   :  { %v6980_v9 = vor.u32 %v7783_v5, %v6977_v20  ;;  %v7767_v5 = vld [vmem:[#allocation19 + $0x10c] sm:$0xf]  ;;  %v6913_v20 = vld [vmem:[#allocation19 + $0x118] sm:$0xf0] }
 0x242   :  { %4284 = vmatpush.bf16.msrb.mxu3 %v6996_v57 }
 0x243   :  { %4211 = vmatpush.bf16.msra.mxu1 %v6904_v34  ;;  %v6832_v34 = vor.u32 %v7749_v7, %v6831_v28  ;;  %v7852_v28 = vld [vmem:[#allocation22 + $0xb0] sm:$0xff] }
 0x244   :  { %v8607_v50 = vpop.f32.mrf.mxu2  ;;  %v3241_v52 = vpop.f32.mrf.mxu0  ;;  %v7836_v7 = vld [vmem:[#allocation22 + $0x30] sm:$0xff] }
 0x245   :  { %v8609_v48 = vpop.f32.mrf.mxu3  ;;  %v3254_v38 = vpop.f32.mrf.mxu1  ;;  %v7007_v52 = vld [vmem:[#allocation19 + $0x1c8] sm:$0xf]  ;;  %v3266_v35 = vadd.f32 %v8607_v50, %v3253_v32  ;;  %v7812_v32 = vld [vmem:[#allocation21 + $0x70] sm:$0xff] }
 0x246   :  { %v6865_v38 = vld [vmem:[#allocation19 + $0xb8] sm:$0xf0]  ;;  %v7008_v56 = vor.u32 %v7793_v60, %v7007_v52  ;;  %4212 = vmatmul.bf16.vlgmr.msra.gmra.mxu1 %v8584_v42  ;;  %4285 = vmatpush.bf16.msrb.mxu3 %v6980_v9  ;;  %v6944_v60 = vor.u32 %v7777_v51, %v6943_v46  ;;  %v6783_v9 = vld [vmem:[#allocation19 + $0x8] sm:$0xf] }
 0x247   :  { %4256 = vmatpush.bf16.msrb.mxu1 %v7024_v45  ;;  %v6868_v11 = vor.u32 %v7755_v21, %v6865_v38  ;;  %v6815_v45 = vld [vmem:[#allocation19 + $0x48] sm:$0xf]  ;;  %v6801_v21 = vld [vmem:[#allocation19 + $0x38] sm:$0xf0]  ;;  %v7771_v38 = vld [vmem:[#allocation19 + $0x12c] sm:$0xf]  ;;  %v3279_v50 = vadd.f32 %v8609_v48, %v3266_v35 }
 0x248   :  { %v6816_v52 = vor.u32 %v7745_v24, %v6815_v45  ;;  %v6932_v57 = vor.u32 %v7771_v38, %v6929_v17  ;;  %v7828_v35 = vld [vmem:[#allocation21 + $0xf0] sm:$0xff] }
 0x249   :  { %4271 = vmatpush.bf16.msrb.mxu2 %v6868_v11  ;;  %v6804_v11 = vor.u32 %v7739_v54, %v6801_v21 }
 0x24b   :  { %4257 = vmatpush.bf16.msrb.mxu1 %v7008_v56 }
 0x24c   :  { %v3267_v14 = vpop.f32.mrf.mxu2 }
 0x24d   :  { %v3280_v26 = vpop.f32.mrf.mxu3  ;;  %4272 = vmatpush.bf16.msrb.mxu2 %v6852_v4  ;;  %v6848_v14 = vor.u32 %v7753_v3, %v6847_v10  ;;  %v6788_v4 = vor.u32 %v7735_v0, %v6785_v37  ;;  %v6916_v10 = vor.u32 %v7767_v5, %v6913_v20  ;;  %v7737_v3 = vld [vmem:[#allocation19 + $0x14] sm:$0xf0] }
 0x24e   :  { %v7779_v26 = vld [vmem:[#allocation19 + $0x16c] sm:$0xf]  ;;  %v6784_v6 = vor.u32 %v7737_v3, %v6783_v9  ;;  %v7833_v37 = vld [vmem:[#allocation22 + $0x18] sm:$0xff]  ;;  %v7840_v3 = vld [vmem:[#allocation22 + $0x50] sm:$0xff] }
 0x24f   :  { %4258 = vmatpush.bf16.msrb.mxu1 %v6992_v1  ;;  %4246 = vmatpush.bf16.msrb.mxu0 %v6848_v14  ;;  %v6964_v27 = vor.u32 %v7779_v26, %v6961_v49  ;;  %v6928_v1 = vor.u32 %v7773_v63, %v6927_v62  ;;  %v7769_v14 = vld [vmem:[#allocation19 + $0x114] sm:$0xf0]  ;;  %v7850_v62 = vld [vmem:[#allocation22 + $0xa0] sm:$0xff] }
 0x250   :  { %v7837_v26 = vld [vmem:[#allocation22 + $0x38] sm:$0xff] }
 0x251   :  { %4273 = vmatpush.bf16.msrb.mxu2 %v6836_v19  ;;  %4286 = vmatpush.bf16.msrb.mxu3 %v6964_v27  ;;  %v7853_v19 = vld [vmem:[#allocation22 + $0xb8] sm:$0xff] }
 0x252   :  { %v7845_v49 = vld [vmem:[#allocation22 + $0x78] sm:$0xff] }
 0x253   :  { %4259 = vmatpush.bf16.msrb.mxu1 %v6976_v18  ;;  %4247 = vmatpush.bf16.msrb.mxu0 %v6832_v34  ;;  %v6912_v18 = vor.u32 %v7769_v14, %v6911_v12  ;;  %v7861_v27 = vld [vmem:[#allocation22 + $0xf8] sm:$0xff]  ;;  %v7860_v34 = vld [vmem:[#allocation22 + $0xf0] sm:$0xff] }
 0x254   :  { %v7857_v9 = vld [vmem:[#allocation22 + $0xd8] sm:$0xff]  ;;  %v7848_v12 = vld [vmem:[#allocation22 + $0x90] sm:$0xff] }
 0x255   :  { %4274 = vmatpush.bf16.msrb.mxu2 %v6820_v40  ;;  %4287 = vmatpush.bf16.msrb.mxu3 %v6948_v43  ;;  %v3297_v40 = vld [vmem:[%s8704_s9] sm:$0xf]  ;;  %v7856_v14 = vld [vmem:[#allocation22 + $0xd0] sm:$0xff] }
 0x256   :  { %v3301_v45 = vperm.slane %v3297_v40, 2  ;;  %v3302_v54 = vperm.slane %v3297_v40, 3 }
 0x257   :  { %4260 = vmatpush.bf16.msrb.mxu1 %v6960_v41  ;;  %4248 = vmatpush.bf16.msrb.mxu0 %v6816_v52  ;;  %v7843_v41 = vld [vmem:[#allocation22 + $0x68] sm:$0xff] }
 0x259   :  { %4275 = vmatpush.bf16.msrb.mxu2 %v6804_v11  ;;  %4288 = vmatpush.bf16.msrb.mxu3 %v6932_v57 }
 0x25b   :  { %4261 = vmatpush.bf16.msrb.mxu1 %v6944_v60  ;;  %4249 = vmatpush.bf16.msrb.mxu0 %v6800_v25  ;;  %v8645_v60 = vadd.f32 %v3301_v45, %v8598_v29  ;;  %v7858_v25 = vld [vmem:[#allocation22 + $0xe0] sm:$0xff] }
 0x25c   :  { %v8615_v23 = vpop.f32.mrf.mxu0 }
 0x25d   :  { %v8617_v13 = vpop.f32.mrf.mxu1  ;;  %4276 = vmatpush.bf16.msrb.mxu2 %v6788_v4  ;;  %4289 = vmatpush.bf16.msrb.mxu3 %v6916_v10  ;;  %v7849_v4 = vld [vmem:[#allocation22 + $0x98] sm:$0xff]  ;;  %v7832_v10 = vld [vmem:[#allocation22 + $0x10] sm:$0xff] }
 0x25e   :  { %v3726_v51 = vadd.f32 %v8617_v13, %v8615_v23 }
 0x25f   :  { %4262 = vmatpush.bf16.msrb.mxu1 %v6928_v1  ;;  %4250 = vmatpush.bf16.msrb.mxu0 %v6784_v6  ;;  %v7841_v1 = vld [vmem:[#allocation22 + $0x58] sm:$0xff]  ;;  %v7831_v6 = vld [vmem:[#allocation22 + $0x8] sm:$0xff] }
 0x260   :  { %4277 = vmatmul.bf16.vlgmr.msrb.gmra.mxu2 %v8582_v33  ;;  %4290 = vmatmul.bf16.vlgmr.msrb.gmra.mxu3 %v8584_v42 }
 0x261   :  { %4678 = vmatpush.bf16.msra.mxu2 %v7853_v19  ;;  %4691 = vmatpush.bf16.msra.mxu3 %v7861_v27  ;;  %v7847_v19 = vld [vmem:[#allocation22 + $0x88] sm:$0xff] }
 0x262   :  { %4251 = vmatmul.bf16.vlgmr.msrb.gmra.mxu0 %v8582_v33  ;;  %v3300_v33 = vperm.slane %v3297_v40, 1  ;;  %v7855_v27 = vld [vmem:[#allocation22 + $0xc8] sm:$0xff] }
 0x263   :  { %4263 = vmatpush.bf16.msrb.mxu1 %v6912_v18  ;;  %4652 = vmatpush.bf16.msra.mxu0 %v7837_v26  ;;  %v7839_v18 = vld [vmem:[#allocation22 + $0x48] sm:$0xff] }
 0x264   :  { %v8619_v47 = vpop.f32.mrf.mxu2  ;;  %v3714_v55 = vpop.f32.mrf.mxu0  ;;  %v8637_v46 = vadd.f32 %v3300_v33, %v8591_v61  ;;  %v7804_v33 = vld [vmem:[#allocation21 + $0x30] sm:$0xff] }
 0x265   :  { %v8621_v39 = vpop.f32.mrf.mxu3  ;;  %v3727_v56 = vpop.f32.mrf.mxu1  ;;  %4679 = vmatpush.bf16.msra.mxu2 %v7852_v28  ;;  %4692 = vmatpush.bf16.msra.mxu3 %v7860_v34  ;;  %v8651_v55 = vadd.f32 %v3302_v54, %v3279_v50  ;;  %v7830_v28 = vld [vmem:[#allocation22] sm:$0xff] }
 0x266   :  { %4264 = vmatmul.bf16.vlgmr.msrb.gmra.mxu1 %v8584_v42  ;;  %v3299_v42 = vperm.slane %v3297_v40, 0  ;;  %v3752_v8 = vadd.f32 %v8621_v39, %v8619_v47  ;;  %v7854_v34 = vld [vmem:[#allocation22 + $0xc0] sm:$0xff] }
 0x267   :  { %4665 = vmatpush.bf16.msra.mxu1 %v7845_v49  ;;  %4653 = vmatpush.bf16.msra.mxu0 %v7836_v7  ;;  %v7838_v7 = vld [vmem:[#allocation22 + $0x40] sm:$0xff] }
 0x268   :  { %v8642_v2 = vadd.f32 %v3299_v42, %v8577_v31  ;;  %v4296_v47 = vmul.f32 %v3752_v8, %v8637_v46  ;;  %v7820_v42 = vld [vmem:[#allocation21 + $0xb0] sm:$0xff] }
 0x269   :  { %4680 = vmatpush.bf16.msra.mxu2 %v7851_v53  ;;  %4693 = vmatpush.bf16.msra.mxu3 %v7859_v44  ;;  %v7805_v53 = vld [vmem:[#allocation21 + $0x38] sm:$0xff] }
 0x26a   :  { %v4295_v39 = vmul.f32 %v3726_v51, %v8642_v2  ;;  %v7819_v51 = vld [vmem:[#allocation21 + $0xa8] sm:$0xff] }
 0x26b   :  { %4666 = vmatpush.bf16.msra.mxu1 %v7844_v30  ;;  %4654 = vmatpush.bf16.msra.mxu0 %v7835_v58  ;;  %v7846_v30 = vld [vmem:[#allocation22 + $0x80] sm:$0xff]  ;;  %v7821_v58 = vld [vmem:[#allocation21 + $0xb8] sm:$0xff] }
 0x26c   :  { %v3740_v15 = vpop.f32.mrf.mxu2  ;;  %v4299_v56 = vadd.f32 %v4296_v47, %v4295_v39  ;;  %v7802_v47 = vld [vmem:[#allocation21 + $0x20] sm:$0xff] }
 0x26d   :  { %v3753_v16 = vpop.f32.mrf.mxu3  ;;  %4681 = vmatpush.bf16.msra.mxu2 %v7850_v62  ;;  %4694 = vmatpush.bf16.msra.mxu3 %v7858_v25  ;;  %v7810_v39 = vld [vmem:[#allocation21 + $0x60] sm:$0xff]  ;;  %v7824_v62 = vld [vmem:[#allocation21 + $0xd0] sm:$0xff]  ;;  %v7799_v25 = vld [vmem:[#allocation21 + $0x8] sm:$0xff] }
 0x26f   :  { %4667 = vmatpush.bf16.msra.mxu1 %v7843_v41  ;;  %4655 = vmatpush.bf16.msra.mxu0 %v7834_v59  ;;  %v7829_v41 = vld [vmem:[#allocation21 + $0xf8] sm:$0xff]  ;;  %v7808_v59 = vld [vmem:[#allocation21 + $0x50] sm:$0xff] }
 0x271   :  { %4682 = vmatpush.bf16.msra.mxu2 %v7849_v4  ;;  %4695 = vmatpush.bf16.msra.mxu3 %v7857_v9  ;;  %v7823_v4 = vld [vmem:[#allocation21 + $0xc8] sm:$0xff] }
 0x273   :  { %4668 = vmatpush.bf16.msra.mxu1 %v7842_v22  ;;  %4656 = vmatpush.bf16.msra.mxu0 %v7833_v37  ;;  %v7816_v22 = vld [vmem:[#allocation21 + $0x90] sm:$0xff]  ;;  %v7807_v37 = vld [vmem:[#allocation21 + $0x48] sm:$0xff] }
 0x275   :  { %4683 = vmatpush.bf16.msra.mxu2 %v7848_v12  ;;  %4696 = vmatpush.bf16.msra.mxu3 %v7856_v14  ;;  %v7806_v12 = vld [vmem:[#allocation21 + $0x40] sm:$0xff] }
 0x276   :  { %v7814_v14 = vld [vmem:[#allocation21 + $0x80] sm:$0xff] }
 0x277   :  { %4669 = vmatpush.bf16.msra.mxu1 %v7841_v1  ;;  %4657 = vmatpush.bf16.msra.mxu0 %v7832_v10  ;;  %v7815_v1 = vld [vmem:[#allocation21 + $0x88] sm:$0xff] }
 0x279   :  { %4684 = vmatpush.bf16.msra.mxu2 %v7847_v19  ;;  %4697 = vmatpush.bf16.msra.mxu3 %v7855_v27 }
 0x27b   :  { %4670 = vmatpush.bf16.msra.mxu1 %v7840_v3  ;;  %4658 = vmatpush.bf16.msra.mxu0 %v7831_v6  ;;  %v7798_v3 = vld [vmem:[#allocation21] sm:$0xff] }
 0x27c   :  { %v3764_v43 = vpop.f32.mrf.mxu0 }
 0x27d   :  { %v3777_v24 = vpop.f32.mrf.mxu1  ;;  %4685 = vmatpush.bf16.msra.mxu2 %v7846_v30  ;;  %4698 = vmatpush.bf16.msra.mxu3 %v7854_v34 }
 0x27e   :  { %v3778_v52 = vadd.f32 %v3777_v24, %v3764_v43  ;;  %v7803_v43 = vld [vmem:[#allocation21 + $0x28] sm:$0xff] }
 0x27f   :  { %4671 = vmatpush.bf16.msra.mxu1 %v7839_v18  ;;  %4659 = vmatpush.bf16.msra.mxu0 %v7830_v28  ;;  %v7811_v24 = vld [vmem:[#allocation21 + $0x68] sm:$0xff] }
 0x280   :  { %v4297_v61 = vmul.f32 %v3778_v52, %v8645_v60  ;;  %v7827_v52 = vld [vmem:[#allocation21 + $0xe8] sm:$0xff] }
 0x281   :  { %4922 = vmatpush.bf16.msrb.mxu2 %v7821_v58  ;;  %4935 = vmatpush.bf16.msrb.mxu3 %v7829_v41 }
 0x282   :  { %v4300_v11 = vadd.f32 %v4299_v56, %v4297_v61  ;;  %v7818_v61 = vld [vmem:[#allocation21 + $0xa0] sm:$0xff] }
 0x283   :  { %4672 = vmatpush.bf16.msra.mxu1 %v7838_v7  ;;  %4896 = vmatpush.bf16.msrb.mxu0 %v7805_v53 }
 0x284   :  { %v3790_v21 = vpop.f32.mrf.mxu2  ;;  %v3766_v13 = vpop.f32.mrf.mxu0 }
 0x285   :  { %v3803_v38 = vpop.f32.mrf.mxu3  ;;  %v3779_v31 = vpop.f32.mrf.mxu1  ;;  %4923 = vmatpush.bf16.msrb.mxu2 %v7820_v42  ;;  %4936 = vmatpush.bf16.msrb.mxu3 %v7828_v35 }
 0x286   :  { %v3804_v23 = vadd.f32 %v3803_v38, %v3790_v21  ;;  %v7826_v38 = vld [vmem:[#allocation21 + $0xe0] sm:$0xff] }
 0x287   :  { %4909 = vmatpush.bf16.msrb.mxu1 %v7813_v36  ;;  %4897 = vmatpush.bf16.msrb.mxu0 %v7804_v33 }
 0x288   :  { %v4298_v29 = vmul.f32 %v3804_v23, %v8651_v55 }
 0x289   :  { %4924 = vmatpush.bf16.msrb.mxu2 %v7819_v51  ;;  %4937 = vmatpush.bf16.msrb.mxu3 %v7827_v52 }
 0x28a   :  { %v4301_v17 = vadd.f32 %v4300_v11, %v4298_v29  ;;  %v7801_v29 = vld [vmem:[#allocation21 + $0x18] sm:$0xff] }
 0x28b   :  { %4910 = vmatpush.bf16.msrb.mxu1 %v7812_v32  ;;  %4898 = vmatpush.bf16.msrb.mxu0 %v7803_v43  ;;  %v7809_v11 = vld [vmem:[#allocation21 + $0x58] sm:$0xff] }
 0x28c   :  { %4302 = vadd.xlane.f32.xlu0 %v4301_v17  ;;  %v3792_v48 = vpop.f32.mrf.mxu2  ;;  %v7817_v17 = vld [vmem:[#allocation21 + $0x98] sm:$0xff] }
 0x28d   :  { %v3805_v57 = vpop.f32.mrf.mxu3  ;;  %4925 = vmatpush.bf16.msrb.mxu2 %v7818_v61  ;;  %4938 = vmatpush.bf16.msrb.mxu3 %v7826_v38  ;;  %v7825_v48 = vld [vmem:[#allocation21 + $0xd8] sm:$0xff] }
 0x28e   :  { %v7800_v57 = vld [vmem:[#allocation21 + $0x10] sm:$0xff] }
 0x28f   :  { %4911 = vmatpush.bf16.msrb.mxu1 %v7811_v24  ;;  %4899 = vmatpush.bf16.msrb.mxu0 %v7802_v47 }
 0x291   :  { %4926 = vmatpush.bf16.msrb.mxu2 %v7817_v17  ;;  %4939 = vmatpush.bf16.msrb.mxu3 %v7825_v48  ;;  %v7880_v17 = vld [vmem:[%s8710_s15] ss:$0 sm:$0xff] }
 0x293   :  { %4912 = vmatpush.bf16.msrb.mxu1 %v7810_v39  ;;  %4900 = vmatpush.bf16.msrb.mxu0 %v7801_v29 }
 0x295   :  { %4927 = vmatpush.bf16.msrb.mxu2 %v7816_v22  ;;  %4940 = vmatpush.bf16.msrb.mxu3 %v7824_v62  ;;  %v4960_v62 = vstv %s4980_s18 }
 0x297   :  { %4913 = vmatpush.bf16.msrb.mxu1 %v7809_v11  ;;  %4901 = vmatpush.bf16.msrb.mxu0 %v7800_v57 }
 0x299   :  { %4928 = vmatpush.bf16.msrb.mxu2 %v7815_v1  ;;  %4941 = vmatpush.bf16.msrb.mxu3 %v7823_v4 }
 0x29b   :  { %4914 = vmatpush.bf16.msrb.mxu1 %v7808_v59  ;;  %4902 = vmatpush.bf16.msrb.mxu0 %v7799_v25 }
 0x29d   :  { %4929 = vmatpush.bf16.msrb.mxu2 %v7814_v14 }
 0x29f   :  { %4915 = vmatpush.bf16.msrb.mxu1 %v7807_v37  ;;  %4903 = vmatpush.bf16.msrb.mxu0 %v7798_v3 }
 0x2a3   :  { %4916 = vmatpush.bf16.msrb.mxu1 %v7806_v12 }
 0x2b2   :  { %v8654_v63 = vpop.f32.mrf.mxu0 }
 0x2ba   :  { %v4202_v15 = vpop.f32.mrf.mxu0 }
 0x2bb   :  { %v8658_v5 = vpop.f32.mrf.mxu2  ;;  %v7822_v15 = vld [vmem:[#allocation21 + $0xc0] sm:$0xff] }
 0x2bc   :  { %v8660_v20 = vpop.f32.mrf.mxu3  ;;  %4942 = vmatpush.bf16.msrb.mxu3 %v7822_v15 }
 0x2bd   :  { %v4240_v36 = vadd.f32 %v8660_v20, %v8658_v5  ;;  %v3313_v5 = vpack.c.bf16 %v8645_v60, %v8645_v60  ;;  %v3314_v20 = vpack.c.bf16 %v8651_v55, %v8651_v55 }
 0x2c3   :  { %v8656_v0 = vpop.f32.mrf.mxu1  ;;  %v4228_v26 = vpop.f32.mrf.mxu2 }
 0x2c4   :  { %v4241_v49 = vpop.f32.mrf.mxu3  ;;  %v4214_v34 = vadd.f32 %v8656_v0, %v8654_v63  ;;  %v3311_v63 = vpack.c.bf16 %v8642_v2, %v8642_v2  ;;  %v3312_v0 = vpack.c.bf16 %v8637_v46, %v8637_v46 }
 0x2cb   :  { %v4215_v16 = vpop.f32.mrf.mxu1 }
 0x2df   :  { %v8662_v40 = vpop.f32.mrf.mxu0 }
 0x2e3   :  { %v8664_v44 = vpop.f32.mrf.mxu1  ;;  %v8666_v45 = vpop.f32.mrf.mxu2 }
 0x2e4   :  { %v8668_v8 = vpop.f32.mrf.mxu3  ;;  %v4266_v28 = vadd.f32 %v8664_v44, %v8662_v40 }
 0x2e5   :  { %v4292_v7 = vadd.f32 %v8668_v8, %v8666_v45 }
 0x2e7   :  { %v4254_v50 = vpop.f32.mrf.mxu0 }
 0x2eb   :  { %v4267_v54 = vpop.f32.mrf.mxu1  ;;  %v4280_v21 = vpop.f32.mrf.mxu2 }
 0x2ec   :  { %v4293_v13 = vpop.f32.mrf.mxu3 }
 0x2ff   :  { %v4303_v23 = vpop.xlane.xlu0 %4302 }
 0x300   :  { %v7029_v31 = vmul.f32 -0.044194173, %v4303_v23 }
 0x302   :  { %v4306_v56 = vmul.f32 1.442695, %v7029_v31  ;;  %v7879_v31 = vld [vmem:[%s8709_s14] ss:$0 sm:$0xff] }
 0x304   :  { %7881 = vpow2.f32 %v4306_v56 }
 0x30a   :  { %v7882_v9 = vpop.eup %7881 }
 0x30b   :  { %v4308_v10 = vadd.f32 1.0, %v7882_v9 }
 0x30d   :  { %7883 = vrcp.f32 %v4308_v10  ;;  %v4320_v19 = vand.u32 2147483648, %v4308_v10  ;;  %v4318_v49 = vand.u32 2147483647, %v4308_v10  ;;  %vm4314_vm1 = vweird.f32 %v4308_v10 }
 0x30f   :  { %v4321_v30 = vor.u32 1.1754944e-38, %v4320_v19  ;;  %vm4319_vm3 = vcmp.eq.f32.partialorder %v4318_v49, 8.507059e+37 }
 0x313   :  { %v7884_v16 = vpop.eup %7883 }
 0x314   :  { %v4310_v6 = vmul.f32 %v7884_v16, %v4308_v10  ;;  %vm4315_vm0 = vweird.f32 %v7884_v16 }
 0x315   :  { %vm4316_vm2 = vmor %vm4314_vm1, %vm4315_vm0 }
 0x316   :  { %v4311_v18 = vsub.f32 1.0, %v4310_v6 }
 0x318   :  { %v4312_v26 = vmul.f32 %v7884_v16, %v4311_v18 }
 0x31a   :  { %v4313_v27 = vadd.f32 %v7884_v16, %v4312_v26 }
 0x31c   :  { %v4317_v53 = vsel %vm4316_vm2, %v7884_v16, %v4313_v27 }
 0x31d   :  { %v4322_v58 = vsel %vm4319_vm3, %v4321_v30, %v4317_v53 }
 0x31e   :  { %v4324_v41 = vmul.f32 %v4322_v58, %v4214_v34  ;;  %v4325_v33 = vmul.f32 %v4322_v58, %v4240_v36  ;;  %v4326_v32 = vmul.f32 %v4322_v58, %v4266_v28  ;;  %v4327_v42 = vmul.f32 %v4322_v58, %v4292_v7 }
 0x320   :  { %v4392_v35 = vpack.c.bf16 %v4324_v41, %v4324_v41  ;;  %v4393_v40 = vpack.c.bf16 %v4325_v33, %v4325_v33  ;;  %v4394_v44 = vpack.c.bf16 %v4326_v32, %v4326_v32  ;;  %v4395_v43 = vpack.c.bf16 %v4327_v42, %v4327_v42 }
 0x322   :  { %4660 = vmatmul.bf16.vlgmr.msra.gmra.mxu0 %v4392_v35  ;;  %4673 = vmatmul.bf16.vlgmr.msra.gmra.mxu1 %v4393_v40 }
 0x323   :  { %4686 = vmatmul.bf16.vlgmr.msra.gmra.mxu2 %v4394_v44  ;;  %4699 = vmatmul.bf16.vlgmr.msra.gmra.mxu3 %v4395_v43 }
 0x332   :  { %4904 = vmatmul.bf16.vlgmr.msrb.gmra.mxu0 %v3311_v63  ;;  %4917 = vmatmul.bf16.vlgmr.msrb.gmra.mxu1 %v3312_v0 }
 0x333   :  { %4930 = vmatmul.bf16.vlgmr.msrb.gmra.mxu2 %v3313_v5  ;;  %4943 = vmatmul.bf16.vlgmr.msrb.gmra.mxu3 %v3314_v20 }
 0x39f   :  { %v4661_v45 = vpop.f32.mrf.mxu0  ;;  %v4674_v8 = vpop.f32.mrf.mxu1 }
 0x3a0   :  { %v4675_v2 = vadd.f32 %v4674_v8, %v4661_v45 }
 0x3a6   :  { %v4687_v24 = vpop.f32.mrf.mxu2  ;;  %v4700_v51 = vpop.f32.mrf.mxu3 }
 0x3a7   :  { %v4663_v52 = vpop.f32.mrf.mxu0  ;;  %v4676_v50 = vpop.f32.mrf.mxu1  ;;  %v4688_v54 = vadd.f32 %v4687_v24, %v4675_v2 }
 0x3a9   :  { %v4701_v39 = vadd.f32 %v4700_v51, %v4688_v54 }
 0x3ae   :  { %v4689_v47 = vpop.f32.mrf.mxu2  ;;  %v4702_v46 = vpop.f32.mrf.mxu3 }
 0x3af   :  { %v4905_v61 = vpop.f32.mrf.mxu0  ;;  %v4918_v60 = vpop.f32.mrf.mxu1 }
 0x3b0   :  { %v4906_v21 = vadd.f32 %v4905_v61, %v4701_v39 }
 0x3b2   :  { %v4919_v38 = vadd.f32 %v4918_v60, %v4906_v21 }
 0x3b6   :  { %v4931_v55 = vpop.f32.mrf.mxu2  ;;  %v4944_v23 = vpop.f32.mrf.mxu3 }
 0x3b7   :  { %v4932_v13 = vadd.f32 %v4931_v55, %v4919_v38  ;;  %v4907_v56 = vpop.f32.mrf.mxu0  ;;  %v4920_v29 = vpop.f32.mrf.mxu1 }
 0x3b9   :  { %v4945_v11 = vadd.f32 %v4944_v23, %v4932_v13 }
 0x3bb   :  { %v4952_v48 = vadd.f32 %v7879_v31, %v4945_v11 }
 0x3bd   :  { %v4957_v57 = vmul.f32 %v7880_v17, %v4952_v48 }
 0x3be   :  { %v4933_v59 = vpop.f32.mrf.mxu2  ;;  %v4946_v22 = vpop.f32.mrf.mxu3 }
 0x3bf   :  { %4958 = vadd.xlane.f32.xlu0 %v4957_v57 }
 0x432   :  { %v4959_v25 = vpop.xlane.xlu0 %4958 }
 0x433   :  { %v4961_v37 = vadd.f32 %v4960_v62, %v4959_v25 }
 0x435   :  { %4963 = vst.msk [vmem:[%s8711_s16] sm:$0xff] %vm4962_vm4, %v4961_v37 }
 0x436   :  { %4968 = vsyncpa [#allocation4], 1 }
 0x437   :  { %4969 = vsyncpa [#allocation8], 1 }
 0x438   :  { %4970 = vsyncpa [#allocation11], 1 }
 0x439   :  { %4971 = vsyncpa [#allocation14], 1 }
 0x43a   :  { %4972 = vsyncpa [#allocation17], 1 }
 0x43b   :  { %4973 = vsyncpa [#allocation20], 1 }
 0x43c   :  { %4974 = vsyncpa [#allocation23], 1 }
 0x43d   :  { %4975 = vsyncpa [#allocation5], 1 }

</bundles_post_ra>
